<compile_context>
chip_gen: v5e
topology: v5e:2x2
jax: 0.10.0
libtpu: 0.0.40
codegen_flags: <defaults>
</compile_context>

<pallas_src>
import functools

import jax
import jax.numpy as jnp
from jax import lax
from jax.experimental import pallas as pl
from jax.experimental.pallas import tpu as pltpu


_ROW_TILE_CAP = 8192               # max vertices per grid step
_ROW_TILE_TARGET_BYTES = 4 << 20   # ~4 MiB streamed per grid step (amortize ~0.35us/step)
_LANE_TILE_CAP = 4096              # faces per grid step for lane-major kernels (mult of 128)


def _row_tile(m, row_bytes):
    """Row tile sized so each grid step streams ~4 MiB; multiple of 512 when tiling."""
    tm = _ROW_TILE_TARGET_BYTES // max(int(row_bytes), 1)
    tm = max(512, min(_ROW_TILE_CAP, (tm // 512) * 512))
    return m if m <= tm else tm


def _lane_tile(f):
    return f if f <= _LANE_TILE_CAP else _LANE_TILE_CAP


# ---------------------------------------------------------------------------
# Kernel 1: y = x @ W + b   (bf16 streams, f32 accumulation, weight VMEM-resident)
# ---------------------------------------------------------------------------
def _linear_kernel(x_ref, w_ref, b_ref, o_ref):
    y = jnp.dot(x_ref[...], w_ref[...], preferred_element_type=jnp.float32)
    o_ref[...] = (y + b_ref[...]).astype(o_ref.dtype)


def pallas_linear(x, w, b, out_dtype=jnp.float32):
    M, Kd = x.shape
    _, Nout = w.shape
    tm = _row_tile(M, 2 * (Kd + Nout))
    return pl.pallas_call(
        _linear_kernel,
        out_shape=jax.ShapeDtypeStruct((M, Nout), out_dtype),
        grid=(pl.cdiv(M, tm),),
        in_specs=[
            pl.BlockSpec((tm, Kd), lambda i: (i, 0)),
            pl.BlockSpec((Kd, Nout), lambda i: (0, 0)),
            pl.BlockSpec((1, Nout), lambda i: (0, 0)),
        ],
        out_specs=pl.BlockSpec((tm, Nout), lambda i: (i, 0)),
        compiler_params=pltpu.CompilerParams(dimension_semantics=("parallel",)),
    )(x, w, b.reshape(1, Nout).astype(jnp.float32))


# ---------------------------------------------------------------------------
# Kernel 2: standalone spectral projection  coeffs = evecs^T @ (mass * x)
#   Used ONCE (before block 0); later projections are fused into the block kernel.
#   Masked path only on the last (partial) tile.
# ---------------------------------------------------------------------------
def _spectral_project_kernel(e_ref, x_ref, m_ref, o_ref, *, n_rows, tm, needs_mask):
    i = pl.program_id(0)

    @pl.when(i == 0)
    def _():
        o_ref[...] = jnp.zeros_like(o_ref)

    e = e_ref[...]                                                    # (tm, K) bf16
    xm = (x_ref[...].astype(jnp.float32) * m_ref[...]).astype(jnp.bfloat16)

    def _accum(e_t, xm_t):
        o_ref[...] += lax.dot_general(e_t, xm_t, (((0,), (0,)), ((), ())),
                                      preferred_element_type=jnp.float32)

    if needs_mask:
        last = pl.num_programs(0) - 1

        @pl.when(i != last)
        def _():
            _accum(e, xm)

        @pl.when(i == last)
        def _():
            row = lax.broadcasted_iota(jnp.int32, (tm, 1), 0) + i * tm
            valid = row < n_rows
            _accum(jnp.where(valid, e, jnp.zeros_like(e)),
                   jnp.where(valid, xm, jnp.zeros_like(xm)))
    else:
        _accum(e, xm)


def pallas_spectral_project(evecs, x, mass2):
    N, K = evecs.shape
    cw = x.shape[1]
    tm = _row_tile(N, 2 * K + 2 * cw + 4)
    needs_mask = (N % tm) != 0
    return pl.pallas_call(
        functools.partial(_spectral_project_kernel, n_rows=N, tm=tm,
                          needs_mask=needs_mask),
        out_shape=jax.ShapeDtypeStruct((K, cw), jnp.float32),
        grid=(pl.cdiv(N, tm),),
        in_specs=[
            pl.BlockSpec((tm, K), lambda i: (i, 0)),
            pl.BlockSpec((tm, cw), lambda i: (i, 0)),
            pl.BlockSpec((tm, 1), lambda i: (i, 0)),
        ],
        out_specs=pl.BlockSpec((K, cw), lambda i: (0, 0)),            # resident accumulator
        compiler_params=pltpu.CompilerParams(dimension_semantics=("arbitrary",)),
    )(evecs, x, mass2)


# ---------------------------------------------------------------------------
# Kernel 3: fused DiffusionNet block + NEXT-block spectral projection.
#   scale = exp(-evals * |t|);  x_diff = evecs @ (coeffs * scale)
#   h = relu(x @ W0a + x_diff @ W0b + b0);  y = x + h @ W1 + b1
#   coeffs_next += evecs^T @ (mass * y)           (resident (K,Cw) accumulator)
# evecs / x read from HBM exactly once per block.
# ---------------------------------------------------------------------------
def _diffusion_block_kernel(x_ref, e_ref, m_ref, c_ref, ev_ref, t_ref,
                            w0a_ref, w0b_ref, b0_ref, w1_ref, b1_ref,
                            o_ref, cn_ref, *, n_rows, tm, needs_mask):
    i = pl.program_id(0)

    @pl.when(i == 0)
    def _():
        cn_ref[...] = jnp.zeros_like(cn_ref)

    t = jnp.abs(t_ref[...])                                           # (1, Cw)
    scale = jnp.exp(-ev_ref[...] * t)                                 # (K, Cw) -> EUP
    coeffs = (c_ref[...] * scale).astype(jnp.bfloat16)

    e = e_ref[...]                                                    # (tm, K)  bf16
    x_bf = x_ref[...]                                                 # (tm, Cw) bf16
    x = x_bf.astype(jnp.float32)

    x_diff = jnp.dot(e, coeffs, preferred_element_type=jnp.float32)
    h = jnp.dot(x_bf, w0a_ref[...], preferred_element_type=jnp.float32)
    h = h + jnp.dot(x_diff.astype(jnp.bfloat16), w0b_ref[...],
                    preferred_element_type=jnp.float32)
    h = jnp.maximum(h + b0_ref[...], 0.0)
    y = x + jnp.dot(h.astype(jnp.bfloat16), w1_ref[...],
                    preferred_element_type=jnp.float32) + b1_ref[...]
    o_ref[...] = y.astype(o_ref.dtype)

    # fused projection for the next block (reuses the VMEM-resident e / y tiles)
    ym = (y * m_ref[...]).astype(jnp.bfloat16)

    def _accum(e_t, ym_t):
        cn_ref[...] += lax.dot_general(e_t, ym_t, (((0,), (0,)), ((), ())),
                                       preferred_element_type=jnp.float32)

    if needs_mask:
        last = pl.num_programs(0) - 1

        @pl.when(i != last)
        def _():
            _accum(e, ym)

        @pl.when(i == last)
        def _():
            row = lax.broadcasted_iota(jnp.int32, (tm, 1), 0) + i * tm
            valid = row < n_rows
            _accum(jnp.where(valid, e, jnp.zeros_like(e)),
                   jnp.where(valid, ym, jnp.zeros_like(ym)))
    else:
        _accum(e, ym)


def pallas_diffusion_block(x, evecs, mass2, coeffs, evals2, time2,
                           w0a, w0b, b0, w1, b1):
    N, cw = x.shape
    K = evecs.shape[1]
    tm = _row_tile(N, 4 * cw + 2 * K + 4)
    needs_mask = (N % tm) != 0
    y, cn = pl.pallas_call(
        functools.partial(_diffusion_block_kernel, n_rows=N, tm=tm,
                          needs_mask=needs_mask),
        out_shape=(jax.ShapeDtypeStruct((N, cw), x.dtype),
                   jax.ShapeDtypeStruct((K, cw), jnp.float32)),
        grid=(pl.cdiv(N, tm),),
        in_specs=[
            pl.BlockSpec((tm, cw), lambda i: (i, 0)),   # x row tile (bf16)
            pl.BlockSpec((tm, K), lambda i: (i, 0)),    # evecs row tile (bf16)
            pl.BlockSpec((tm, 1), lambda i: (i, 0)),    # mass row tile (f32)
            pl.BlockSpec((K, cw), lambda i: (0, 0)),    # coeffs (f32)
            pl.BlockSpec((K, 1), lambda i: (0, 0)),     # evals
            pl.BlockSpec((1, cw), lambda i: (0, 0)),    # diffusion time
            pl.BlockSpec((cw, cw), lambda i: (0, 0)),   # W0 (x half, bf16)
            pl.BlockSpec((cw, cw), lambda i: (0, 0)),   # W0 (x_diff half, bf16)
            pl.BlockSpec((1, cw), lambda i: (0, 0)),    # b0
            pl.BlockSpec((cw, cw), lambda i: (0, 0)),   # W1 (bf16)
            pl.BlockSpec((1, cw), lambda i: (0, 0)),    # b1
        ],
        out_specs=(pl.BlockSpec((tm, cw), lambda i: (i, 0)),
                   pl.BlockSpec((K, cw), lambda i: (0, 0))),          # resident accumulator
        compiler_params=pltpu.CompilerParams(dimension_semantics=("arbitrary",)),
    )(x, evecs, mass2, coeffs, evals2, time2, w0a, w0b, b0, w1, b1)
    return y, cn


# ---------------------------------------------------------------------------
# Kernel 4: fused 4-layer mlp_refine. Output is emitted LANE-DENSE as (12, F)
# (last layer done as dot_general(W3, h) -> (12, tm); no masked (tm,12) stores).
# ---------------------------------------------------------------------------
def _refine_kernel(x_ref, w0_ref, b0_ref, w1_ref, b1_ref,
                   w2_ref, b2_ref, w3_ref, b3_ref, o_ref):
    h = jnp.dot(x_ref[...], w0_ref[...], preferred_element_type=jnp.float32) + b0_ref[...]
    h = jnp.maximum(h, 0.0).astype(jnp.bfloat16)
    h = jnp.dot(h, w1_ref[...], preferred_element_type=jnp.float32) + b1_ref[...]
    h = jnp.maximum(h, 0.0).astype(jnp.bfloat16)
    h = jnp.dot(h, w2_ref[...], preferred_element_type=jnp.float32) + b2_ref[...]
    h = jnp.maximum(h, 0.0).astype(jnp.bfloat16)
    # (C3, 12)^T-style matmul straight into the transposed layout: (12, tm)
    out = lax.dot_general(w3_ref[...], h, (((0,), (1,)), ((), ())),
                          preferred_element_type=jnp.float32)
    o_ref[...] = (out + b3_ref[...]).astype(o_ref.dtype)


def pallas_refine(face_feat, layers):
    (w0, b0), (w1, b1), (w2, b2), (w3, b3) = layers
    Fc, C0 = face_feat.shape
    n_out = w3.shape[1]
    tf = _lane_tile(Fc)

    def wspec(w):
        return pl.BlockSpec(w.shape, lambda i: (0, 0))

    def bspec(n):
        return pl.BlockSpec((1, n), lambda i: (0, 0))

    return pl.pallas_call(
        _refine_kernel,
        out_shape=jax.ShapeDtypeStruct((n_out, Fc), jnp.float32),
        grid=(pl.cdiv(Fc, tf),),
        in_specs=[pl.BlockSpec((tf, C0), lambda i: (i, 0)),
                  wspec(w0), bspec(b0.shape[0]),
                  wspec(w1), bspec(b1.shape[0]),
                  wspec(w2), bspec(b2.shape[0]),
                  wspec(w3), pl.BlockSpec((n_out, 1), lambda i: (0, 0))],
        out_specs=pl.BlockSpec((n_out, tf), lambda i: (0, i)),        # lane-dense
        compiler_params=pltpu.CompilerParams(dimension_semantics=("parallel",)),
    )(face_feat.astype(jnp.bfloat16),
      w0.astype(jnp.bfloat16), b0.reshape(1, -1),
      w1.astype(jnp.bfloat16), b1.reshape(1, -1),
      w2.astype(jnp.bfloat16), b2.reshape(1, -1),
      w3.astype(jnp.bfloat16), b3.reshape(-1, 1))


# ---------------------------------------------------------------------------
# Kernel 5: fused closest-rotation (roma.special_procrustes) + prism transform.
#   Per face f (lane): M = feat[:9], t = feat[9:12].
#   Closest rotation via Davenport's quaternion method: q* = top eigenvector of
#   the 4x4 symmetric K(M) (maximizes tr(R^T M) over SO(3), valid for det(M)<0
#   too), obtained by shifted power iteration — fully lane-parallel VPU work.
#   Then out = prism @ R + t, rows stored directly (no concat).
# TODO(synk): power iteration converges slowly for (rare) near-degenerate spectra;
#             the exact SVD would resolve those cases.
# ---------------------------------------------------------------------------
def _procrustes_prism_kernel(f12_ref, p_ref, prism_out_ref, rot_out_ref, *, n_iter):
    f12 = f12_ref[...]                     # (12, tf) f32
    p = p_ref[...]                         # (9, tf)  f32  p[3*i+j] = prism[f, i, j]

    def row(a, r):
        return a[r:r + 1, :]

    m00, m01, m02, m10, m11, m12, m20, m21, m22 = [row(f12, c) for c in range(9)]
    trn = [row(f12, 9 + k) for k in range(3)]

    # Davenport K matrix for max_R tr(R^T M), q = (w, x, y, z)
    k00 = m00 + m11 + m22
    k11 = m00 - m11 - m22
    k22 = -m00 + m11 - m22
    k33 = -m00 - m11 + m22
    k01 = m21 - m12
    k02 = m02 - m20
    k03 = m10 - m01
    k12 = m01 + m10
    k13 = m02 + m20
    k23 = m12 + m21

    # shift by ||K||_F so K + cI is PSD and the top eigenvector dominates
    c = jnp.sqrt(k00 * k00 + k11 * k11 + k22 * k22 + k33 * k33
                 + 2.0 * (k01 * k01 + k02 * k02 + k03 * k03
                          + k12 * k12 + k13 * k13 + k23 * k23)) + 1e-12
    a00 = k00 + c
    a11 = k11 + c
    a22 = k22 + c
    a33 = k33 + c

    ones = jnp.ones_like(k00)
    q_init = (ones, 0.3 * ones, 0.2 * ones, 0.1 * ones)

    def body(_, q):
        qw, qx, qy, qz = q
        nw = a00 * qw + k01 * qx + k02 * qy + k03 * qz
        nx = k01 * qw + a11 * qx + k12 * qy + k13 * qz
        ny = k02 * qw + k12 * qx + a22 * qy + k23 * qz
        nz = k03 * qw + k13 * qx + k23 * qy + a33 * qz
        inv = lax.rsqrt(nw * nw + nx * nx + ny * ny + nz * nz + 1e-20)
        return (nw * inv, nx * inv, ny * inv, nz * inv)

    qw, qx, qy, qz = lax.fori_loop(0, n_iter, body, q_init)

    xx = qx * qx; yy = qy * qy; zz = qz * qz
    wx = qw * qx; wy = qw * qy; wz = qw * qz
    xy = qx * qy; xz = qx * qz; yz = qy * qz
    r = [1.0 - 2.0 * (yy + zz), 2.0 * (xy - wz),       2.0 * (xz + wy),
         2.0 * (xy + wz),       1.0 - 2.0 * (xx + zz), 2.0 * (yz - wx),
         2.0 * (xz - wy),       2.0 * (yz + wx),       1.0 - 2.0 * (xx + yy)]

    for idx in range(9):                                  # r[3*j+k] = R[j, k]
        rot_out_ref[idx:idx + 1, :] = r[idx]

    # transformed_prism[f, i, k] = sum_j prism[f, i, j] * R[f, j, k] + t[f, k]
    for i in range(3):
        for k in range(3):
            acc = trn[k]
            for j in range(3):
                acc = acc + row(p, 3 * i + j) * r[3 * j + k]
            prism_out_ref[3 * i + k:3 * i + k + 1, :] = acc


def pallas_procrustes_prism(feat12, prism9, n_iter=100):
    Fc = prism9.shape[1]
    tf = _lane_tile(Fc)
    return pl.pallas_call(
        functools.partial(_procrustes_prism_kernel, n_iter=n_iter),
        out_shape=(jax.ShapeDtypeStruct((9, Fc), jnp.float32),
                   jax.ShapeDtypeStruct((9, Fc), jnp.float32)),
        grid=(pl.cdiv(Fc, tf),),
        in_specs=[pl.BlockSpec((12, tf), lambda i: (0, i)),
                  pl.BlockSpec((9, tf), lambda i: (0, i))],
        out_specs=(pl.BlockSpec((9, tf), lambda i: (0, i)),
                   pl.BlockSpec((9, tf), lambda i: (0, i))),
        compiler_params=pltpu.CompilerParams(dimension_semantics=("parallel",)),
    )(feat12, prism9)


# ---------------------------------------------------------------------------
# prism_to_vertices: scatter-add prism corners back onto vertices, average.
# TODO(synk): data-dependent scatter-add left in plain JAX (.at[].add).
# ---------------------------------------------------------------------------
def prism_to_vertices(prism, faces, verts):
    N = verts.shape[0]
    d = prism.shape[-1]
    idx = faces.reshape(-1)
    feats = jnp.zeros((N, d), jnp.float32).at[idx].add(prism.reshape(-1, d))
    counts = jnp.zeros((N,), jnp.float32).at[idx].add(1.0)
    return feats / jnp.clip(counts, 1.0)[:, None]


# ---------------------------------------------------------------------------
# DiffusionNet stand-in.
# TODO(synk): DiffusionNet source not provided; simplified spectral-diffusion +
# per-vertex MLP stand-in (no gradient features / dropout). W0 split assumes the
# block MLP consumes concat([x, x_diff]) in that order.
# ---------------------------------------------------------------------------
def diffusion_net_forward(params, feats, mass, evals, evecs):
    evecs_bf = evecs.astype(jnp.bfloat16)
    mass2 = mass.reshape(-1, 1).astype(jnp.float32)
    evals2 = evals.reshape(-1, 1).astype(jnp.float32)

    w, b = params["lin_in"]
    x = pallas_linear(feats.astype(jnp.bfloat16), w.astype(jnp.bfloat16), b,
                      out_dtype=jnp.bfloat16)                         # (N, Cw) bf16
    cw = x.shape[1]

    # projection for block 0 only; later projections are fused into the block kernel
    coeffs = pallas_spectral_project(evecs_bf, x, mass2)              # (K, Cw) f32

    for blk in params["blocks"]:
        w0, b0 = blk["mlp0"]
        w1, b1 = blk["mlp1"]
        x, coeffs = pallas_diffusion_block(
            x, evecs_bf, mass2, coeffs, evals2, blk["time"].reshape(1, -1),
            w0[:cw].astype(jnp.bfloat16), w0[cw:].astype(jnp.bfloat16),
            b0.reshape(1, -1), w1.astype(jnp.bfloat16), b1.reshape(1, -1))

    w, b = params["lin_out"]
    return pallas_linear(x, w.astype(jnp.bfloat16), b, out_dtype=jnp.float32)


# ---------------------------------------------------------------------------
# Full PrismDecoder forward.
# ---------------------------------------------------------------------------
def prism_decoder_forward(params, pos, faces_t, feats, mass, evals, evecs):
    verts = pos.reshape(-1, 3)                 # (N, 3)
    faces = faces_t.T                          # (F, 3)
    Fc = faces.shape[0]
    prism_base = verts[faces]                  # (F, 3, 3) gather (glue)

    # diffusion_net
    x = diffusion_net_forward(params, feats, mass, evals, evecs)      # (N, C_out)

    # per-face feature gather + mean over the 3 corners
    # TODO(synk): could be fused into the refine kernel via scalar-prefetch DMA gather.
    face_feat = x[faces].mean(axis=1)          # (F, C_out)

    # mlp_refine (lane-dense (12, F) output) -> fused procrustes + prism transform
    r12 = pallas_refine(face_feat, params["refine"])                  # (12, F)
    prism9 = prism_base.reshape(Fc, 9).T                              # (9, F) faces-on-lanes
    prism_t9, rot9 = pallas_procrustes_prism(r12, prism9)             # (9, F) x2

    transformed_prism = prism_t9.T.reshape(Fc, 3, 3)
    rotations = rot9.T.reshape(Fc, 3, 3)

    features = prism_to_vertices(transformed_prism, faces, verts)     # (N, 3)
    return features.reshape(1, -1, 3), transformed_prism, rotations


# ---------------------------------------------------------------------------
# Deterministic parameter init (synthetic, Kaiming-uniform-ish like nn.Linear)
# ---------------------------------------------------------------------------
def init_params(key, C_in, C_out, C_width, N_block):
    keys = list(jax.random.split(key, 8 + 4 * N_block))
    kit = iter(keys)

    def lin(k, cin, cout):
        kw, kb = jax.random.split(k)
        scale = 1.0 / jnp.sqrt(cin)
        w = jax.random.uniform(kw, (cin, cout), jnp.float32, -scale, scale)
        b = jax.random.uniform(kb, (cout,), jnp.float32, -scale, scale)
        return w, b

    params = {"lin_in": lin(next(kit), C_in, C_width), "blocks": []}
    for _ in range(N_block):
        params["blocks"].append({
            "time": jax.random.uniform(next(kit), (C_width,), jnp.float32, 0.0, 1.0),
            "mlp0": lin(next(kit), 2 * C_width, C_width),
            "mlp1": lin(next(kit), C_width, C_width),
        })
    params["lin_out"] = lin(next(kit), C_width, C_out)
    # mlp_refine: Linear(C_out,C_out), Linear(C_out,512), Linear(512,256), Linear(256,12)
    params["refine"] = [
        lin(next(kit), C_out, C_out),
        lin(next(kit), C_out, 512),
        lin(next(kit), 512, 256),
        lin(next(kit), 256, 12),
    ]
    return params


if __name__ == "__main__":
    key = jax.random.PRNGKey(0)
    # small shapes consistent with the module structure
    C_in, C_out, C_width, N_block, K_eig = 64, 64, 32, 2, 16
    N_verts, F_faces = 32, 48

    k_pos, k_feat, k_face, k_mass, k_eval, k_evec, k_param = jax.random.split(key, 7)
    pos = jax.random.normal(k_pos, (N_verts, 3), jnp.float32)
    feats = jax.random.normal(k_feat, (N_verts, C_in), jnp.float32)
    faces_t = jax.random.randint(k_face, (3, F_faces), 0, N_verts, jnp.int32)
    mass = jax.random.uniform(k_mass, (N_verts,), jnp.float32, 0.5, 1.5)
    evals = jax.random.uniform(k_eval, (K_eig,), jnp.float32, 0.0, 10.0)
    evecs = jax.random.normal(k_evec, (N_verts, K_eig), jnp.float32) / jnp.sqrt(N_verts)

    params = init_params(k_param, C_in, C_out, C_width, N_block)

    fwd = jax.jit(prism_decoder_forward)
    features, transformed_prism, rotations = fwd(
        params, pos, faces_t, feats, mass, evals, evecs)
    jax.block_until_ready((features, transformed_prism, rotations))

    assert features.shape == (1, N_verts, 3)
    assert transformed_prism.shape == (F_faces, 3, 3)
    assert rotations.shape == (F_faces, 3, 3)
    print("KERNEL_OK")
</pallas_src>

<mosaic_0001>
module attributes {stable_mosaic.version = 11 : i64} {
  func.func @_linear_kernel(%arg0: i32, %arg1: memref<32x64xbf16, #tpu.memory_space<vmem>>, %arg2: memref<64x32xbf16, #tpu.memory_space<vmem>>, %arg3: memref<1x32xf32, #tpu.memory_space<vmem>>, %arg4: memref<32x32xbf16, #tpu.memory_space<vmem>>) attributes {dimension_semantics = [#tpu.dimension_semantics<parallel>], iteration_bounds = array<i64: 1>, scalar_prefetch = 0 : i64, scratch_operands = 0 : i64, tpu.core_type = #tpu.core_type<tc>, window_params = [{transform_indices = @transform_0, window_bounds = array<i64: 32, 64>}, {pipeline_mode = #tpu.pipeline_mode<synchronous>, transform_indices = @transform_1, window_bounds = array<i64: 64, 32>}, {pipeline_mode = #tpu.pipeline_mode<synchronous>, transform_indices = @transform_2, window_bounds = array<i64: 1, 32>}, {transform_indices = @transform_3, window_bounds = array<i64: 32, 32>}]} {
    %c0 = arith.constant 0 : index
    %c0_0 = arith.constant 0 : index
    %0 = vector.load %arg1[%c0, %c0_0] : memref<32x64xbf16, #tpu.memory_space<vmem>>, vector<32x64xbf16>
    %c0_1 = arith.constant 0 : index
    %c0_2 = arith.constant 0 : index
    %1 = vector.load %arg2[%c0_1, %c0_2] : memref<64x32xbf16, #tpu.memory_space<vmem>>, vector<64x32xbf16>
    %cst = arith.constant dense<0.000000e+00> : vector<32x32xf32>
    %2 = tpu.matmul %0, %1, %cst {dimension_numbers = #tpu.dot_dimension_numbers<[1], [0], [0], [1], [0, 0, 1, 1], [], []>} : vector<32x64xbf16>, vector<64x32xbf16>, vector<32x32xf32> -> vector<32x32xf32>
    %c0_3 = arith.constant 0 : index
    %c0_4 = arith.constant 0 : index
    %3 = vector.load %arg3[%c0_3, %c0_4] : memref<1x32xf32, #tpu.memory_space<vmem>>, vector<1x32xf32>
    %4 = vector.broadcast %3 : vector<1x32xf32> to vector<32x32xf32>
    %5 = arith.addf %2, %4 : vector<32x32xf32>
    %6 = arith.truncf %5 : vector<32x32xf32> to vector<32x32xbf16>
    %c0_5 = arith.constant 0 : index
    %c0_6 = arith.constant 0 : index
    %7 = vector.load %arg4[%c0_5, %c0_6] : memref<32x32xbf16, #tpu.memory_space<vmem>>, vector<32x32xbf16>
    tpu.vector_store %arg4[%c0_5, %c0_6], %6 {strides = array<i32>} : memref<32x32xbf16, #tpu.memory_space<vmem>>, vector<32x32xbf16>,
    return
  }
  func.func @transform_0(%arg0: i32) -> (i32, i32) {
    %c0_i32 = arith.constant 0 : i32
    %c0_i32_0 = arith.constant 0 : i32
    return %arg0, %c0_i32 : i32, i32
  }
  func.func @transform_1(%arg0: i32) -> (i32, i32) {
    %c0_i32 = arith.constant 0 : i32
    %c0_i32_0 = arith.constant 0 : i32
    %c0_i32_1 = arith.constant 0 : i32
    return %c0_i32, %c0_i32_0 : i32, i32
  }
  func.func @transform_2(%arg0: i32) -> (i32, i32) {
    %c0_i32 = arith.constant 0 : i32
    %c0_i32_0 = arith.constant 0 : i32
    %c0_i32_1 = arith.constant 0 : i32
    return %c0_i32, %c0_i32_0 : i32, i32
  }
  func.func @transform_3(%arg0: i32) -> (i32, i32) {
    %c0_i32 = arith.constant 0 : i32
    %c0_i32_0 = arith.constant 0 : i32
    return %arg0, %c0_i32 : i32, i32
  }
}

module attributes {stable_mosaic.version = 11 : i64} {
  func.func @_spectral_project_kernel(%arg0: i32, %arg1: memref<32x16xbf16, #tpu.memory_space<vmem>>, %arg2: memref<32x32xbf16, #tpu.memory_space<vmem>>, %arg3: memref<32x1xf32, #tpu.memory_space<vmem>>, %arg4: memref<16x32xf32, #tpu.memory_space<vmem>>) attributes {dimension_semantics = [#tpu.dimension_semantics<arbitrary>], iteration_bounds = array<i64: 1>, scalar_prefetch = 0 : i64, scratch_operands = 0 : i64, tpu.core_type = #tpu.core_type<tc>, window_params = [{transform_indices = @transform_0, window_bounds = array<i64: 32, 16>}, {transform_indices = @transform_1, window_bounds = array<i64: 32, 32>}, {transform_indices = @transform_2, window_bounds = array<i64: 32, 1>}, {pipeline_mode = #tpu.pipeline_mode<synchronous>, transform_indices = @transform_3, window_bounds = array<i64: 16, 32>}]} {
    %c0_i32 = arith.constant 0 : i32
    %0 = arith.cmpi eq, %arg0, %c0_i32 : i32
    %1 = arith.extui %0 : i1 to i32
    %c0_i32_0 = arith.constant 0 : i32
    %2 = arith.cmpi ne, %1, %c0_i32_0 : i32
    scf.if %2 {
      %cst_10 = arith.constant 0.000000e+00 : f32
      %14 = vector.broadcast %cst_10 : f32 to vector<16x32xf32>
      %c0_11 = arith.constant 0 : index
      %c0_12 = arith.constant 0 : index
      %15 = vector.load %arg4[%c0_11, %c0_12] : memref<16x32xf32, #tpu.memory_space<vmem>>, vector<16x32xf32>
      tpu.vector_store %arg4[%c0_11, %c0_12], %14 {strides = array<i32>} : memref<16x32xf32, #tpu.memory_space<vmem>>, vector<16x32xf32>,
    } else {
    }
    %c0 = arith.constant 0 : index
    %c0_1 = arith.constant 0 : index
    %3 = vector.load %arg1[%c0, %c0_1] : memref<32x16xbf16, #tpu.memory_space<vmem>>, vector<32x16xbf16>
    %c0_2 = arith.constant 0 : index
    %c0_3 = arith.constant 0 : index
    %4 = vector.load %arg2[%c0_2, %c0_3] : memref<32x32xbf16, #tpu.memory_space<vmem>>, vector<32x32xbf16>
    %5 = arith.extf %4 : vector<32x32xbf16> to vector<32x32xf32>
    %c0_4 = arith.constant 0 : index
    %c0_5 = arith.constant 0 : index
    %6 = vector.load %arg3[%c0_4, %c0_5] : memref<32x1xf32, #tpu.memory_space<vmem>>, vector<32x1xf32>
    %7 = vector.broadcast %6 : vector<32x1xf32> to vector<32x32xf32>
    %8 = arith.mulf %5, %7 : vector<32x32xf32>
    %9 = arith.truncf %8 : vector<32x32xf32> to vector<32x32xbf16>
    %c0_6 = arith.constant 0 : index
    %c0_7 = arith.constant 0 : index
    %10 = vector.load %arg4[%c0_6, %c0_7] : memref<16x32xf32, #tpu.memory_space<vmem>>, vector<16x32xf32>
    %cst = arith.constant dense<0.000000e+00> : vector<16x32xf32>
    %11 = tpu.matmul %3, %9, %cst {dimension_numbers = #tpu.dot_dimension_numbers<[0], [0], [1], [1], [0, 1, 1, 1], [], []>} : vector<32x16xbf16>, vector<32x32xbf16>, vector<16x32xf32> -> vector<16x32xf32>
    %12 = arith.addf %10, %11 : vector<16x32xf32>
    %c0_8 = arith.constant 0 : index
    %c0_9 = arith.constant 0 : index
    %13 = vector.load %arg4[%c0_8, %c0_9] : memref<16x32xf32, #tpu.memory_space<vmem>>, vector<16x32xf32>
    tpu.vector_store %arg4[%c0_8, %c0_9], %12 {strides = array<i32>} : memref<16x32xf32, #tpu.memory_space<vmem>>, vector<16x32xf32>,
    return
  }
  func.func @transform_0(%arg0: i32) -> (i32, i32) {
    %c0_i32 = arith.constant 0 : i32
    %c0_i32_0 = arith.constant 0 : i32
    return %arg0, %c0_i32 : i32, i32
  }
  func.func @transform_1(%arg0: i32) -> (i32, i32) {
    %c0_i32 = arith.constant 0 : i32
    %c0_i32_0 = arith.constant 0 : i32
    return %arg0, %c0_i32 : i32, i32
  }
  func.func @transform_2(%arg0: i32) -> (i32, i32) {
    %c0_i32 = arith.constant 0 : i32
    %c0_i32_0 = arith.constant 0 : i32
    return %arg0, %c0_i32 : i32, i32
  }
  func.func @transform_3(%arg0: i32) -> (i32, i32) {
    %c0_i32 = arith.constant 0 : i32
    %c0_i32_0 = arith.constant 0 : i32
    %c0_i32_1 = arith.constant 0 : i32
    return %c0_i32, %c0_i32_0 : i32, i32
  }
}

module attributes {stable_mosaic.version = 11 : i64} {
  func.func @_diffusion_block_kernel(%arg0: i32, %arg1: memref<32x32xbf16, #tpu.memory_space<vmem>>, %arg2: memref<32x16xbf16, #tpu.memory_space<vmem>>, %arg3: memref<32x1xf32, #tpu.memory_space<vmem>>, %arg4: memref<16x32xf32, #tpu.memory_space<vmem>>, %arg5: memref<16x1xf32, #tpu.memory_space<vmem>>, %arg6: memref<1x32xf32, #tpu.memory_space<vmem>>, %arg7: memref<32x32xbf16, #tpu.memory_space<vmem>>, %arg8: memref<32x32xbf16, #tpu.memory_space<vmem>>, %arg9: memref<1x32xf32, #tpu.memory_space<vmem>>, %arg10: memref<32x32xbf16, #tpu.memory_space<vmem>>, %arg11: memref<1x32xf32, #tpu.memory_space<vmem>>, %arg12: memref<32x32xbf16, #tpu.memory_space<vmem>>, %arg13: memref<16x32xf32, #tpu.memory_space<vmem>>) attributes {dimension_semantics = [#tpu.dimension_semantics<arbitrary>], iteration_bounds = array<i64: 1>, scalar_prefetch = 0 : i64, scratch_operands = 0 : i64, tpu.core_type = #tpu.core_type<tc>, window_params = [{transform_indices = @transform_0, window_bounds = array<i64: 32, 32>}, {transform_indices = @transform_1, window_bounds = array<i64: 32, 16>}, {transform_indices = @transform_2, window_bounds = array<i64: 32, 1>}, {pipeline_mode = #tpu.pipeline_mode<synchronous>, transform_indices = @transform_3, window_bounds = array<i64: 16, 32>}, {pipeline_mode = #tpu.pipeline_mode<synchronous>, transform_indices = @transform_4, window_bounds = array<i64: 16, 1>}, {pipeline_mode = #tpu.pipeline_mode<synchronous>, transform_indices = @transform_5, window_bounds = array<i64: 1, 32>}, {pipeline_mode = #tpu.pipeline_mode<synchronous>, transform_indices = @transform_6, window_bounds = array<i64: 32, 32>}, {pipeline_mode = #tpu.pipeline_mode<synchronous>, transform_indices = @transform_7, window_bounds = array<i64: 32, 32>}, {pipeline_mode = #tpu.pipeline_mode<synchronous>, transform_indices = @transform_8, window_bounds = array<i64: 1, 32>}, {pipeline_mode = #tpu.pipeline_mode<synchronous>, transform_indices = @transform_9, window_bounds = array<i64: 32, 32>}, {pipeline_mode = #tpu.pipeline_mode<synchronous>, transform_indices = @transform_10, window_bounds = array<i64: 1, 32>}, {transform_indices = @transform_11, window_bounds = array<i64: 32, 32>}, {pipeline_mode = #tpu.pipeline_mode<synchronous>, transform_indices = @transform_12, window_bounds = array<i64: 16, 32>}]} {
    %c0_i32 = arith.constant 0 : i32
    %0 = arith.cmpi eq, %arg0, %c0_i32 : i32
    %1 = arith.extui %0 : i1 to i32
    %c0_i32_0 = arith.constant 0 : i32
    %2 = arith.cmpi ne, %1, %c0_i32_0 : i32
    scf.if %2 {
      %cst_34 = arith.constant 0.000000e+00 : f32
      %47 = vector.broadcast %cst_34 : f32 to vector<16x32xf32>
      %c0_35 = arith.constant 0 : index
      %c0_36 = arith.constant 0 : index
      %48 = vector.load %arg13[%c0_35, %c0_36] : memref<16x32xf32, #tpu.memory_space<vmem>>, vector<16x32xf32>
      tpu.vector_store %arg13[%c0_35, %c0_36], %47 {strides = array<i32>} : memref<16x32xf32, #tpu.memory_space<vmem>>, vector<16x32xf32>,
    } else {
    }
    %c0 = arith.constant 0 : index
    %c0_1 = arith.constant 0 : index
    %3 = vector.load %arg6[%c0, %c0_1] : memref<1x32xf32, #tpu.memory_space<vmem>>, vector<1x32xf32>
    %4 = math.absf %3 : vector<1x32xf32>
    %c0_2 = arith.constant 0 : index
    %c0_3 = arith.constant 0 : index
    %5 = vector.load %arg5[%c0_2, %c0_3] : memref<16x1xf32, #tpu.memory_space<vmem>>, vector<16x1xf32>
    %cst = arith.constant 0.000000e+00 : f32
    %6 = vector.broadcast %cst : f32 to vector<16x1xf32>
    %7 = arith.subf %6, %5 : vector<16x1xf32>
    %8 = vector.broadcast %7 : vector<16x1xf32> to vector<16x32xf32>
    %9 = vector.broadcast %4 : vector<1x32xf32> to vector<16x32xf32>
    %10 = arith.mulf %8, %9 : vector<16x32xf32>
    %11 = math.exp %10 : vector<16x32xf32>
    %c0_4 = arith.constant 0 : index
    %c0_5 = arith.constant 0 : index
    %12 = vector.load %arg4[%c0_4, %c0_5] : memref<16x32xf32, #tpu.memory_space<vmem>>, vector<16x32xf32>
    %13 = arith.mulf %12, %11 : vector<16x32xf32>
    %14 = arith.truncf %13 : vector<16x32xf32> to vector<16x32xbf16>
    %c0_6 = arith.constant 0 : index
    %c0_7 = arith.constant 0 : index
    %15 = vector.load %arg2[%c0_6, %c0_7] : memref<32x16xbf16, #tpu.memory_space<vmem>>, vector<32x16xbf16>
    %c0_8 = arith.constant 0 : index
    %c0_9 = arith.constant 0 : index
    %16 = vector.load %arg1[%c0_8, %c0_9] : memref<32x32xbf16, #tpu.memory_space<vmem>>, vector<32x32xbf16>
    %17 = arith.extf %16 : vector<32x32xbf16> to vector<32x32xf32>
    %cst_10 = arith.constant dense<0.000000e+00> : vector<32x32xf32>
    %18 = tpu.matmul %15, %14, %cst_10 {dimension_numbers = #tpu.dot_dimension_numbers<[1], [0], [0], [1], [0, 0, 1, 1], [], []>} : vector<32x16xbf16>, vector<16x32xbf16>, vector<32x32xf32> -> vector<32x32xf32>
    %c0_11 = arith.constant 0 : index
    %c0_12 = arith.constant 0 : index
    %19 = vector.load %arg7[%c0_11, %c0_12] : memref<32x32xbf16, #tpu.memory_space<vmem>>, vector<32x32xbf16>
    %cst_13 = arith.constant dense<0.000000e+00> : vector<32x32xf32>
    %20 = tpu.matmul %16, %19, %cst_13 {dimension_numbers = #tpu.dot_dimension_numbers<[1], [0], [0], [1], [0, 0, 1, 1], [], []>} : vector<32x32xbf16>, vector<32x32xbf16>, vector<32x32xf32> -> vector<32x32xf32>
    %21 = arith.truncf %18 : vector<32x32xf32> to vector<32x32xbf16>
    %c0_14 = arith.constant 0 : index
    %c0_15 = arith.constant 0 : index
    %22 = vector.load %arg8[%c0_14, %c0_15] : memref<32x32xbf16, #tpu.memory_space<vmem>>, vector<32x32xbf16>
    %cst_16 = arith.constant dense<0.000000e+00> : vector<32x32xf32>
    %23 = tpu.matmul %21, %22, %cst_16 {dimension_numbers = #tpu.dot_dimension_numbers<[1], [0], [0], [1], [0, 0, 1, 1], [], []>} : vector<32x32xbf16>, vector<32x32xbf16>, vector<32x32xf32> -> vector<32x32xf32>
    %24 = arith.addf %20, %23 : vector<32x32xf32>
    %c0_17 = arith.constant 0 : index
    %c0_18 = arith.constant 0 : index
    %25 = vector.load %arg9[%c0_17, %c0_18] : memref<1x32xf32, #tpu.memory_space<vmem>>, vector<1x32xf32>
    %26 = vector.broadcast %25 : vector<1x32xf32> to vector<32x32xf32>
    %27 = arith.addf %24, %26 : vector<32x32xf32>
    %cst_19 = arith.constant 0.000000e+00 : f32
    %28 = vector.broadcast %cst_19 : f32 to vector<32x32xf32>
    %29 = arith.maximumf %27, %28 : vector<32x32xf32>
    %30 = arith.truncf %29 : vector<32x32xf32> to vector<32x32xbf16>
    %c0_20 = arith.constant 0 : index
    %c0_21 = arith.constant 0 : index
    %31 = vector.load %arg10[%c0_20, %c0_21] : memref<32x32xbf16, #tpu.memory_space<vmem>>, vector<32x32xbf16>
    %cst_22 = arith.constant dense<0.000000e+00> : vector<32x32xf32>
    %32 = tpu.matmul %30, %31, %cst_22 {dimension_numbers = #tpu.dot_dimension_numbers<[1], [0], [0], [1], [0, 0, 1, 1], [], []>} : vector<32x32xbf16>, vector<32x32xbf16>, vector<32x32xf32> -> vector<32x32xf32>
    %33 = arith.addf %17, %32 : vector<32x32xf32>
    %c0_23 = arith.constant 0 : index
    %c0_24 = arith.constant 0 : index
    %34 = vector.load %arg11[%c0_23, %c0_24] : memref<1x32xf32, #tpu.memory_space<vmem>>, vector<1x32xf32>
    %35 = vector.broadcast %34 : vector<1x32xf32> to vector<32x32xf32>
    %36 = arith.addf %33, %35 : vector<32x32xf32>
    %37 = arith.truncf %36 : vector<32x32xf32> to vector<32x32xbf16>
    %c0_25 = arith.constant 0 : index
    %c0_26 = arith.constant 0 : index
    %38 = vector.load %arg12[%c0_25, %c0_26] : memref<32x32xbf16, #tpu.memory_space<vmem>>, vector<32x32xbf16>
    tpu.vector_store %arg12[%c0_25, %c0_26], %37 {strides = array<i32>} : memref<32x32xbf16, #tpu.memory_space<vmem>>, vector<32x32xbf16>,
    %c0_27 = arith.constant 0 : index
    %c0_28 = arith.constant 0 : index
    %39 = vector.load %arg3[%c0_27, %c0_28] : memref<32x1xf32, #tpu.memory_space<vmem>>, vector<32x1xf32>
    %40 = vector.broadcast %39 : vector<32x1xf32> to vector<32x32xf32>
    %41 = arith.mulf %36, %40 : vector<32x32xf32>
    %42 = arith.truncf %41 : vector<32x32xf32> to vector<32x32xbf16>
    %c0_29 = arith.constant 0 : index
    %c0_30 = arith.constant 0 : index
    %43 = vector.load %arg13[%c0_29, %c0_30] : memref<16x32xf32, #tpu.memory_space<vmem>>, vector<16x32xf32>
    %cst_31 = arith.constant dense<0.000000e+00> : vector<16x32xf32>
    %44 = tpu.matmul %15, %42, %cst_31 {dimension_numbers = #tpu.dot_dimension_numbers<[0], [0], [1], [1], [0, 1, 1, 1], [], []>} : vector<32x16xbf16>, vector<32x32xbf16>, vector<16x32xf32> -> vector<16x32xf32>
    %45 = arith.addf %43, %44 : vector<16x32xf32>
    %c0_32 = arith.constant 0 : index
    %c0_33 = arith.constant 0 : index
    %46 = vector.load %arg13[%c0_32, %c0_33] : memref<16x32xf32, #tpu.memory_space<vmem>>, vector<16x32xf32>
    tpu.vector_store %arg13[%c0_32, %c0_33], %45 {strides = array<i32>} : memref<16x32xf32, #tpu.memory_space<vmem>>, vector<16x32xf32>,
    return
  }
  func.func @transform_0(%arg0: i32) -> (i32, i32) {
    %c0_i32 = arith.constant 0 : i32
    %c0_i32_0 = arith.constant 0 : i32
    return %arg0, %c0_i32 : i32, i32
  }
  func.func @transform_1(%arg0: i32) -> (i32, i32) {
    %c0_i32 = arith.constant 0 : i32
    %c0_i32_0 = arith.constant 0 : i32
    return %arg0, %c0_i32 : i32, i32
  }
  func.func @transform_2(%arg0: i32) -> (i32, i32) {
    %c0_i32 = arith.constant 0 : i32
    %c0_i32_0 = arith.constant 0 : i32
    return %arg0, %c0_i32 : i32, i32
  }
  func.func @transform_3(%arg0: i32) -> (i32, i32) {
    %c0_i32 = arith.constant 0 : i32
    %c0_i32_0 = arith.constant 0 : i32
    %c0_i32_1 = arith.constant 0 : i32
    return %c0_i32, %c0_i32_0 : i32, i32
  }
  func.func @transform_4(%arg0: i32) -> (i32, i32) {
    %c0_i32 = arith.constant 0 : i32
    %c0_i32_0 = arith.constant 0 : i32
    %c0_i32_1 = arith.constant 0 : i32
    return %c0_i32, %c0_i32_0 : i32, i32
  }
  func.func @transform_5(%arg0: i32) -> (i32, i32) {
    %c0_i32 = arith.constant 0 : i32
    %c0_i32_0 = arith.constant 0 : i32
    %c0_i32_1 = arith.constant 0 : i32
    return %c0_i32, %c0_i32_0 : i32, i32
  }
  func.func @transform_6(%arg0: i32) -> (i32, i32) {
    %c0_i32 = arith.constant 0 : i32
    %c0_i32_0 = arith.constant 0 : i32
    %c0_i32_1 = arith.constant 0 : i32
    return %c0_i32, %c0_i32_0 : i32, i32
  }
  func.func @transform_7(%arg0: i32) -> (i32, i32) {
    %c0_i32 = arith.constant 0 : i32
    %c0_i32_0 = arith.constant 0 : i32
    %c0_i32_1 = arith.constant 0 : i32
    return %c0_i32, %c0_i32_0 : i32, i32
  }
  func.func @transform_8(%arg0: i32) -> (i32, i32) {
    %c0_i32 = arith.constant 0 : i32
    %c0_i32_0 = arith.constant 0 : i32
    %c0_i32_1 = arith.constant 0 : i32
    return %c0_i32, %c0_i32_0 : i32, i32
  }
  func.func @transform_9(%arg0: i32) -> (i32, i32) {
    %c0_i32 = arith.constant 0 : i32
    %c0_i32_0 = arith.constant 0 : i32
    %c0_i32_1 = arith.constant 0 : i32
    return %c0_i32, %c0_i32_0 : i32, i32
  }
  func.func @transform_10(%arg0: i32) -> (i32, i32) {
    %c0_i32 = arith.constant 0 : i32
    %c0_i32_0 = arith.constant 0 : i32
    %c0_i32_1 = arith.constant 0 : i32
    return %c0_i32, %c0_i32_0 : i32, i32
  }
  func.func @transform_11(%arg0: i32) -> (i32, i32) {
    %c0_i32 = arith.constant 0 : i32
    %c0_i32_0 = arith.constant 0 : i32
    return %arg0, %c0_i32 : i32, i32
  }
  func.func @transform_12(%arg0: i32) -> (i32, i32) {
    %c0_i32 = arith.constant 0 : i32
    %c0_i32_0 = arith.constant 0 : i32
    %c0_i32_1 = arith.constant 0 : i32
    return %c0_i32, %c0_i32_0 : i32, i32
  }
}

module attributes {stable_mosaic.version = 11 : i64} {
  func.func @_diffusion_block_kernel(%arg0: i32, %arg1: memref<32x32xbf16, #tpu.memory_space<vmem>>, %arg2: memref<32x16xbf16, #tpu.memory_space<vmem>>, %arg3: memref<32x1xf32, #tpu.memory_space<vmem>>, %arg4: memref<16x32xf32, #tpu.memory_space<vmem>>, %arg5: memref<16x1xf32, #tpu.memory_space<vmem>>, %arg6: memref<1x32xf32, #tpu.memory_space<vmem>>, %arg7: memref<32x32xbf16, #tpu.memory_space<vmem>>, %arg8: memref<32x32xbf16, #tpu.memory_space<vmem>>, %arg9: memref<1x32xf32, #tpu.memory_space<vmem>>, %arg10: memref<32x32xbf16, #tpu.memory_space<vmem>>, %arg11: memref<1x32xf32, #tpu.memory_space<vmem>>, %arg12: memref<32x32xbf16, #tpu.memory_space<vmem>>, %arg13: memref<16x32xf32, #tpu.memory_space<vmem>>) attributes {dimension_semantics = [#tpu.dimension_semantics<arbitrary>], iteration_bounds = array<i64: 1>, scalar_prefetch = 0 : i64, scratch_operands = 0 : i64, tpu.core_type = #tpu.core_type<tc>, window_params = [{transform_indices = @transform_0, window_bounds = array<i64: 32, 32>}, {transform_indices = @transform_1, window_bounds = array<i64: 32, 16>}, {transform_indices = @transform_2, window_bounds = array<i64: 32, 1>}, {pipeline_mode = #tpu.pipeline_mode<synchronous>, transform_indices = @transform_3, window_bounds = array<i64: 16, 32>}, {pipeline_mode = #tpu.pipeline_mode<synchronous>, transform_indices = @transform_4, window_bounds = array<i64: 16, 1>}, {pipeline_mode = #tpu.pipeline_mode<synchronous>, transform_indices = @transform_5, window_bounds = array<i64: 1, 32>}, {pipeline_mode = #tpu.pipeline_mode<synchronous>, transform_indices = @transform_6, window_bounds = array<i64: 32, 32>}, {pipeline_mode = #tpu.pipeline_mode<synchronous>, transform_indices = @transform_7, window_bounds = array<i64: 32, 32>}, {pipeline_mode = #tpu.pipeline_mode<synchronous>, transform_indices = @transform_8, window_bounds = array<i64: 1, 32>}, {pipeline_mode = #tpu.pipeline_mode<synchronous>, transform_indices = @transform_9, window_bounds = array<i64: 32, 32>}, {pipeline_mode = #tpu.pipeline_mode<synchronous>, transform_indices = @transform_10, window_bounds = array<i64: 1, 32>}, {transform_indices = @transform_11, window_bounds = array<i64: 32, 32>}, {pipeline_mode = #tpu.pipeline_mode<synchronous>, transform_indices = @transform_12, window_bounds = array<i64: 16, 32>}]} {
    %c0_i32 = arith.constant 0 : i32
    %0 = arith.cmpi eq, %arg0, %c0_i32 : i32
    %1 = arith.extui %0 : i1 to i32
    %c0_i32_0 = arith.constant 0 : i32
    %2 = arith.cmpi ne, %1, %c0_i32_0 : i32
    scf.if %2 {
      %cst_34 = arith.constant 0.000000e+00 : f32
      %47 = vector.broadcast %cst_34 : f32 to vector<16x32xf32>
      %c0_35 = arith.constant 0 : index
      %c0_36 = arith.constant 0 : index
      %48 = vector.load %arg13[%c0_35, %c0_36] : memref<16x32xf32, #tpu.memory_space<vmem>>, vector<16x32xf32>
      tpu.vector_store %arg13[%c0_35, %c0_36], %47 {strides = array<i32>} : memref<16x32xf32, #tpu.memory_space<vmem>>, vector<16x32xf32>,
    } else {
    }
    %c0 = arith.constant 0 : index
    %c0_1 = arith.constant 0 : index
    %3 = vector.load %arg6[%c0, %c0_1] : memref<1x32xf32, #tpu.memory_space<vmem>>, vector<1x32xf32>
    %4 = math.absf %3 : vector<1x32xf32>
    %c0_2 = arith.constant 0 : index
    %c0_3 = arith.constant 0 : index
    %5 = vector.load %arg5[%c0_2, %c0_3] : memref<16x1xf32, #tpu.memory_space<vmem>>, vector<16x1xf32>
    %cst = arith.constant 0.000000e+00 : f32
    %6 = vector.broadcast %cst : f32 to vector<16x1xf32>
    %7 = arith.subf %6, %5 : vector<16x1xf32>
    %8 = vector.broadcast %7 : vector<16x1xf32> to vector<16x32xf32>
    %9 = vector.broadcast %4 : vector<1x32xf32> to vector<16x32xf32>
    %10 = arith.mulf %8, %9 : vector<16x32xf32>
    %11 = math.exp %10 : vector<16x32xf32>
    %c0_4 = arith.constant 0 : index
    %c0_5 = arith.constant 0 : index
    %12 = vector.load %arg4[%c0_4, %c0_5] : memref<16x32xf32, #tpu.memory_space<vmem>>, vector<16x32xf32>
    %13 = arith.mulf %12, %11 : vector<16x32xf32>
    %14 = arith.truncf %13 : vector<16x32xf32> to vector<16x32xbf16>
    %c0_6 = arith.constant 0 : index
    %c0_7 = arith.constant 0 : index
    %15 = vector.load %arg2[%c0_6, %c0_7] : memref<32x16xbf16, #tpu.memory_space<vmem>>, vector<32x16xbf16>
    %c0_8 = arith.constant 0 : index
    %c0_9 = arith.constant 0 : index
    %16 = vector.load %arg1[%c0_8, %c0_9] : memref<32x32xbf16, #tpu.memory_space<vmem>>, vector<32x32xbf16>
    %17 = arith.extf %16 : vector<32x32xbf16> to vector<32x32xf32>
    %cst_10 = arith.constant dense<0.000000e+00> : vector<32x32xf32>
    %18 = tpu.matmul %15, %14, %cst_10 {dimension_numbers = #tpu.dot_dimension_numbers<[1], [0], [0], [1], [0, 0, 1, 1], [], []>} : vector<32x16xbf16>, vector<16x32xbf16>, vector<32x32xf32> -> vector<32x32xf32>
    %c0_11 = arith.constant 0 : index
    %c0_12 = arith.constant 0 : index
    %19 = vector.load %arg7[%c0_11, %c0_12] : memref<32x32xbf16, #tpu.memory_space<vmem>>, vector<32x32xbf16>
    %cst_13 = arith.constant dense<0.000000e+00> : vector<32x32xf32>
    %20 = tpu.matmul %16, %19, %cst_13 {dimension_numbers = #tpu.dot_dimension_numbers<[1], [0], [0], [1], [0, 0, 1, 1], [], []>} : vector<32x32xbf16>, vector<32x32xbf16>, vector<32x32xf32> -> vector<32x32xf32>
    %21 = arith.truncf %18 : vector<32x32xf32> to vector<32x32xbf16>
    %c0_14 = arith.constant 0 : index
    %c0_15 = arith.constant 0 : index
    %22 = vector.load %arg8[%c0_14, %c0_15] : memref<32x32xbf16, #tpu.memory_space<vmem>>, vector<32x32xbf16>
    %cst_16 = arith.constant dense<0.000000e+00> : vector<32x32xf32>
    %23 = tpu.matmul %21, %22, %cst_16 {dimension_numbers = #tpu.dot_dimension_numbers<[1], [0], [0], [1], [0, 0, 1, 1], [], []>} : vector<32x32xbf16>, vector<32x32xbf16>, vector<32x32xf32> -> vector<32x32xf32>
    %24 = arith.addf %20, %23 : vector<32x32xf32>
    %c0_17 = arith.constant 0 : index
    %c0_18 = arith.constant 0 : index
    %25 = vector.load %arg9[%c0_17, %c0_18] : memref<1x32xf32, #tpu.memory_space<vmem>>, vector<1x32xf32>
    %26 = vector.broadcast %25 : vector<1x32xf32> to vector<32x32xf32>
    %27 = arith.addf %24, %26 : vector<32x32xf32>
    %cst_19 = arith.constant 0.000000e+00 : f32
    %28 = vector.broadcast %cst_19 : f32 to vector<32x32xf32>
    %29 = arith.maximumf %27, %28 : vector<32x32xf32>
    %30 = arith.truncf %29 : vector<32x32xf32> to vector<32x32xbf16>
    %c0_20 = arith.constant 0 : index
    %c0_21 = arith.constant 0 : index
    %31 = vector.load %arg10[%c0_20, %c0_21] : memref<32x32xbf16, #tpu.memory_space<vmem>>, vector<32x32xbf16>
    %cst_22 = arith.constant dense<0.000000e+00> : vector<32x32xf32>
    %32 = tpu.matmul %30, %31, %cst_22 {dimension_numbers = #tpu.dot_dimension_numbers<[1], [0], [0], [1], [0, 0, 1, 1], [], []>} : vector<32x32xbf16>, vector<32x32xbf16>, vector<32x32xf32> -> vector<32x32xf32>
    %33 = arith.addf %17, %32 : vector<32x32xf32>
    %c0_23 = arith.constant 0 : index
    %c0_24 = arith.constant 0 : index
    %34 = vector.load %arg11[%c0_23, %c0_24] : memref<1x32xf32, #tpu.memory_space<vmem>>, vector<1x32xf32>
    %35 = vector.broadcast %34 : vector<1x32xf32> to vector<32x32xf32>
    %36 = arith.addf %33, %35 : vector<32x32xf32>
    %37 = arith.truncf %36 : vector<32x32xf32> to vector<32x32xbf16>
    %c0_25 = arith.constant 0 : index
    %c0_26 = arith.constant 0 : index
    %38 = vector.load %arg12[%c0_25, %c0_26] : memref<32x32xbf16, #tpu.memory_space<vmem>>, vector<32x32xbf16>
    tpu.vector_store %arg12[%c0_25, %c0_26], %37 {strides = array<i32>} : memref<32x32xbf16, #tpu.memory_space<vmem>>, vector<32x32xbf16>,
    %c0_27 = arith.constant 0 : index
    %c0_28 = arith.constant 0 : index
    %39 = vector.load %arg3[%c0_27, %c0_28] : memref<32x1xf32, #tpu.memory_space<vmem>>, vector<32x1xf32>
    %40 = vector.broadcast %39 : vector<32x1xf32> to vector<32x32xf32>
    %41 = arith.mulf %36, %40 : vector<32x32xf32>
    %42 = arith.truncf %41 : vector<32x32xf32> to vector<32x32xbf16>
    %c0_29 = arith.constant 0 : index
    %c0_30 = arith.constant 0 : index
    %43 = vector.load %arg13[%c0_29, %c0_30] : memref<16x32xf32, #tpu.memory_space<vmem>>, vector<16x32xf32>
    %cst_31 = arith.constant dense<0.000000e+00> : vector<16x32xf32>
    %44 = tpu.matmul %15, %42, %cst_31 {dimension_numbers = #tpu.dot_dimension_numbers<[0], [0], [1], [1], [0, 1, 1, 1], [], []>} : vector<32x16xbf16>, vector<32x32xbf16>, vector<16x32xf32> -> vector<16x32xf32>
    %45 = arith.addf %43, %44 : vector<16x32xf32>
    %c0_32 = arith.constant 0 : index
    %c0_33 = arith.constant 0 : index
    %46 = vector.load %arg13[%c0_32, %c0_33] : memref<16x32xf32, #tpu.memory_space<vmem>>, vector<16x32xf32>
    tpu.vector_store %arg13[%c0_32, %c0_33], %45 {strides = array<i32>} : memref<16x32xf32, #tpu.memory_space<vmem>>, vector<16x32xf32>,
    return
  }
  func.func @transform_0(%arg0: i32) -> (i32, i32) {
    %c0_i32 = arith.constant 0 : i32
    %c0_i32_0 = arith.constant 0 : i32
    return %arg0, %c0_i32 : i32, i32
  }
  func.func @transform_1(%arg0: i32) -> (i32, i32) {
    %c0_i32 = arith.constant 0 : i32
    %c0_i32_0 = arith.constant 0 : i32
    return %arg0, %c0_i32 : i32, i32
  }
  func.func @transform_2(%arg0: i32) -> (i32, i32) {
    %c0_i32 = arith.constant 0 : i32
    %c0_i32_0 = arith.constant 0 : i32
    return %arg0, %c0_i32 : i32, i32
  }
  func.func @transform_3(%arg0: i32) -> (i32, i32) {
    %c0_i32 = arith.constant 0 : i32
    %c0_i32_0 = arith.constant 0 : i32
    %c0_i32_1 = arith.constant 0 : i32
    return %c0_i32, %c0_i32_0 : i32, i32
  }
  func.func @transform_4(%arg0: i32) -> (i32, i32) {
    %c0_i32 = arith.constant 0 : i32
    %c0_i32_0 = arith.constant 0 : i32
    %c0_i32_1 = arith.constant 0 : i32
    return %c0_i32, %c0_i32_0 : i32, i32
  }
  func.func @transform_5(%arg0: i32) -> (i32, i32) {
    %c0_i32 = arith.constant 0 : i32
    %c0_i32_0 = arith.constant 0 : i32
    %c0_i32_1 = arith.constant 0 : i32
    return %c0_i32, %c0_i32_0 : i32, i32
  }
  func.func @transform_6(%arg0: i32) -> (i32, i32) {
    %c0_i32 = arith.constant 0 : i32
    %c0_i32_0 = arith.constant 0 : i32
    %c0_i32_1 = arith.constant 0 : i32
    return %c0_i32, %c0_i32_0 : i32, i32
  }
  func.func @transform_7(%arg0: i32) -> (i32, i32) {
    %c0_i32 = arith.constant 0 : i32
    %c0_i32_0 = arith.constant 0 : i32
    %c0_i32_1 = arith.constant 0 : i32
    return %c0_i32, %c0_i32_0 : i32, i32
  }
  func.func @transform_8(%arg0: i32) -> (i32, i32) {
    %c0_i32 = arith.constant 0 : i32
    %c0_i32_0 = arith.constant 0 : i32
    %c0_i32_1 = arith.constant 0 : i32
    return %c0_i32, %c0_i32_0 : i32, i32
  }
  func.func @transform_9(%arg0: i32) -> (i32, i32) {
    %c0_i32 = arith.constant 0 : i32
    %c0_i32_0 = arith.constant 0 : i32
    %c0_i32_1 = arith.constant 0 : i32
    return %c0_i32, %c0_i32_0 : i32, i32
  }
  func.func @transform_10(%arg0: i32) -> (i32, i32) {
    %c0_i32 = arith.constant 0 : i32
    %c0_i32_0 = arith.constant 0 : i32
    %c0_i32_1 = arith.constant 0 : i32
    return %c0_i32, %c0_i32_0 : i32, i32
  }
  func.func @transform_11(%arg0: i32) -> (i32, i32) {
    %c0_i32 = arith.constant 0 : i32
    %c0_i32_0 = arith.constant 0 : i32
    return %arg0, %c0_i32 : i32, i32
  }
  func.func @transform_12(%arg0: i32) -> (i32, i32) {
    %c0_i32 = arith.constant 0 : i32
    %c0_i32_0 = arith.constant 0 : i32
    %c0_i32_1 = arith.constant 0 : i32
    return %c0_i32, %c0_i32_0 : i32, i32
  }
}

module attributes {stable_mosaic.version = 11 : i64} {
  func.func @_linear_kernel(%arg0: i32, %arg1: memref<32x32xbf16, #tpu.memory_space<vmem>>, %arg2: memref<32x64xbf16, #tpu.memory_space<vmem>>, %arg3: memref<1x64xf32, #tpu.memory_space<vmem>>, %arg4: memref<32x64xf32, #tpu.memory_space<vmem>>) attributes {dimension_semantics = [#tpu.dimension_semantics<parallel>], iteration_bounds = array<i64: 1>, scalar_prefetch = 0 : i64, scratch_operands = 0 : i64, tpu.core_type = #tpu.core_type<tc>, window_params = [{transform_indices = @transform_0, window_bounds = array<i64: 32, 32>}, {pipeline_mode = #tpu.pipeline_mode<synchronous>, transform_indices = @transform_1, window_bounds = array<i64: 32, 64>}, {pipeline_mode = #tpu.pipeline_mode<synchronous>, transform_indices = @transform_2, window_bounds = array<i64: 1, 64>}, {transform_indices = @transform_3, window_bounds = array<i64: 32, 64>}]} {
    %c0 = arith.constant 0 : index
    %c0_0 = arith.constant 0 : index
    %0 = vector.load %arg1[%c0, %c0_0] : memref<32x32xbf16, #tpu.memory_space<vmem>>, vector<32x32xbf16>
    %c0_1 = arith.constant 0 : index
    %c0_2 = arith.constant 0 : index
    %1 = vector.load %arg2[%c0_1, %c0_2] : memref<32x64xbf16, #tpu.memory_space<vmem>>, vector<32x64xbf16>
    %cst = arith.constant dense<0.000000e+00> : vector<32x64xf32>
    %2 = tpu.matmul %0, %1, %cst {dimension_numbers = #tpu.dot_dimension_numbers<[1], [0], [0], [1], [0, 0, 1, 1], [], []>} : vector<32x32xbf16>, vector<32x64xbf16>, vector<32x64xf32> -> vector<32x64xf32>
    %c0_3 = arith.constant 0 : index
    %c0_4 = arith.constant 0 : index
    %3 = vector.load %arg3[%c0_3, %c0_4] : memref<1x64xf32, #tpu.memory_space<vmem>>, vector<1x64xf32>
    %4 = vector.broadcast %3 : vector<1x64xf32> to vector<32x64xf32>
    %5 = arith.addf %2, %4 : vector<32x64xf32>
    %c0_5 = arith.constant 0 : index
    %c0_6 = arith.constant 0 : index
    %6 = vector.load %arg4[%c0_5, %c0_6] : memref<32x64xf32, #tpu.memory_space<vmem>>, vector<32x64xf32>
    tpu.vector_store %arg4[%c0_5, %c0_6], %5 {strides = array<i32>} : memref<32x64xf32, #tpu.memory_space<vmem>>, vector<32x64xf32>,
    return
  }
  func.func @transform_0(%arg0: i32) -> (i32, i32) {
    %c0_i32 = arith.constant 0 : i32
    %c0_i32_0 = arith.constant 0 : i32
    return %arg0, %c0_i32 : i32, i32
  }
  func.func @transform_1(%arg0: i32) -> (i32, i32) {
    %c0_i32 = arith.constant 0 : i32
    %c0_i32_0 = arith.constant 0 : i32
    %c0_i32_1 = arith.constant 0 : i32
    return %c0_i32, %c0_i32_0 : i32, i32
  }
  func.func @transform_2(%arg0: i32) -> (i32, i32) {
    %c0_i32 = arith.constant 0 : i32
    %c0_i32_0 = arith.constant 0 : i32
    %c0_i32_1 = arith.constant 0 : i32
    return %c0_i32, %c0_i32_0 : i32, i32
  }
  func.func @transform_3(%arg0: i32) -> (i32, i32) {
    %c0_i32 = arith.constant 0 : i32
    %c0_i32_0 = arith.constant 0 : i32
    return %arg0, %c0_i32 : i32, i32
  }
}

module attributes {stable_mosaic.version = 11 : i64} {
  func.func @_refine_kernel(%arg0: i32, %arg1: memref<48x64xbf16, #tpu.memory_space<vmem>>, %arg2: memref<64x64xbf16, #tpu.memory_space<vmem>>, %arg3: memref<1x64xf32, #tpu.memory_space<vmem>>, %arg4: memref<64x512xbf16, #tpu.memory_space<vmem>>, %arg5: memref<1x512xf32, #tpu.memory_space<vmem>>, %arg6: memref<512x256xbf16, #tpu.memory_space<vmem>>, %arg7: memref<1x256xf32, #tpu.memory_space<vmem>>, %arg8: memref<256x12xbf16, #tpu.memory_space<vmem>>, %arg9: memref<12x1xf32, #tpu.memory_space<vmem>>, %arg10: memref<12x48xf32, #tpu.memory_space<vmem>>) attributes {dimension_semantics = [#tpu.dimension_semantics<parallel>], iteration_bounds = array<i64: 1>, scalar_prefetch = 0 : i64, scratch_operands = 0 : i64, tpu.core_type = #tpu.core_type<tc>, window_params = [{transform_indices = @transform_0, window_bounds = array<i64: 48, 64>}, {pipeline_mode = #tpu.pipeline_mode<synchronous>, transform_indices = @transform_1, window_bounds = array<i64: 64, 64>}, {pipeline_mode = #tpu.pipeline_mode<synchronous>, transform_indices = @transform_2, window_bounds = array<i64: 1, 64>}, {pipeline_mode = #tpu.pipeline_mode<synchronous>, transform_indices = @transform_3, window_bounds = array<i64: 64, 512>}, {pipeline_mode = #tpu.pipeline_mode<synchronous>, transform_indices = @transform_4, window_bounds = array<i64: 1, 512>}, {pipeline_mode = #tpu.pipeline_mode<synchronous>, transform_indices = @transform_5, window_bounds = array<i64: 512, 256>}, {pipeline_mode = #tpu.pipeline_mode<synchronous>, transform_indices = @transform_6, window_bounds = array<i64: 1, 256>}, {pipeline_mode = #tpu.pipeline_mode<synchronous>, transform_indices = @transform_7, window_bounds = array<i64: 256, 12>}, {pipeline_mode = #tpu.pipeline_mode<synchronous>, transform_indices = @transform_8, window_bounds = array<i64: 12, 1>}, {transform_indices = @transform_9, window_bounds = array<i64: 12, 48>}]} {
    %c0 = arith.constant 0 : index
    %c0_0 = arith.constant 0 : index
    %0 = vector.load %arg1[%c0, %c0_0] : memref<48x64xbf16, #tpu.memory_space<vmem>>, vector<48x64xbf16>
    %c0_1 = arith.constant 0 : index
    %c0_2 = arith.constant 0 : index
    %1 = vector.load %arg2[%c0_1, %c0_2] : memref<64x64xbf16, #tpu.memory_space<vmem>>, vector<64x64xbf16>
    %cst = arith.constant dense<0.000000e+00> : vector<48x64xf32>
    %2 = tpu.matmul %0, %1, %cst {dimension_numbers = #tpu.dot_dimension_numbers<[1], [0], [0], [1], [0, 0, 1, 1], [], []>} : vector<48x64xbf16>, vector<64x64xbf16>, vector<48x64xf32> -> vector<48x64xf32>
    %c0_3 = arith.constant 0 : index
    %c0_4 = arith.constant 0 : index
    %3 = vector.load %arg3[%c0_3, %c0_4] : memref<1x64xf32, #tpu.memory_space<vmem>>, vector<1x64xf32>
    %4 = vector.broadcast %3 : vector<1x64xf32> to vector<48x64xf32>
    %5 = arith.addf %2, %4 : vector<48x64xf32>
    %cst_5 = arith.constant 0.000000e+00 : f32
    %6 = vector.broadcast %cst_5 : f32 to vector<48x64xf32>
    %7 = arith.maximumf %5, %6 : vector<48x64xf32>
    %8 = arith.truncf %7 : vector<48x64xf32> to vector<48x64xbf16>
    %c0_6 = arith.constant 0 : index
    %c0_7 = arith.constant 0 : index
    %9 = vector.load %arg4[%c0_6, %c0_7] : memref<64x512xbf16, #tpu.memory_space<vmem>>, vector<64x512xbf16>
    %cst_8 = arith.constant dense<0.000000e+00> : vector<48x512xf32>
    %10 = tpu.matmul %8, %9, %cst_8 {dimension_numbers = #tpu.dot_dimension_numbers<[1], [0], [0], [1], [0, 0, 1, 1], [], []>} : vector<48x64xbf16>, vector<64x512xbf16>, vector<48x512xf32> -> vector<48x512xf32>
    %c0_9 = arith.constant 0 : index
    %c0_10 = arith.constant 0 : index
    %11 = vector.load %arg5[%c0_9, %c0_10] : memref<1x512xf32, #tpu.memory_space<vmem>>, vector<1x512xf32>
    %12 = vector.broadcast %11 : vector<1x512xf32> to vector<48x512xf32>
    %13 = arith.addf %10, %12 : vector<48x512xf32>
    %cst_11 = arith.constant 0.000000e+00 : f32
    %14 = vector.broadcast %cst_11 : f32 to vector<48x512xf32>
    %15 = arith.maximumf %13, %14 : vector<48x512xf32>
    %16 = arith.truncf %15 : vector<48x512xf32> to vector<48x512xbf16>
    %c0_12 = arith.constant 0 : index
    %c0_13 = arith.constant 0 : index
    %17 = vector.load %arg6[%c0_12, %c0_13] : memref<512x256xbf16, #tpu.memory_space<vmem>>, vector<512x256xbf16>
    %cst_14 = arith.constant dense<0.000000e+00> : vector<48x256xf32>
    %18 = tpu.matmul %16, %17, %cst_14 {dimension_numbers = #tpu.dot_dimension_numbers<[1], [0], [0], [1], [0, 0, 1, 1], [], []>} : vector<48x512xbf16>, vector<512x256xbf16>, vector<48x256xf32> -> vector<48x256xf32>
    %c0_15 = arith.constant 0 : index
    %c0_16 = arith.constant 0 : index
    %19 = vector.load %arg7[%c0_15, %c0_16] : memref<1x256xf32, #tpu.memory_space<vmem>>, vector<1x256xf32>
    %20 = vector.broadcast %19 : vector<1x256xf32> to vector<48x256xf32>
    %21 = arith.addf %18, %20 : vector<48x256xf32>
    %cst_17 = arith.constant 0.000000e+00 : f32
    %22 = vector.broadcast %cst_17 : f32 to vector<48x256xf32>
    %23 = arith.maximumf %21, %22 : vector<48x256xf32>
    %24 = arith.truncf %23 : vector<48x256xf32> to vector<48x256xbf16>
    %c0_18 = arith.constant 0 : index
    %c0_19 = arith.constant 0 : index
    %25 = vector.load %arg8[%c0_18, %c0_19] : memref<256x12xbf16, #tpu.memory_space<vmem>>, vector<256x12xbf16>
    %cst_20 = arith.constant dense<0.000000e+00> : vector<12x48xf32>
    %26 = tpu.matmul %25, %24, %cst_20 {dimension_numbers = #tpu.dot_dimension_numbers<[0], [1], [1], [0], [0, 1, 1, 0], [], []>} : vector<256x12xbf16>, vector<48x256xbf16>, vector<12x48xf32> -> vector<12x48xf32>
    %c0_21 = arith.constant 0 : index
    %c0_22 = arith.constant 0 : index
    %27 = vector.load %arg9[%c0_21, %c0_22] : memref<12x1xf32, #tpu.memory_space<vmem>>, vector<12x1xf32>
    %28 = vector.broadcast %27 : vector<12x1xf32> to vector<12x48xf32>
    %29 = arith.addf %26, %28 : vector<12x48xf32>
    %c0_23 = arith.constant 0 : index
    %c0_24 = arith.constant 0 : index
    %30 = vector.load %arg10[%c0_23, %c0_24] : memref<12x48xf32, #tpu.memory_space<vmem>>, vector<12x48xf32>
    tpu.vector_store %arg10[%c0_23, %c0_24], %29 {strides = array<i32>} : memref<12x48xf32, #tpu.memory_space<vmem>>, vector<12x48xf32>,
    return
  }
  func.func @transform_0(%arg0: i32) -> (i32, i32) {
    %c0_i32 = arith.constant 0 : i32
    %c0_i32_0 = arith.constant 0 : i32
    return %arg0, %c0_i32 : i32, i32
  }
  func.func @transform_1(%arg0: i32) -> (i32, i32) {
    %c0_i32 = arith.constant 0 : i32
    %c0_i32_0 = arith.constant 0 : i32
    %c0_i32_1 = arith.constant 0 : i32
    return %c0_i32, %c0_i32_0 : i32, i32
  }
  func.func @transform_2(%arg0: i32) -> (i32, i32) {
    %c0_i32 = arith.constant 0 : i32
    %c0_i32_0 = arith.constant 0 : i32
    %c0_i32_1 = arith.constant 0 : i32
    return %c0_i32, %c0_i32_0 : i32, i32
  }
  func.func @transform_3(%arg0: i32) -> (i32, i32) {
    %c0_i32 = arith.constant 0 : i32
    %c0_i32_0 = arith.constant 0 : i32
    %c0_i32_1 = arith.constant 0 : i32
    return %c0_i32, %c0_i32_0 : i32, i32
  }
  func.func @transform_4(%arg0: i32) -> (i32, i32) {
    %c0_i32 = arith.constant 0 : i32
    %c0_i32_0 = arith.constant 0 : i32
    %c0_i32_1 = arith.constant 0 : i32
    return %c0_i32, %c0_i32_0 : i32, i32
  }
  func.func @transform_5(%arg0: i32) -> (i32, i32) {
    %c0_i32 = arith.constant 0 : i32
    %c0_i32_0 = arith.constant 0 : i32
    %c0_i32_1 = arith.constant 0 : i32
    return %c0_i32, %c0_i32_0 : i32, i32
  }
  func.func @transform_6(%arg0: i32) -> (i32, i32) {
    %c0_i32 = arith.constant 0 : i32
    %c0_i32_0 = arith.constant 0 : i32
    %c0_i32_1 = arith.constant 0 : i32
    return %c0_i32, %c0_i32_0 : i32, i32
  }
  func.func @transform_7(%arg0: i32) -> (i32, i32) {
    %c0_i32 = arith.constant 0 : i32
    %c0_i32_0 = arith.constant 0 : i32
    %c0_i32_1 = arith.constant 0 : i32
    return %c0_i32, %c0_i32_0 : i32, i32
  }
  func.func @transform_8(%arg0: i32) -> (i32, i32) {
    %c0_i32 = arith.constant 0 : i32
    %c0_i32_0 = arith.constant 0 : i32
    %c0_i32_1 = arith.constant 0 : i32
    return %c0_i32, %c0_i32_0 : i32, i32
  }
  func.func @transform_9(%arg0: i32) -> (i32, i32) {
    %c0_i32 = arith.constant 0 : i32
    %c0_i32_0 = arith.constant 0 : i32
    return %c0_i32, %arg0 : i32, i32
  }
}

module attributes {stable_mosaic.version = 11 : i64} {
  func.func @_procrustes_prism_kernel(%arg0: i32, %arg1: memref<12x48xf32, #tpu.memory_space<vmem>>, %arg2: memref<9x48xf32, #tpu.memory_space<vmem>>, %arg3: memref<9x48xf32, #tpu.memory_space<vmem>>, %arg4: memref<9x48xf32, #tpu.memory_space<vmem>>) attributes {dimension_semantics = [#tpu.dimension_semantics<parallel>], iteration_bounds = array<i64: 1>, scalar_prefetch = 0 : i64, scratch_operands = 0 : i64, tpu.core_type = #tpu.core_type<tc>, window_params = [{transform_indices = @transform_0, window_bounds = array<i64: 12, 48>}, {transform_indices = @transform_1, window_bounds = array<i64: 9, 48>}, {transform_indices = @transform_2, window_bounds = array<i64: 9, 48>}, {transform_indices = @transform_3, window_bounds = array<i64: 9, 48>}]} {
    %c0 = arith.constant 0 : index
    %c0_0 = arith.constant 0 : index
    %0 = vector.load %arg1[%c0, %c0_0] : memref<12x48xf32, #tpu.memory_space<vmem>>, vector<12x48xf32>
    %c0_1 = arith.constant 0 : index
    %c0_2 = arith.constant 0 : index
    %1 = vector.load %arg2[%c0_1, %c0_2] : memref<9x48xf32, #tpu.memory_space<vmem>>, vector<9x48xf32>
    %2 = vector.extract_strided_slice %0 {offsets = [0, 0], sizes = [1, 48], strides = [1, 1]} : vector<12x48xf32> to vector<1x48xf32>
    %3 = vector.extract_strided_slice %0 {offsets = [1, 0], sizes = [1, 48], strides = [1, 1]} : vector<12x48xf32> to vector<1x48xf32>
    %4 = vector.extract_strided_slice %0 {offsets = [2, 0], sizes = [1, 48], strides = [1, 1]} : vector<12x48xf32> to vector<1x48xf32>
    %5 = vector.extract_strided_slice %0 {offsets = [3, 0], sizes = [1, 48], strides = [1, 1]} : vector<12x48xf32> to vector<1x48xf32>
    %6 = vector.extract_strided_slice %0 {offsets = [4, 0], sizes = [1, 48], strides = [1, 1]} : vector<12x48xf32> to vector<1x48xf32>
    %7 = vector.extract_strided_slice %0 {offsets = [5, 0], sizes = [1, 48], strides = [1, 1]} : vector<12x48xf32> to vector<1x48xf32>
    %8 = vector.extract_strided_slice %0 {offsets = [6, 0], sizes = [1, 48], strides = [1, 1]} : vector<12x48xf32> to vector<1x48xf32>
    %9 = vector.extract_strided_slice %0 {offsets = [7, 0], sizes = [1, 48], strides = [1, 1]} : vector<12x48xf32> to vector<1x48xf32>
    %10 = vector.extract_strided_slice %0 {offsets = [8, 0], sizes = [1, 48], strides = [1, 1]} : vector<12x48xf32> to vector<1x48xf32>
    %11 = vector.extract_strided_slice %0 {offsets = [9, 0], sizes = [1, 48], strides = [1, 1]} : vector<12x48xf32> to vector<1x48xf32>
    %12 = vector.extract_strided_slice %0 {offsets = [10, 0], sizes = [1, 48], strides = [1, 1]} : vector<12x48xf32> to vector<1x48xf32>
    %13 = vector.extract_strided_slice %0 {offsets = [11, 0], sizes = [1, 48], strides = [1, 1]} : vector<12x48xf32> to vector<1x48xf32>
    %14 = arith.addf %2, %6 : vector<1x48xf32>
    %15 = arith.addf %14, %10 : vector<1x48xf32>
    %16 = arith.subf %2, %6 : vector<1x48xf32>
    %17 = arith.subf %16, %10 : vector<1x48xf32>
    %cst = arith.constant 0.000000e+00 : f32
    %18 = vector.broadcast %cst : f32 to vector<1x48xf32>
    %19 = arith.subf %18, %2 : vector<1x48xf32>
    %20 = arith.addf %19, %6 : vector<1x48xf32>
    %21 = arith.subf %20, %10 : vector<1x48xf32>
    %cst_3 = arith.constant 0.000000e+00 : f32
    %22 = vector.broadcast %cst_3 : f32 to vector<1x48xf32>
    %23 = arith.subf %22, %2 : vector<1x48xf32>
    %24 = arith.subf %23, %6 : vector<1x48xf32>
    %25 = arith.addf %24, %10 : vector<1x48xf32>
    %26 = arith.subf %9, %7 : vector<1x48xf32>
    %27 = arith.subf %4, %8 : vector<1x48xf32>
    %28 = arith.subf %5, %3 : vector<1x48xf32>
    %29 = arith.addf %3, %5 : vector<1x48xf32>
    %30 = arith.addf %4, %8 : vector<1x48xf32>
    %31 = arith.addf %7, %9 : vector<1x48xf32>
    %32 = arith.mulf %15, %15 : vector<1x48xf32>
    %33 = arith.mulf %17, %17 : vector<1x48xf32>
    %34 = arith.addf %32, %33 : vector<1x48xf32>
    %35 = arith.mulf %21, %21 : vector<1x48xf32>
    %36 = arith.addf %34, %35 : vector<1x48xf32>
    %37 = arith.mulf %25, %25 : vector<1x48xf32>
    %38 = arith.addf %36, %37 : vector<1x48xf32>
    %39 = arith.mulf %26, %26 : vector<1x48xf32>
    %40 = arith.mulf %27, %27 : vector<1x48xf32>
    %41 = arith.addf %39, %40 : vector<1x48xf32>
    %42 = arith.mulf %28, %28 : vector<1x48xf32>
    %43 = arith.addf %41, %42 : vector<1x48xf32>
    %44 = arith.mulf %29, %29 : vector<1x48xf32>
    %45 = arith.addf %43, %44 : vector<1x48xf32>
    %46 = arith.mulf %30, %30 : vector<1x48xf32>
    %47 = arith.addf %45, %46 : vector<1x48xf32>
    %48 = arith.mulf %31, %31 : vector<1x48xf32>
    %49 = arith.addf %47, %48 : vector<1x48xf32>
    %cst_4 = arith.constant 2.000000e+00 : f32
    %50 = vector.broadcast %cst_4 : f32 to vector<1x48xf32>
    %51 = arith.mulf %50, %49 : vector<1x48xf32>
    %52 = arith.addf %38, %51 : vector<1x48xf32>
    %53 = math.sqrt %52 : vector<1x48xf32>
    %cst_5 = arith.constant 9.99999996E-13 : f32
    %54 = vector.broadcast %cst_5 : f32 to vector<1x48xf32>
    %55 = arith.addf %53, %54 : vector<1x48xf32>
    %56 = arith.addf %15, %55 : vector<1x48xf32>
    %57 = arith.addf %17, %55 : vector<1x48xf32>
    %58 = arith.addf %21, %55 : vector<1x48xf32>
    %59 = arith.addf %25, %55 : vector<1x48xf32>
    %cst_6 = arith.constant 1.000000e+00 : f32
    %60 = vector.broadcast %cst_6 : f32 to vector<1x48xf32>
    %cst_7 = arith.constant 3.000000e-01 : f32
    %61 = vector.broadcast %cst_7 : f32 to vector<1x48xf32>
    %62 = arith.mulf %61, %60 : vector<1x48xf32>
    %cst_8 = arith.constant 2.000000e-01 : f32
    %63 = vector.broadcast %cst_8 : f32 to vector<1x48xf32>
    %64 = arith.mulf %63, %60 : vector<1x48xf32>
    %cst_9 = arith.constant 1.000000e-01 : f32
    %65 = vector.broadcast %cst_9 : f32 to vector<1x48xf32>
    %66 = arith.mulf %65, %60 : vector<1x48xf32>
    %c0_i32 = arith.constant 0 : i32
    %c100_i32 = arith.constant 100 : i32
    %67 = arith.addi %c0_i32, %c100_i32 : i32
    %c1_i32 = arith.constant 1 : i32
    %68:4 = scf.for %arg5 = %c0_i32 to %67 step %c1_i32 iter_args(%arg6 = %60, %arg7 = %62, %arg8 = %64, %arg9 = %66) -> (vector<1x48xf32>, vector<1x48xf32>, vector<1x48xf32>, vector<1x48xf32>)  : i32 {
      %210 = arith.mulf %56, %arg6 : vector<1x48xf32>
      %211 = arith.mulf %26, %arg7 : vector<1x48xf32>
      %212 = arith.addf %210, %211 : vector<1x48xf32>
      %213 = arith.mulf %27, %arg8 : vector<1x48xf32>
      %214 = arith.addf %212, %213 : vector<1x48xf32>
      %215 = arith.mulf %28, %arg9 : vector<1x48xf32>
      %216 = arith.addf %214, %215 : vector<1x48xf32>
      %217 = arith.mulf %26, %arg6 : vector<1x48xf32>
      %218 = arith.mulf %57, %arg7 : vector<1x48xf32>
      %219 = arith.addf %217, %218 : vector<1x48xf32>
      %220 = arith.mulf %29, %arg8 : vector<1x48xf32>
      %221 = arith.addf %219, %220 : vector<1x48xf32>
      %222 = arith.mulf %30, %arg9 : vector<1x48xf32>
      %223 = arith.addf %221, %222 : vector<1x48xf32>
      %224 = arith.mulf %27, %arg6 : vector<1x48xf32>
      %225 = arith.mulf %29, %arg7 : vector<1x48xf32>
      %226 = arith.addf %224, %225 : vector<1x48xf32>
      %227 = arith.mulf %58, %arg8 : vector<1x48xf32>
      %228 = arith.addf %226, %227 : vector<1x48xf32>
      %229 = arith.mulf %31, %arg9 : vector<1x48xf32>
      %230 = arith.addf %228, %229 : vector<1x48xf32>
      %231 = arith.mulf %28, %arg6 : vector<1x48xf32>
      %232 = arith.mulf %30, %arg7 : vector<1x48xf32>
      %233 = arith.addf %231, %232 : vector<1x48xf32>
      %234 = arith.mulf %31, %arg8 : vector<1x48xf32>
      %235 = arith.addf %233, %234 : vector<1x48xf32>
      %236 = arith.mulf %59, %arg9 : vector<1x48xf32>
      %237 = arith.addf %235, %236 : vector<1x48xf32>
      %238 = arith.mulf %216, %216 : vector<1x48xf32>
      %239 = arith.mulf %223, %223 : vector<1x48xf32>
      %240 = arith.addf %238, %239 : vector<1x48xf32>
      %241 = arith.mulf %230, %230 : vector<1x48xf32>
      %242 = arith.addf %240, %241 : vector<1x48xf32>
      %243 = arith.mulf %237, %237 : vector<1x48xf32>
      %244 = arith.addf %242, %243 : vector<1x48xf32>
      %cst_50 = arith.constant 9.99999968E-21 : f32
      %245 = vector.broadcast %cst_50 : f32 to vector<1x48xf32>
      %246 = arith.addf %244, %245 : vector<1x48xf32>
      %247 = math.rsqrt %246 : vector<1x48xf32>
      %248 = arith.mulf %216, %247 : vector<1x48xf32>
      %249 = arith.mulf %223, %247 : vector<1x48xf32>
      %250 = arith.mulf %230, %247 : vector<1x48xf32>
      %251 = arith.mulf %237, %247 : vector<1x48xf32>
      scf.yield %248, %249, %250, %251 : vector<1x48xf32>, vector<1x48xf32>, vector<1x48xf32>, vector<1x48xf32>
    }
    %69 = arith.mulf %68#1, %68#1 : vector<1x48xf32>
    %70 = arith.mulf %68#2, %68#2 : vector<1x48xf32>
    %71 = arith.mulf %68#3, %68#3 : vector<1x48xf32>
    %72 = arith.mulf %68#0, %68#1 : vector<1x48xf32>
    %73 = arith.mulf %68#0, %68#2 : vector<1x48xf32>
    %74 = arith.mulf %68#0, %68#3 : vector<1x48xf32>
    %75 = arith.mulf %68#1, %68#2 : vector<1x48xf32>
    %76 = arith.mulf %68#1, %68#3 : vector<1x48xf32>
    %77 = arith.mulf %68#2, %68#3 : vector<1x48xf32>
    %78 = arith.addf %70, %71 : vector<1x48xf32>
    %cst_10 = arith.constant 2.000000e+00 : f32
    %79 = vector.broadcast %cst_10 : f32 to vector<1x48xf32>
    %80 = arith.mulf %79, %78 : vector<1x48xf32>
    %cst_11 = arith.constant 1.000000e+00 : f32
    %81 = vector.broadcast %cst_11 : f32 to vector<1x48xf32>
    %82 = arith.subf %81, %80 : vector<1x48xf32>
    %83 = arith.subf %75, %74 : vector<1x48xf32>
    %cst_12 = arith.constant 2.000000e+00 : f32
    %84 = vector.broadcast %cst_12 : f32 to vector<1x48xf32>
    %85 = arith.mulf %84, %83 : vector<1x48xf32>
    %86 = arith.addf %76, %73 : vector<1x48xf32>
    %cst_13 = arith.constant 2.000000e+00 : f32
    %87 = vector.broadcast %cst_13 : f32 to vector<1x48xf32>
    %88 = arith.mulf %87, %86 : vector<1x48xf32>
    %89 = arith.addf %75, %74 : vector<1x48xf32>
    %cst_14 = arith.constant 2.000000e+00 : f32
    %90 = vector.broadcast %cst_14 : f32 to vector<1x48xf32>
    %91 = arith.mulf %90, %89 : vector<1x48xf32>
    %92 = arith.addf %69, %71 : vector<1x48xf32>
    %cst_15 = arith.constant 2.000000e+00 : f32
    %93 = vector.broadcast %cst_15 : f32 to vector<1x48xf32>
    %94 = arith.mulf %93, %92 : vector<1x48xf32>
    %cst_16 = arith.constant 1.000000e+00 : f32
    %95 = vector.broadcast %cst_16 : f32 to vector<1x48xf32>
    %96 = arith.subf %95, %94 : vector<1x48xf32>
    %97 = arith.subf %77, %72 : vector<1x48xf32>
    %cst_17 = arith.constant 2.000000e+00 : f32
    %98 = vector.broadcast %cst_17 : f32 to vector<1x48xf32>
    %99 = arith.mulf %98, %97 : vector<1x48xf32>
    %100 = arith.subf %76, %73 : vector<1x48xf32>
    %cst_18 = arith.constant 2.000000e+00 : f32
    %101 = vector.broadcast %cst_18 : f32 to vector<1x48xf32>
    %102 = arith.mulf %101, %100 : vector<1x48xf32>
    %103 = arith.addf %77, %72 : vector<1x48xf32>
    %cst_19 = arith.constant 2.000000e+00 : f32
    %104 = vector.broadcast %cst_19 : f32 to vector<1x48xf32>
    %105 = arith.mulf %104, %103 : vector<1x48xf32>
    %106 = arith.addf %69, %70 : vector<1x48xf32>
    %cst_20 = arith.constant 2.000000e+00 : f32
    %107 = vector.broadcast %cst_20 : f32 to vector<1x48xf32>
    %108 = arith.mulf %107, %106 : vector<1x48xf32>
    %cst_21 = arith.constant 1.000000e+00 : f32
    %109 = vector.broadcast %cst_21 : f32 to vector<1x48xf32>
    %110 = arith.subf %109, %108 : vector<1x48xf32>
    %c0_22 = arith.constant 0 : index
    %c0_23 = arith.constant 0 : index
    %111 = vector.load %arg4[%c0_22, %c0_23] : memref<9x48xf32, #tpu.memory_space<vmem>>, vector<1x48xf32>
    tpu.vector_store %arg4[%c0_22, %c0_23], %82 {strides = array<i32>} : memref<9x48xf32, #tpu.memory_space<vmem>>, vector<1x48xf32>,
    %c1 = arith.constant 1 : index
    %c0_24 = arith.constant 0 : index
    %112 = vector.load %arg4[%c1, %c0_24] : memref<9x48xf32, #tpu.memory_space<vmem>>, vector<1x48xf32>
    tpu.vector_store %arg4[%c1, %c0_24], %85 {strides = array<i32>} : memref<9x48xf32, #tpu.memory_space<vmem>>, vector<1x48xf32>,
    %c2 = arith.constant 2 : index
    %c0_25 = arith.constant 0 : index
    %113 = vector.load %arg4[%c2, %c0_25] : memref<9x48xf32, #tpu.memory_space<vmem>>, vector<1x48xf32>
    tpu.vector_store %arg4[%c2, %c0_25], %88 {strides = array<i32>} : memref<9x48xf32, #tpu.memory_space<vmem>>, vector<1x48xf32>,
    %c3 = arith.constant 3 : index
    %c0_26 = arith.constant 0 : index
    %114 = vector.load %arg4[%c3, %c0_26] : memref<9x48xf32, #tpu.memory_space<vmem>>, vector<1x48xf32>
    tpu.vector_store %arg4[%c3, %c0_26], %91 {strides = array<i32>} : memref<9x48xf32, #tpu.memory_space<vmem>>, vector<1x48xf32>,
    %c4 = arith.constant 4 : index
    %c0_27 = arith.constant 0 : index
    %115 = vector.load %arg4[%c4, %c0_27] : memref<9x48xf32, #tpu.memory_space<vmem>>, vector<1x48xf32>
    tpu.vector_store %arg4[%c4, %c0_27], %96 {strides = array<i32>} : memref<9x48xf32, #tpu.memory_space<vmem>>, vector<1x48xf32>,
    %c5 = arith.constant 5 : index
    %c0_28 = arith.constant 0 : index
    %116 = vector.load %arg4[%c5, %c0_28] : memref<9x48xf32, #tpu.memory_space<vmem>>, vector<1x48xf32>
    tpu.vector_store %arg4[%c5, %c0_28], %99 {strides = array<i32>} : memref<9x48xf32, #tpu.memory_space<vmem>>, vector<1x48xf32>,
    %c6 = arith.constant 6 : index
    %c0_29 = arith.constant 0 : index
    %117 = vector.load %arg4[%c6, %c0_29] : memref<9x48xf32, #tpu.memory_space<vmem>>, vector<1x48xf32>
    tpu.vector_store %arg4[%c6, %c0_29], %102 {strides = array<i32>} : memref<9x48xf32, #tpu.memory_space<vmem>>, vector<1x48xf32>,
    %c7 = arith.constant 7 : index
    %c0_30 = arith.constant 0 : index
    %118 = vector.load %arg4[%c7, %c0_30] : memref<9x48xf32, #tpu.memory_space<vmem>>, vector<1x48xf32>
    tpu.vector_store %arg4[%c7, %c0_30], %105 {strides = array<i32>} : memref<9x48xf32, #tpu.memory_space<vmem>>, vector<1x48xf32>,
    %c8 = arith.constant 8 : index
    %c0_31 = arith.constant 0 : index
    %119 = vector.load %arg4[%c8, %c0_31] : memref<9x48xf32, #tpu.memory_space<vmem>>, vector<1x48xf32>
    tpu.vector_store %arg4[%c8, %c0_31], %110 {strides = array<i32>} : memref<9x48xf32, #tpu.memory_space<vmem>>, vector<1x48xf32>,
    %120 = vector.extract_strided_slice %1 {offsets = [0, 0], sizes = [1, 48], strides = [1, 1]} : vector<9x48xf32> to vector<1x48xf32>
    %121 = arith.mulf %120, %82 : vector<1x48xf32>
    %122 = arith.addf %11, %121 : vector<1x48xf32>
    %123 = vector.extract_strided_slice %1 {offsets = [1, 0], sizes = [1, 48], strides = [1, 1]} : vector<9x48xf32> to vector<1x48xf32>
    %124 = arith.mulf %123, %91 : vector<1x48xf32>
    %125 = arith.addf %122, %124 : vector<1x48xf32>
    %126 = vector.extract_strided_slice %1 {offsets = [2, 0], sizes = [1, 48], strides = [1, 1]} : vector<9x48xf32> to vector<1x48xf32>
    %127 = arith.mulf %126, %102 : vector<1x48xf32>
    %128 = arith.addf %125, %127 : vector<1x48xf32>
    %c0_32 = arith.constant 0 : index
    %c0_33 = arith.constant 0 : index
    %129 = vector.load %arg3[%c0_32, %c0_33] : memref<9x48xf32, #tpu.memory_space<vmem>>, vector<1x48xf32>
    tpu.vector_store %arg3[%c0_32, %c0_33], %128 {strides = array<i32>} : memref<9x48xf32, #tpu.memory_space<vmem>>, vector<1x48xf32>,
    %130 = vector.extract_strided_slice %1 {offsets = [0, 0], sizes = [1, 48], strides = [1, 1]} : vector<9x48xf32> to vector<1x48xf32>
    %131 = arith.mulf %130, %85 : vector<1x48xf32>
    %132 = arith.addf %12, %131 : vector<1x48xf32>
    %133 = vector.extract_strided_slice %1 {offsets = [1, 0], sizes = [1, 48], strides = [1, 1]} : vector<9x48xf32> to vector<1x48xf32>
    %134 = arith.mulf %133, %96 : vector<1x48xf32>
    %135 = arith.addf %132, %134 : vector<1x48xf32>
    %136 = vector.extract_strided_slice %1 {offsets = [2, 0], sizes = [1, 48], strides = [1, 1]} : vector<9x48xf32> to vector<1x48xf32>
    %137 = arith.mulf %136, %105 : vector<1x48xf32>
    %138 = arith.addf %135, %137 : vector<1x48xf32>
    %c1_34 = arith.constant 1 : index
    %c0_35 = arith.constant 0 : index
    %139 = vector.load %arg3[%c1_34, %c0_35] : memref<9x48xf32, #tpu.memory_space<vmem>>, vector<1x48xf32>
    tpu.vector_store %arg3[%c1_34, %c0_35], %138 {strides = array<i32>} : memref<9x48xf32, #tpu.memory_space<vmem>>, vector<1x48xf32>,
    %140 = vector.extract_strided_slice %1 {offsets = [0, 0], sizes = [1, 48], strides = [1, 1]} : vector<9x48xf32> to vector<1x48xf32>
    %141 = arith.mulf %140, %88 : vector<1x48xf32>
    %142 = arith.addf %13, %141 : vector<1x48xf32>
    %143 = vector.extract_strided_slice %1 {offsets = [1, 0], sizes = [1, 48], strides = [1, 1]} : vector<9x48xf32> to vector<1x48xf32>
    %144 = arith.mulf %143, %99 : vector<1x48xf32>
    %145 = arith.addf %142, %144 : vector<1x48xf32>
    %146 = vector.extract_strided_slice %1 {offsets = [2, 0], sizes = [1, 48], strides = [1, 1]} : vector<9x48xf32> to vector<1x48xf32>
    %147 = arith.mulf %146, %110 : vector<1x48xf32>
    %148 = arith.addf %145, %147 : vector<1x48xf32>
    %c2_36 = arith.constant 2 : index
    %c0_37 = arith.constant 0 : index
    %149 = vector.load %arg3[%c2_36, %c0_37] : memref<9x48xf32, #tpu.memory_space<vmem>>, vector<1x48xf32>
    tpu.vector_store %arg3[%c2_36, %c0_37], %148 {strides = array<i32>} : memref<9x48xf32, #tpu.memory_space<vmem>>, vector<1x48xf32>,
    %150 = vector.extract_strided_slice %1 {offsets = [3, 0], sizes = [1, 48], strides = [1, 1]} : vector<9x48xf32> to vector<1x48xf32>
    %151 = arith.mulf %150, %82 : vector<1x48xf32>
    %152 = arith.addf %11, %151 : vector<1x48xf32>
    %153 = vector.extract_strided_slice %1 {offsets = [4, 0], sizes = [1, 48], strides = [1, 1]} : vector<9x48xf32> to vector<1x48xf32>
    %154 = arith.mulf %153, %91 : vector<1x48xf32>
    %155 = arith.addf %152, %154 : vector<1x48xf32>
    %156 = vector.extract_strided_slice %1 {offsets = [5, 0], sizes = [1, 48], strides = [1, 1]} : vector<9x48xf32> to vector<1x48xf32>
    %157 = arith.mulf %156, %102 : vector<1x48xf32>
    %158 = arith.addf %155, %157 : vector<1x48xf32>
    %c3_38 = arith.constant 3 : index
    %c0_39 = arith.constant 0 : index
    %159 = vector.load %arg3[%c3_38, %c0_39] : memref<9x48xf32, #tpu.memory_space<vmem>>, vector<1x48xf32>
    tpu.vector_store %arg3[%c3_38, %c0_39], %158 {strides = array<i32>} : memref<9x48xf32, #tpu.memory_space<vmem>>, vector<1x48xf32>,
    %160 = vector.extract_strided_slice %1 {offsets = [3, 0], sizes = [1, 48], strides = [1, 1]} : vector<9x48xf32> to vector<1x48xf32>
    %161 = arith.mulf %160, %85 : vector<1x48xf32>
    %162 = arith.addf %12, %161 : vector<1x48xf32>
    %163 = vector.extract_strided_slice %1 {offsets = [4, 0], sizes = [1, 48], strides = [1, 1]} : vector<9x48xf32> to vector<1x48xf32>
    %164 = arith.mulf %163, %96 : vector<1x48xf32>
    %165 = arith.addf %162, %164 : vector<1x48xf32>
    %166 = vector.extract_strided_slice %1 {offsets = [5, 0], sizes = [1, 48], strides = [1, 1]} : vector<9x48xf32> to vector<1x48xf32>
    %167 = arith.mulf %166, %105 : vector<1x48xf32>
    %168 = arith.addf %165, %167 : vector<1x48xf32>
    %c4_40 = arith.constant 4 : index
    %c0_41 = arith.constant 0 : index
    %169 = vector.load %arg3[%c4_40, %c0_41] : memref<9x48xf32, #tpu.memory_space<vmem>>, vector<1x48xf32>
    tpu.vector_store %arg3[%c4_40, %c0_41], %168 {strides = array<i32>} : memref<9x48xf32, #tpu.memory_space<vmem>>, vector<1x48xf32>,
    %170 = vector.extract_strided_slice %1 {offsets = [3, 0], sizes = [1, 48], strides = [1, 1]} : vector<9x48xf32> to vector<1x48xf32>
    %171 = arith.mulf %170, %88 : vector<1x48xf32>
    %172 = arith.addf %13, %171 : vector<1x48xf32>
    %173 = vector.extract_strided_slice %1 {offsets = [4, 0], sizes = [1, 48], strides = [1, 1]} : vector<9x48xf32> to vector<1x48xf32>
    %174 = arith.mulf %173, %99 : vector<1x48xf32>
    %175 = arith.addf %172, %174 : vector<1x48xf32>
    %176 = vector.extract_strided_slice %1 {offsets = [5, 0], sizes = [1, 48], strides = [1, 1]} : vector<9x48xf32> to vector<1x48xf32>
    %177 = arith.mulf %176, %110 : vector<1x48xf32>
    %178 = arith.addf %175, %177 : vector<1x48xf32>
    %c5_42 = arith.constant 5 : index
    %c0_43 = arith.constant 0 : index
    %179 = vector.load %arg3[%c5_42, %c0_43] : memref<9x48xf32, #tpu.memory_space<vmem>>, vector<1x48xf32>
    tpu.vector_store %arg3[%c5_42, %c0_43], %178 {strides = array<i32>} : memref<9x48xf32, #tpu.memory_space<vmem>>, vector<1x48xf32>,
    %180 = vector.extract_strided_slice %1 {offsets = [6, 0], sizes = [1, 48], strides = [1, 1]} : vector<9x48xf32> to vector<1x48xf32>
    %181 = arith.mulf %180, %82 : vector<1x48xf32>
    %182 = arith.addf %11, %181 : vector<1x48xf32>
    %183 = vector.extract_strided_slice %1 {offsets = [7, 0], sizes = [1, 48], strides = [1, 1]} : vector<9x48xf32> to vector<1x48xf32>
    %184 = arith.mulf %183, %91 : vector<1x48xf32>
    %185 = arith.addf %182, %184 : vector<1x48xf32>
    %186 = vector.extract_strided_slice %1 {offsets = [8, 0], sizes = [1, 48], strides = [1, 1]} : vector<9x48xf32> to vector<1x48xf32>
    %187 = arith.mulf %186, %102 : vector<1x48xf32>
    %188 = arith.addf %185, %187 : vector<1x48xf32>
    %c6_44 = arith.constant 6 : index
    %c0_45 = arith.constant 0 : index
    %189 = vector.load %arg3[%c6_44, %c0_45] : memref<9x48xf32, #tpu.memory_space<vmem>>, vector<1x48xf32>
    tpu.vector_store %arg3[%c6_44, %c0_45], %188 {strides = array<i32>} : memref<9x48xf32, #tpu.memory_space<vmem>>, vector<1x48xf32>,
    %190 = vector.extract_strided_slice %1 {offsets = [6, 0], sizes = [1, 48], strides = [1, 1]} : vector<9x48xf32> to vector<1x48xf32>
    %191 = arith.mulf %190, %85 : vector<1x48xf32>
    %192 = arith.addf %12, %191 : vector<1x48xf32>
    %193 = vector.extract_strided_slice %1 {offsets = [7, 0], sizes = [1, 48], strides = [1, 1]} : vector<9x48xf32> to vector<1x48xf32>
    %194 = arith.mulf %193, %96 : vector<1x48xf32>
    %195 = arith.addf %192, %194 : vector<1x48xf32>
    %196 = vector.extract_strided_slice %1 {offsets = [8, 0], sizes = [1, 48], strides = [1, 1]} : vector<9x48xf32> to vector<1x48xf32>
    %197 = arith.mulf %196, %105 : vector<1x48xf32>
    %198 = arith.addf %195, %197 : vector<1x48xf32>
    %c7_46 = arith.constant 7 : index
    %c0_47 = arith.constant 0 : index
    %199 = vector.load %arg3[%c7_46, %c0_47] : memref<9x48xf32, #tpu.memory_space<vmem>>, vector<1x48xf32>
    tpu.vector_store %arg3[%c7_46, %c0_47], %198 {strides = array<i32>} : memref<9x48xf32, #tpu.memory_space<vmem>>, vector<1x48xf32>,
    %200 = vector.extract_strided_slice %1 {offsets = [6, 0], sizes = [1, 48], strides = [1, 1]} : vector<9x48xf32> to vector<1x48xf32>
    %201 = arith.mulf %200, %88 : vector<1x48xf32>
    %202 = arith.addf %13, %201 : vector<1x48xf32>
    %203 = vector.extract_strided_slice %1 {offsets = [7, 0], sizes = [1, 48], strides = [1, 1]} : vector<9x48xf32> to vector<1x48xf32>
    %204 = arith.mulf %203, %99 : vector<1x48xf32>
    %205 = arith.addf %202, %204 : vector<1x48xf32>
    %206 = vector.extract_strided_slice %1 {offsets = [8, 0], sizes = [1, 48], strides = [1, 1]} : vector<9x48xf32> to vector<1x48xf32>
    %207 = arith.mulf %206, %110 : vector<1x48xf32>
    %208 = arith.addf %205, %207 : vector<1x48xf32>
    %c8_48 = arith.constant 8 : index
    %c0_49 = arith.constant 0 : index
    %209 = vector.load %arg3[%c8_48, %c0_49] : memref<9x48xf32, #tpu.memory_space<vmem>>, vector<1x48xf32>
    tpu.vector_store %arg3[%c8_48, %c0_49], %208 {strides = array<i32>} : memref<9x48xf32, #tpu.memory_space<vmem>>, vector<1x48xf32>,
    return
  }
  func.func @transform_0(%arg0: i32) -> (i32, i32) {
    %c0_i32 = arith.constant 0 : i32
    %c0_i32_0 = arith.constant 0 : i32
    return %c0_i32, %arg0 : i32, i32
  }
  func.func @transform_1(%arg0: i32) -> (i32, i32) {
    %c0_i32 = arith.constant 0 : i32
    %c0_i32_0 = arith.constant 0 : i32
    return %c0_i32, %arg0 : i32, i32
  }
  func.func @transform_2(%arg0: i32) -> (i32, i32) {
    %c0_i32 = arith.constant 0 : i32
    %c0_i32_0 = arith.constant 0 : i32
    return %c0_i32, %arg0 : i32, i32
  }
  func.func @transform_3(%arg0: i32) -> (i32, i32) {
    %c0_i32 = arith.constant 0 : i32
    %c0_i32_0 = arith.constant 0 : i32
    return %c0_i32, %arg0 : i32, i32
  }
}

</mosaic_0001>

<bundles_post_ra>
// kernel: prism_decoder_forward.7
= control target key start
LH: loop header
LB: loop body
LE: loop exit
PB: predicated region body
PF: predicated region fallthrough
CT: control target
= control target key end

     0   :  { %vm65_vm0 = vcmask 523264   ;;  %vm95_vm1 = vcmask 257024   ;;  %s194_s1 = inlined_call_operand.vmem [shape: bf16[64,32], index: 1, kind: input, shape index: {}]   ;;  %s195_s2 = inlined_call_operand.vmem [shape: f32[1,32], index: 2, kind: input, shape index: {}]   ;;  %s196_s0 = inlined_call_operand.vmem [shape: bf16[32,64], index: 0, kind: input, shape index: {}]   ;;  %s197_s3 = inlined_call_operand.vmem [shape: bf16[32,32], index: 3, kind: output, shape index: {}]  }
   0x1   :  { %v135_v0 = vld [vmem:[%s194_s1 + $0x18] sm:$0xff]  ;;  %v134_v1 = vld [vmem:[%s194_s1 + $0x10] sm:$0xff]  ;;  %v133_v2 = vld [vmem:[%s194_s1 + $0x8] sm:$0xff] }
   0x2   :  { %76 = vmatpush.bf16.msra.mxu0 %v135_v0  ;;  %136 = vmatpush.bf16.msra.mxu1 %v135_v0  ;;  %v132_v3 = vld [vmem:[%s194_s1] sm:$0xff]  ;;  %v131_v5 = vld [vmem:[%s196_s0 + $0x8] sm:$0xff] }
   0x3   :  { %v130_v4 = vld [vmem:[%s196_s0] sm:$0xff] }
   0x4   :  { %v140_v6 = vld [vmem:[%s195_s2] ss:$0 sm:$0xff] }
   0x6   :  { %77 = vmatpush.bf16.msra.mxu0 %v134_v1  ;;  %137 = vmatpush.bf16.msra.mxu1 %v134_v1 }
   0xa   :  { %78 = vmatpush.bf16.msra.mxu0 %v133_v2  ;;  %138 = vmatpush.bf16.msra.mxu1 %v133_v2 }
   0xe   :  { %79 = vmatpush.bf16.msra.mxu0 %v132_v3  ;;  %139 = vmatpush.bf16.msra.mxu1 %v132_v3 }
  0x11   :  { %128 = vmatmul.msk.bf16.vlgmr.msra.gmra.mxu0 %vm65_vm0, %v130_v4  ;;  %129 = vmatmul.msk.bf16.vlgmr.msra.gmra.mxu1 %vm65_vm0, %v131_v5 }
  0x8e   :  { %v81_v7 = vpop.f32.mrf.mxu0  ;;  %v86_v8 = vpop.f32.mrf.mxu1 }
  0x8f   :  { %v82_v9 = vadd.f32 %v140_v6, %v81_v7  ;;  %v87_v10 = vadd.f32 %v140_v6, %v86_v8 }
  0x91   :  { %v91_v11 = vpack.c.bf16 %v82_v9, %v82_v9  ;;  %v93_v12 = vpack.c.bf16 %v87_v10, %v87_v10 }
  0x93   :  { %96 = vst.msk [vmem:[%s197_s3] sm:$0xf] %vm95_vm1, %v91_v11 }
  0x94   :  { %98 = vst.msk [vmem:[%s197_s3 + $0x8] sm:$0xf] %vm95_vm1, %v93_v12 }
  0x96   :  { %v83_v13 = vpop.f32.mrf.mxu0  ;;  %v88_v14 = vpop.f32.mrf.mxu1 }
  0x97   :  { %v84_v15 = vadd.f32 %v140_v6, %v83_v13  ;;  %v89_v16 = vadd.f32 %v140_v6, %v88_v14 }
  0x99   :  { %v92_v17 = vpack.c.bf16 %v84_v15, %v84_v15  ;;  %v94_v18 = vpack.c.bf16 %v89_v16, %v89_v16 }
  0x9b   :  { %97 = vst.msk [vmem:[%s197_s3 + $0x4] sm:$0xf] %vm95_vm1, %v92_v17 }
  0x9c   :  { %99 = vst.msk [vmem:[%s197_s3 + $0xc] sm:$0xf] %vm95_vm1, %v94_v18 }

// kernel: prism_decoder_forward.8
= control target key start
LH: loop header
LB: loop body
LE: loop exit
PB: predicated region body
PF: predicated region fallthrough
CT: control target
= control target key end

     0   :  { %v144_v1 = vmov 0   ;;  %vm19_vm0 = vcmask 261120   ;;  %v145_v23 = vmov 0.0   ;;  %s208_s0 = inlined_call_operand.vmem [shape: bf16[32,16], index: 0, kind: input, shape index: {}]   ;;  %s209_s2 = inlined_call_operand.vmem [shape: f32[32,1], index: 2, kind: input, shape index: {}]   ;;  %s210_s1 = inlined_call_operand.vmem [shape: bf16[32,32], index: 1, kind: input, shape index: {}]   ;;  %s211_s3 = inlined_call_operand.vmem [shape: f32[16,32], index: 3, kind: output, shape index: {}]  }
   0x1   :  { %v129_v0 = vld [vmem:[%s208_s0] sm:$0xff]  ;;  %142 = vset.pattern.permute.xlu0 %v144_v1  ;;  %v36_v2 = vld [vmem:[%s209_s2 + $0x10] sm:$0xff]  ;;  %143 = vset.pattern.permute.xlu1 %v144_v1  ;;  %v37_v4 = vld [vmem:[%s209_s2 + $0x18] sm:$0xff]  ;;  %20 = vst.msk [vmem:[%s211_s3] sm:$0xff] %vm19_vm0, %v145_v23 }
   0x2   :  { %50 = vperm.xlu0 %142, %v36_v2   ;;  %v34_v3 = vld [vmem:[%s209_s2] sm:$0xff]  ;;  %78 = vxpose.xlu2.c.b16.start [1/2] (short) (narrow) %v129_v0, 16  ;;  %v35_v5 = vld [vmem:[%s209_s2 + $0x8] sm:$0xff]  ;;  %21 = vst.msk [vmem:[%s211_s3 + $0x8] sm:$0xff] %vm19_vm0, %v145_v23 }
   0x3   :  { %40 = vperm.xlu1 %143, %v34_v3   ;;  %v130_v6 = vld [vmem:[%s208_s0 + $0x8] sm:$0xff]  ;;  %v132_v10 = vld [vmem:[%s210_s1] sm:$0xff]  }
   0x4   :  { %v139_v8 = vld [vmem:[%s210_s1 + $0x8] sm:$0xff]   ;;  %v133_v12 = vunpack.c.l.bf16 %v132_v10  ;;  %v134_v14 = vunpack.c.h.bf16 %v132_v10 }
   0x5   :  { %v137_v11 = vunpack.c.l.bf16 %v139_v8  ;;  %v138_v13 = vunpack.c.h.bf16 %v139_v8 }
   0x8   :  { %v64_v25 = vld [vmem:[%s211_s3] sm:$0xff] }
   0x9   :  { %v65_v28 = vld [vmem:[%s211_s3 + $0x8] sm:$0xff] }
   0xa   :  { %55 = vperm.xlu0 %142, %v37_v4  }
   0xb   :  { %45 = vperm.xlu1 %143, %v35_v5  }
  0x12   :  { %79 = vxpose.xlu2.c.b16.end [2/2] (short) (narrow) %v130_v6, 16 }
  0x74   :  { %v51_v7 = vpop.permute.xlu0 %50 }
  0x75   :  { %v41_v9 = vpop.permute.xlu1 %40  ;;  %v60_v15 = vmul.f32 %v137_v11, %v51_v7 }
  0x76   :  { %v58_v17 = vmul.f32 %v133_v12, %v41_v9 }
  0x7c   :  { %v56_v16 = vpop.permute.xlu0 %55 }
  0x7d   :  { %v61_v18 = vmul.f32 %v138_v13, %v56_v16  ;;  %v46_v19 = vpop.permute.xlu1 %45 }
  0x7e   :  { %v59_v20 = vmul.f32 %v134_v14, %v46_v19 }
  0x7f   :  { %v63_v21 = vpack.c.bf16 %v61_v18, %v60_v15 }
  0x80   :  { %v62_v22 = vpack.c.bf16 %v59_v20, %v58_v17 }
  0x81   :  { %104 = vmatpush.bf16.msra.mxu0 %v63_v21 }
  0x85   :  { %105 = vmatpush.bf16.msra.mxu0 %v62_v22 }
  0xa3   :  { %v86_v24 = vpop.trf.xlu2 }
  0xa4   :  { %128 = vmatmul.msk.bf16.vlgmr.msra.gmra.mxu0 %vm19_vm0, %v86_v24 }
 0x121   :  { %v107_v26 = vpop.f32.mrf.mxu0 }
 0x122   :  { %v112_v27 = vadd.f32 %v107_v26, %v64_v25 }
 0x124   :  { %114 = vst.msk [vmem:[%s211_s3] sm:$0xff] %vm19_vm0, %v112_v27 }
 0x129   :  { %v109_v29 = vpop.f32.mrf.mxu0 }
 0x12a   :  { %v113_v30 = vadd.f32 %v109_v29, %v65_v28 }
 0x12c   :  { %115 = vst.msk [vmem:[%s211_s3 + $0x8] sm:$0xff] %vm19_vm0, %v113_v30 }

// kernel: prism_decoder_forward.9
= control target key start
LH: loop header
LB: loop body
LE: loop exit
PB: predicated region body
PF: predicated region fallthrough
CT: control target
= control target key end

     0   :  { %v446_v0 = vmov 0   ;;  %vm45_vm0 = vcmask 261120   ;;  %vm100_vm1 = vcmask 130048   ;;  %vm292_vm2 = vcmask 257024   ;;  %s630_s4 = inlined_call_operand.vmem [shape: f32[16,1], index: 4, kind: input, shape index: {}]   ;;  %s631_s5 = inlined_call_operand.vmem [shape: f32[1,32], index: 5, kind: input, shape index: {}]   ;;  %s632_s1 = inlined_call_operand.vmem [shape: bf16[32,16], index: 1, kind: input, shape index: {}]   ;;  %s633_s6 = inlined_call_operand.vmem [shape: bf16[32,32], index: 6, kind: input, shape index: {}]   ;;  %s634_s0 = inlined_call_operand.vmem [shape: bf16[32,32], index: 0, kind: input, shape index: {}]   ;;  %s635_s3 = inlined_call_operand.vmem [shape: f32[16,32], index: 3, kind: input, shape index: {}]   ;;  %s636_s8 = inlined_call_operand.vmem [shape: f32[1,32], index: 8, kind: input, shape index: {}]   ;;  %s637_s7 = inlined_call_operand.vmem [shape: bf16[32,32], index: 7, kind: input, shape index: {}]   ;;  %s638_s9 = inlined_call_operand.vmem [shape: bf16[32,32], index: 9, kind: input, shape index: {}]   ;;  %s639_s2 = inlined_call_operand.vmem [shape: f32[32,1], index: 2, kind: input, shape index: {}]   ;;  %s640_s10 = inlined_call_operand.vmem [shape: f32[1,32], index: 10, kind: input, shape index: {}]   ;;  %s641_s11 = inlined_call_operand.vmem [shape: bf16[32,32], index: 11, kind: output, shape index: {0}]   ;;  %s642_s12 = inlined_call_operand.vmem [shape: f32[16,32], index: 12, kind: output, shape index: {1}]  }
   0x1   :  { %437 = vset.pattern.permute.xlu0 %v446_v0  ;;  %v50_v1 = vld [vmem:[%s630_s4] sm:$0xff]  ;;  %438 = vset.pattern.permute.xlu1 %v446_v0  ;;  %v51_v3 = vld [vmem:[%s630_s4 + $0x8] sm:$0xff]  ;;  %v299_v39 = vld [vmem:[%s639_s2 + $0x10] sm:$0xff] }
   0x2   :  { %v52_v2 = vsub.f32 0.0, %v50_v1  ;;  %439 = vset.pattern.permute.xlu2 %v446_v0  ;;  %v53_v4 = vsub.f32 0.0, %v51_v3  ;;  %v48_v5 = vld [vmem:[%s631_s5] sm:$0x1]  ;;  %v426_v13 = vld [vmem:[%s632_s1 + $0x8] sm:$0xff]  ;;  %313 = vperm.xlu1 %438, %v299_v39   ;;  %v300_v44 = vld [vmem:[%s639_s2 + $0x18] sm:$0xff] }
   0x3   :  { %v425_v6 = vld [vmem:[%s632_s1] sm:$0xff]  ;;  %v49_v7 = vand.u32 2147483647, %v48_v5  ;;  %v430_v16 = vld [vmem:[%s633_s6 + $0x8] sm:$0xff] }
   0x4   :  { %56 = vperm.xlu0 %437, %v52_v2   ;;  %208 = vmatpush.bf16.msra.mxu2 %v430_v16  ;;  %v429_v17 = vld [vmem:[%s633_s6] sm:$0xff]  ;;  %v74_v21 = vld [vmem:[%s635_s3 + $0x8] sm:$0xff] }
   0x5   :  { %v65_v8 = vperm.slane %v49_v7, 0  ;;  %v427_v18 = vld [vmem:[%s634_s0] sm:$0xff]  ;;  %v432_v26 = vld [vmem:[%s637_s7 + $0x8] sm:$0xff] }
   0x6   :  { %v73_v20 = vld [vmem:[%s635_s3] sm:$0xff]  ;;  %161 = vmatpush.bf16.msra.mxu1 %v432_v26  ;;  %v428_v28 = vld [vmem:[%s634_s0 + $0x8] sm:$0xff] }
   0x7   :  { %v431_v27 = vld [vmem:[%s637_s7] sm:$0xff]  ;;  %v434_v35 = vld [vmem:[%s638_s9 + $0x8] sm:$0xff] }
   0x8   :  { %209 = vmatpush.bf16.msra.mxu2 %v429_v17  ;;  %263 = vmatpush.bf16.msra.mxu3 %v434_v35  ;;  %v433_v36 = vld [vmem:[%s638_s9] sm:$0xff]  ;;  %v298_v45 = vld [vmem:[%s639_s2 + $0x8] sm:$0xff] }
   0x9   :  { %v297_v40 = vld [vmem:[%s639_s2] sm:$0xff] }
   0xa   :  { %162 = vmatpush.bf16.msra.mxu1 %v431_v27  ;;  %303 = vperm.xlu2 %439, %v297_v40   ;;  %v440_v43 = vld [vmem:[%s636_s8] ss:$0 sm:$0xff]  ;;  %v83_v5 = vld [vmem:[%s634_s0 + $0x4] sm:$0xff]  }
   0xb   :  { %412 = vmatmul.msk.bf16.vlgmr.msra.gmra.mxu2 %vm45_vm0, %v427_v18  ;;  %318 = vperm.xlu1 %438, %v300_v44   ;;  %v82_v0 = vld [vmem:[%s634_s0] sm:$0xf] }
   0xc   :  { %61 = vperm.xlu0 %437, %v53_v4   ;;  %264 = vmatpush.bf16.msra.mxu3 %v433_v36  ;;  %v86_v1 = vunpack.c.l.bf16 %v82_v0  ;;  %v441_v2 = vld [vmem:[%s640_s10] ss:$0 sm:$0xff] }
  0x12   :  { %308 = vperm.xlu2 %439, %v298_v45  }
  0x1b   :  { %413 = vmatmul.msk.bf16.gmra.mxu2 %vm45_vm0, %v428_v28 }
  0x2e   :  { %331 = vxpose.xlu0.c.b16.start [1/2] (short) (narrow) %v425_v6, 16 }
  0x3e   :  { %332 = vxpose.xlu0.c.b16.end [2/2] (short) (narrow) %v426_v13, 16 }
  0x64   :  { %v304_v17 = vpop.permute.xlu2 %303 }
  0x6c   :  { %v309_v26 = vpop.permute.xlu2 %308 }
  0x74   :  { %v314_v18 = vpop.permute.xlu1 %313 }
  0x76   :  { %v57_v9 = vpop.permute.xlu0 %56 }
  0x77   :  { %v67_v10 = vmul.f32 %v65_v8, %v57_v9 }
  0x79   :  { %v69_v11 = vmul.f32 1.442695, %v67_v10 }
  0x7b   :  { %442 = vpow2.f32 %v69_v11  ;;  %v447_v11 = vmov 0.0  }
  0x7c   :  { %46 = vst.msk [vmem:[%s642_s12] sm:$0xff] %vm45_vm0, %v447_v11 }
  0x7d   :  { %47 = vst.msk [vmem:[%s642_s12 + $0x8] sm:$0xff] %vm45_vm0, %v447_v11  ;;  %v319_v27 = vpop.permute.xlu1 %318 }
  0x7e   :  { %v62_v12 = vpop.permute.xlu0 %61 }
  0x7f   :  { %v68_v14 = vmul.f32 %v65_v8, %v62_v12  ;;  %v87_v8 = vunpack.c.l.bf16 %v83_v5 }
  0x81   :  { %v71_v15 = vmul.f32 1.442695, %v68_v14  ;;  %v443_v19 = vpop.eup %442  ;;  %v88_v14 = vunpack.c.h.bf16 %v83_v5 }
  0x82   :  { %v75_v23 = vmul.f32 %v443_v19, %v73_v20  ;;  %v85_v19 = vld [vmem:[%s634_s0 + $0xc] sm:$0xf] }
  0x83   :  { %444 = vpow2.f32 %v71_v15  ;;  %v327_v36 = vld [vmem:[%s642_s12] sm:$0xff] }
  0x84   :  { %v328_v39 = vld [vmem:[%s642_s12 + $0x8] sm:$0xff] }
  0x89   :  { %v445_v22 = vpop.eup %444 }
  0x8a   :  { %v76_v24 = vmul.f32 %v445_v22, %v74_v21  ;;  %v89_v22 = vunpack.c.l.bf16 %v85_v19 }
  0x8c   :  { %v77_v25 = vpack.c.bf16 %v76_v24, %v75_v23 }
  0x8e   :  { %114 = vmatpush.bf16.msra.mxu0 %v77_v25  ;;  %v211_v37 = vpop.f32.mrf.mxu2 }
  0x91   :  { %384 = vmatmul.msk.bf16.vlgmr.msra.gmra.mxu0 %vm100_vm1, %v425_v6 }
  0x96   :  { %v213_v41 = vpop.f32.mrf.mxu2 }
  0x9e   :  { %v216_v52 = vpop.f32.mrf.mxu2 }
  0xa1   :  { %385 = vmatmul.msk.bf16.gmra.mxu0 %vm100_vm1, %v426_v13 }
  0xa6   :  { %v218_v56 = vpop.f32.mrf.mxu2 }
  0xda   :  { %v339_v35 = vpop.trf.xlu0 }
 0x10e   :  { %v116_v29 = vpop.f32.mrf.mxu0 }
 0x116   :  { %v118_v30 = vpop.f32.mrf.mxu0 }
 0x117   :  { %v130_v31 = vpack.c.bf16 %v118_v30, %v116_v29 }
 0x119   :  { %394 = vmatmul.msk.bf16.vlgmr.msra.gmra.mxu1 %vm45_vm0, %v130_v31 }
 0x11e   :  { %v121_v32 = vpop.f32.mrf.mxu0 }
 0x126   :  { %v123_v33 = vpop.f32.mrf.mxu0 }
 0x127   :  { %v131_v34 = vpack.c.bf16 %v123_v33, %v121_v32 }
 0x129   :  { %395 = vmatmul.msk.bf16.gmra.mxu1 %vm45_vm0, %v131_v34 }
 0x196   :  { %v164_v38 = vpop.f32.mrf.mxu1 }
 0x197   :  { %v212_v42 = vadd.f32 %v211_v37, %v164_v38 }
 0x199   :  { %v225_v47 = vadd.f32 %v440_v43, %v212_v42 }
 0x19b   :  { %v229_v50 = vmax.f32 %v225_v47, 0.0 }
 0x19e   :  { %v166_v46 = vpop.f32.mrf.mxu1 }
 0x19f   :  { %v214_v48 = vadd.f32 %v213_v41, %v166_v46 }
 0x1a1   :  { %v226_v49 = vadd.f32 %v440_v43, %v214_v48 }
 0x1a3   :  { %v230_v51 = vmax.f32 %v226_v49, 0.0 }
 0x1a5   :  { %v233_v53 = vpack.c.bf16 %v230_v51, %v229_v50 }
 0x1a6   :  { %v169_v54 = vpop.f32.mrf.mxu1 }
 0x1a7   :  { %422 = vmatmul.msk.bf16.vlgmr.msra.gmra.mxu3 %vm45_vm0, %v233_v53  ;;  %v217_v55 = vadd.f32 %v216_v52, %v169_v54 }
 0x1a9   :  { %v227_v58 = vadd.f32 %v440_v43, %v217_v55 }
 0x1ab   :  { %v231_v61 = vmax.f32 %v227_v58, 0.0 }
 0x1ae   :  { %v171_v57 = vpop.f32.mrf.mxu1 }
 0x1af   :  { %v219_v59 = vadd.f32 %v218_v56, %v171_v57 }
 0x1b1   :  { %v228_v60 = vadd.f32 %v440_v43, %v219_v59 }
 0x1b3   :  { %v232_v62 = vmax.f32 %v228_v60, 0.0 }
 0x1b5   :  { %v234_v63 = vpack.c.bf16 %v232_v62, %v231_v61 }
 0x1b7   :  { %423 = vmatmul.msk.bf16.gmra.mxu3 %vm45_vm0, %v234_v63 }
 0x22a   :  { %v266_v3 = vpop.f32.mrf.mxu3 }
 0x22b   :  { %v276_v4 = vadd.f32 %v266_v3, %v86_v1 }
 0x22d   :  { %v284_v6 = vadd.f32 %v441_v2, %v276_v4 }
 0x22f   :  { %v288_v7 = vpack.c.bf16 %v284_v6, %v284_v6  ;;  %v321_v33 = vmul.f32 %v304_v17, %v284_v6 }
 0x231   :  { %293 = vst.msk [vmem:[%s641_s11] sm:$0xf] %vm292_vm2, %v288_v7 }
 0x232   :  { %v268_v9 = vpop.f32.mrf.mxu3 }
 0x233   :  { %v277_v10 = vadd.f32 %v268_v9, %v87_v8 }
 0x235   :  { %v285_v12 = vadd.f32 %v441_v2, %v277_v10 }
 0x237   :  { %v289_v13 = vpack.c.bf16 %v285_v12, %v285_v12  ;;  %v322_v31 = vmul.f32 %v309_v26, %v285_v12 }
 0x239   :  { %294 = vst.msk [vmem:[%s641_s11 + $0x4] sm:$0xf] %vm292_vm2, %v289_v13  ;;  %v325_v34 = vpack.c.bf16 %v322_v31, %v321_v33 }
 0x23a   :  { %v271_v15 = vpop.f32.mrf.mxu3 }
 0x23b   :  { %v278_v16 = vadd.f32 %v271_v15, %v88_v14 }
 0x23d   :  { %v286_v20 = vadd.f32 %v441_v2, %v278_v16 }
 0x23f   :  { %v290_v21 = vpack.c.bf16 %v286_v20, %v286_v20  ;;  %v323_v29 = vmul.f32 %v314_v18, %v286_v20 }
 0x241   :  { %295 = vst.msk [vmem:[%s641_s11 + $0x8] sm:$0xf] %vm292_vm2, %v290_v21 }
 0x242   :  { %v273_v23 = vpop.f32.mrf.mxu3 }
 0x243   :  { %v279_v24 = vadd.f32 %v273_v23, %v89_v22 }
 0x245   :  { %v287_v25 = vadd.f32 %v441_v2, %v279_v24 }
 0x247   :  { %v291_v28 = vpack.c.bf16 %v287_v25, %v287_v25  ;;  %v324_v30 = vmul.f32 %v319_v27, %v287_v25 }
 0x249   :  { %296 = vst.msk [vmem:[%s641_s11 + $0xc] sm:$0xf] %vm292_vm2, %v291_v28  ;;  %v326_v32 = vpack.c.bf16 %v324_v30, %v323_v29 }
 0x24b   :  { %356 = vmatpush.bf16.msrb.mxu0 %v326_v32 }
 0x24f   :  { %357 = vmatpush.bf16.msrb.mxu0 %v325_v34 }
 0x252   :  { %424 = vmatmul.msk.bf16.vlgmr.msrb.gmra.mxu0 %vm45_vm0, %v339_v35 }
 0x2cf   :  { %v359_v37 = vpop.f32.mrf.mxu0 }
 0x2d0   :  { %v364_v38 = vadd.f32 %v359_v37, %v327_v36 }
 0x2d2   :  { %366 = vst.msk [vmem:[%s642_s12] sm:$0xff] %vm45_vm0, %v364_v38 }
 0x2d7   :  { %v361_v40 = vpop.f32.mrf.mxu0 }
 0x2d8   :  { %v365_v41 = vadd.f32 %v361_v40, %v328_v39 }
 0x2da   :  { %367 = vst.msk [vmem:[%s642_s12 + $0x8] sm:$0xff] %vm45_vm0, %v365_v41 }

// kernel: prism_decoder_forward.10
= control target key start
LH: loop header
LB: loop body
LE: loop exit
PB: predicated region body
PF: predicated region fallthrough
CT: control target
= control target key end

     0   :  { %v490_v1 = vmov 0   ;;  %s659_s0 = inlined_call_operand.vmem [shape: bf16[32,32], index: 0, kind: input, shape index: {}]   ;;  %s660_s1 = inlined_call_operand.vmem [shape: bf16[32,16], index: 1, kind: input, shape index: {}]   ;;  %s661_s2 = inlined_call_operand.vmem [shape: f32[32,1], index: 2, kind: input, shape index: {}]   ;;  %s662_s3 = inlined_call_operand.vmem [shape: f32[16,32], index: 3, kind: input, shape index: {}]   ;;  %s663_s4 = inlined_call_operand.vmem [shape: f32[16,1], index: 4, kind: input, shape index: {}]   ;;  %s664_s5 = inlined_call_operand.vmem [shape: f32[1,32], index: 5, kind: input, shape index: {}]   ;;  %s665_s6 = inlined_call_operand.vmem [shape: bf16[32,32], index: 6, kind: input, shape index: {}]   ;;  %s666_s7 = inlined_call_operand.vmem [shape: bf16[32,32], index: 7, kind: input, shape index: {}]   ;;  %s667_s8 = inlined_call_operand.vmem [shape: f32[1,32], index: 8, kind: input, shape index: {}]   ;;  %s668_s9 = inlined_call_operand.vmem [shape: bf16[32,32], index: 9, kind: input, shape index: {}]   ;;  %s669_s10 = inlined_call_operand.vmem [shape: f32[1,32], index: 10, kind: input, shape index: {}]   ;;  %s670_s11 = inlined_call_operand.vmem [shape: bf16[32,32], index: 11, kind: output, shape index: {0}]   ;;  %s671_s12 = inlined_call_operand.hbm [shape: f32[16,32], index: 12, kind: output, shape index: {1}]  }
   0x1   :  { %v51_v0 = vld [vmem:[%s663_s4] sm:$0xff]  ;;  %455 = vset.pattern.permute.xlu0 %v490_v1  ;;  %456 = vset.pattern.permute.xlu1 %v490_v1 }
   0x2   :  { %v53_v2 = vsub.f32 0.0, %v51_v0 }
   0x3   :  { %18 = vsyncpa [#allocation3], 0  ;;  %457 = vset.pattern.permute.xlu2 %v490_v1  ;;  %v52_v3 = vld [vmem:[%s663_s4 + $0x8] sm:$0xff]  ;;  %v49_v5 = vld [vmem:[%s664_s5] sm:$0x1]  ;;  %vm46_vm0 = vcmask 261120  }
   0x4   :  { %57 = vperm.xlu0 %455, %v53_v2   ;;  %v54_v4 = vsub.f32 0.0, %v52_v3  ;;  %v440_v6 = vld [vmem:[%s660_s1] sm:$0xff]  ;;  %v50_v7 = vand.u32 2147483647, %v49_v5  ;;  %v441_v13 = vld [vmem:[%s660_s1 + $0x8] sm:$0xff]  ;;  %vm101_vm1 = vcmask 130048  }
   0x5   :  { %v445_v16 = vld [vmem:[%s665_s6 + $0x8] sm:$0xff]  ;;  %v444_v17 = vld [vmem:[%s665_s6] sm:$0xff]  ;;  %v300_v39 = vld [vmem:[%s661_s2 + $0x10] sm:$0xff]  ;;  %vm293_vm2 = vcmask 257024   ;;  %s492_s23 = smov [#allocation2]   ;;  %s377_s26 = sshll.u32 %s671_s12, 4  ;;  %s378_s26 = int_to_ptr.hbm [resolvable:$true] %s377_s26 }
   0x6   :  { %v66_v8 = vperm.slane %v50_v7, 0  ;;  %209 = vmatpush.bf16.msra.mxu2 %v445_v16  ;;  %v442_v18 = vld [vmem:[%s659_s0] sm:$0xff]  ;;  %v75_v21 = vld [vmem:[%s662_s3 + $0x8] sm:$0xff]  ;;  %314 = vperm.xlu1 %456, %v300_v39   ;;  %v301_v44 = vld [vmem:[%s661_s2 + $0x18] sm:$0xff]  ;;  %s375_s24 = sshll.u32 %s492_s23, 4  ;;  %s494_s27 = smov 8   ;;  %s376_s24 = int_to_ptr.vmem [resolvable:$true] %s375_s24 }
   0x7   :  { %v74_v20 = vld [vmem:[%s662_s3] sm:$0xff]  ;;  %v447_v26 = vld [vmem:[%s666_s7 + $0x8] sm:$0xff] }
   0x8   :  { %162 = vmatpush.bf16.msra.mxu1 %v447_v26  ;;  %v446_v27 = vld [vmem:[%s666_s7] sm:$0xff]  ;;  %v443_v28 = vld [vmem:[%s659_s0 + $0x8] sm:$0xff] }
   0x9   :  { %v449_v35 = vld [vmem:[%s668_s9 + $0x8] sm:$0xff]  ;;  %v448_v36 = vld [vmem:[%s668_s9] sm:$0xff] }
   0xa   :  { %210 = vmatpush.bf16.msra.mxu2 %v444_v17  ;;  %264 = vmatpush.bf16.msra.mxu3 %v449_v35  ;;  %v298_v40 = vld [vmem:[%s661_s2] sm:$0xff]  ;;  %v299_v45 = vld [vmem:[%s661_s2 + $0x8] sm:$0xff] }
   0xb   :  { %304 = vperm.xlu2 %457, %v298_v40   ;;  %v458_v43 = vld [vmem:[%s667_s8] ss:$0 sm:$0xff] }
   0xc   :  { %62 = vperm.xlu0 %455, %v54_v4   ;;  %163 = vmatpush.bf16.msra.mxu1 %v446_v27  ;;  %v83_v0 = vld [vmem:[%s659_s0] sm:$0xff]  }
   0xd   :  { %427 = vmatmul.msk.bf16.vlgmr.msra.gmra.mxu2 %vm46_vm0, %v442_v18  ;;  %v87_v1 = vunpack.c.l.bf16 %v83_v0  ;;  %v459_v2 = vld [vmem:[%s669_s10] ss:$0 sm:$0xff]  ;;  %v88_v7 = vunpack.c.h.bf16 %v83_v0 }
   0xe   :  { %265 = vmatpush.bf16.msra.mxu3 %v448_v36  ;;  %319 = vperm.xlu1 %456, %v301_v44  }
  0x13   :  { %309 = vperm.xlu2 %457, %v299_v45  }
  0x1d   :  { %428 = vmatmul.msk.bf16.gmra.mxu2 %vm46_vm0, %v443_v28 }
  0x2e   :  { %332 = vxpose.xlu0.c.b16.start [1/2] (short) (narrow) %v440_v6, 16 }
  0x3e   :  { %333 = vxpose.xlu0.c.b16.end [2/2] (short) (narrow) %v441_v13, 16 }
  0x65   :  { %v305_v17 = vpop.permute.xlu2 %304 }
  0x76   :  { %v58_v9 = vpop.permute.xlu0 %57 }
  0x77   :  { %v68_v10 = vmul.f32 %v66_v8, %v58_v9 }
  0x78   :  { %v315_v18 = vpop.permute.xlu1 %314 }
  0x79   :  { %v70_v11 = vmul.f32 1.442695, %v68_v10  ;;  %v491_v10 = vmov 0.0  }
  0x7a   :  { %47 = vst.msk [vmem:[#allocation2] sm:$0xff] %vm46_vm0, %v491_v10 }
  0x7b   :  { %460 = vpow2.f32 %v70_v11  ;;  %v85_v11 = vld [vmem:[%s659_s0 + $0x8] sm:$0xff]   ;;  %48 = vst.msk [vmem:[#allocation2 + $0x8] sm:$0xff] %vm46_vm0, %v491_v10 }
  0x7e   :  { %v63_v12 = vpop.permute.xlu0 %62 }
  0x7f   :  { %v69_v14 = vmul.f32 %v66_v8, %v63_v12 }
  0x80   :  { %v320_v26 = vpop.permute.xlu1 %319 }
  0x81   :  { %v72_v15 = vmul.f32 1.442695, %v69_v14  ;;  %v461_v19 = vpop.eup %460  ;;  %v89_v14 = vunpack.c.l.bf16 %v85_v11  ;;  %v328_v35 = vld [vmem:[#allocation2] sm:$0xff] }
  0x82   :  { %v76_v23 = vmul.f32 %v461_v19, %v74_v20 }
  0x83   :  { %462 = vpow2.f32 %v72_v15 }
  0x89   :  { %v463_v22 = vpop.eup %462 }
  0x8a   :  { %v77_v24 = vmul.f32 %v463_v22, %v75_v21  ;;  %v90_v21 = vunpack.c.h.bf16 %v85_v11 }
  0x8c   :  { %v78_v25 = vpack.c.bf16 %v77_v24, %v76_v23 }
  0x8e   :  { %115 = vmatpush.bf16.msra.mxu0 %v78_v25  ;;  %v310_v25 = vpop.permute.xlu2 %309 }
  0x90   :  { %v212_v37 = vpop.f32.mrf.mxu2 }
  0x91   :  { %399 = vmatmul.msk.bf16.vlgmr.msra.gmra.mxu0 %vm101_vm1, %v440_v6 }
  0x98   :  { %v214_v41 = vpop.f32.mrf.mxu2 }
  0xa0   :  { %v217_v52 = vpop.f32.mrf.mxu2 }
  0xa1   :  { %400 = vmatmul.msk.bf16.gmra.mxu0 %vm101_vm1, %v441_v13 }
  0xa8   :  { %v219_v56 = vpop.f32.mrf.mxu2 }
 0x10e   :  { %v117_v29 = vpop.f32.mrf.mxu0 }
 0x116   :  { %v119_v30 = vpop.f32.mrf.mxu0 }
 0x117   :  { %v131_v31 = vpack.c.bf16 %v119_v30, %v117_v29 }
 0x119   :  { %409 = vmatmul.msk.bf16.vlgmr.msra.gmra.mxu1 %vm46_vm0, %v131_v31 }
 0x11e   :  { %v122_v32 = vpop.f32.mrf.mxu0 }
 0x126   :  { %v124_v33 = vpop.f32.mrf.mxu0 }
 0x127   :  { %v132_v34 = vpack.c.bf16 %v124_v33, %v122_v32 }
 0x129   :  { %410 = vmatmul.msk.bf16.gmra.mxu1 %vm46_vm0, %v132_v34  ;;  %v340_v34 = vpop.trf.xlu0 }
 0x196   :  { %v165_v38 = vpop.f32.mrf.mxu1 }
 0x197   :  { %v213_v42 = vadd.f32 %v212_v37, %v165_v38  ;;  %v329_v38 = vld [vmem:[#allocation2 + $0x8] sm:$0xff] }
 0x199   :  { %v226_v47 = vadd.f32 %v458_v43, %v213_v42 }
 0x19b   :  { %v230_v50 = vmax.f32 %v226_v47, 0.0 }
 0x19e   :  { %v167_v46 = vpop.f32.mrf.mxu1 }
 0x19f   :  { %v215_v48 = vadd.f32 %v214_v41, %v167_v46 }
 0x1a1   :  { %v227_v49 = vadd.f32 %v458_v43, %v215_v48 }
 0x1a3   :  { %v231_v51 = vmax.f32 %v227_v49, 0.0 }
 0x1a5   :  { %v234_v53 = vpack.c.bf16 %v231_v51, %v230_v50 }
 0x1a6   :  { %v170_v54 = vpop.f32.mrf.mxu1 }
 0x1a7   :  { %437 = vmatmul.msk.bf16.vlgmr.msra.gmra.mxu3 %vm46_vm0, %v234_v53  ;;  %v218_v55 = vadd.f32 %v217_v52, %v170_v54 }
 0x1a9   :  { %v228_v58 = vadd.f32 %v458_v43, %v218_v55 }
 0x1ab   :  { %v232_v61 = vmax.f32 %v228_v58, 0.0 }
 0x1ae   :  { %v172_v57 = vpop.f32.mrf.mxu1 }
 0x1af   :  { %v220_v59 = vadd.f32 %v219_v56, %v172_v57 }
 0x1b1   :  { %v229_v60 = vadd.f32 %v458_v43, %v220_v59 }
 0x1b3   :  { %v233_v62 = vmax.f32 %v229_v60, 0.0 }
 0x1b5   :  { %v235_v63 = vpack.c.bf16 %v233_v62, %v232_v61 }
 0x1b7   :  { %438 = vmatmul.msk.bf16.gmra.mxu3 %vm46_vm0, %v235_v63 }
 0x22a   :  { %v267_v3 = vpop.f32.mrf.mxu3 }
 0x22b   :  { %v277_v4 = vadd.f32 %v267_v3, %v87_v1 }
 0x22d   :  { %v285_v5 = vadd.f32 %v459_v2, %v277_v4 }
 0x22f   :  { %v289_v6 = vpack.c.bf16 %v285_v5, %v285_v5  ;;  %v322_v32 = vmul.f32 %v305_v17, %v285_v5 }
 0x231   :  { %294 = vst.msk [vmem:[%s670_s11] sm:$0xf] %vm293_vm2, %v289_v6 }
 0x232   :  { %v269_v8 = vpop.f32.mrf.mxu3 }
 0x233   :  { %v278_v9 = vadd.f32 %v269_v8, %v88_v7 }
 0x235   :  { %v286_v12 = vadd.f32 %v459_v2, %v278_v9 }
 0x237   :  { %v290_v13 = vpack.c.bf16 %v286_v12, %v286_v12  ;;  %v323_v30 = vmul.f32 %v310_v25, %v286_v12 }
 0x239   :  { %295 = vst.msk [vmem:[%s670_s11 + $0x4] sm:$0xf] %vm293_vm2, %v290_v13  ;;  %v326_v33 = vpack.c.bf16 %v323_v30, %v322_v32 }
 0x23a   :  { %v272_v15 = vpop.f32.mrf.mxu3 }
 0x23b   :  { %v279_v16 = vadd.f32 %v272_v15, %v89_v14 }
 0x23d   :  { %v287_v19 = vadd.f32 %v459_v2, %v279_v16 }
 0x23f   :  { %v291_v20 = vpack.c.bf16 %v287_v19, %v287_v19  ;;  %v324_v28 = vmul.f32 %v315_v18, %v287_v19 }
 0x241   :  { %296 = vst.msk [vmem:[%s670_s11 + $0x8] sm:$0xf] %vm293_vm2, %v291_v20 }
 0x242   :  { %v274_v22 = vpop.f32.mrf.mxu3 }
 0x243   :  { %v280_v23 = vadd.f32 %v274_v22, %v90_v21 }
 0x245   :  { %v288_v24 = vadd.f32 %v459_v2, %v280_v23 }
 0x247   :  { %v292_v27 = vpack.c.bf16 %v288_v24, %v288_v24  ;;  %v325_v29 = vmul.f32 %v320_v26, %v288_v24 }
 0x249   :  { %297 = vst.msk [vmem:[%s670_s11 + $0xc] sm:$0xf] %vm293_vm2, %v292_v27  ;;  %v327_v31 = vpack.c.bf16 %v325_v29, %v324_v28  ;;  %s493_s11 = smov 128  }
 0x24b   :  { %357 = vmatpush.bf16.msrb.mxu0 %v327_v31 }
 0x24f   :  { %358 = vmatpush.bf16.msrb.mxu0 %v326_v33 }
 0x252   :  { %439 = vmatmul.msk.bf16.vlgmr.msrb.gmra.mxu0 %vm46_vm0, %v340_v34 }
 0x2cf   :  { %v360_v36 = vpop.f32.mrf.mxu0 }
 0x2d0   :  { %v365_v37 = vadd.f32 %v360_v36, %v328_v35 }
 0x2d2   :  { %367 = vst.msk [vmem:[#allocation2] sm:$0xff] %vm46_vm0, %v365_v37 }
 0x2d7   :  { %v362_v39 = vpop.f32.mrf.mxu0 }
 0x2d8   :  { %v366_v40 = vadd.f32 %v362_v39, %v329_v38 }
 0x2da   :  { %368 = vst.msk [vmem:[#allocation2 + $0x8] sm:$0xff] %vm46_vm0, %v366_v40 }
 0x2db   :  { %383 = dma.vmem_to_hbm [thread:$0]  %s376_s24, 256, %s378_s26, [#allocation3], %s493_s11, %s493_s11, %s494_s27  }
 0x2dc   :  { %488 = dma.done.wait [#allocation3], 256  }
 0x2dd   :  { %489 = vsyncadd [#allocation3], 4294967040 }
 0x2de   :  { %390 = vsyncpa [#allocation3], 1 }

// kernel: prism_decoder_forward.11
= control target key start
LH: loop header
LB: loop body
LE: loop exit
PB: predicated region body
PF: predicated region fallthrough
CT: control target
= control target key end

     0   :  { %vm49_vm0 = vcmask 261120   ;;  %vm75_vm1 = vcmask 523264   ;;  %s156_s1 = inlined_call_operand.vmem [shape: bf16[32,64], index: 1, kind: input, shape index: {}]   ;;  %s157_s2 = inlined_call_operand.vmem [shape: f32[1,64], index: 2, kind: input, shape index: {}]   ;;  %s158_s0 = inlined_call_operand.vmem [shape: bf16[32,32], index: 0, kind: input, shape index: {}]   ;;  %s159_s3 = inlined_call_operand.vmem [shape: f32[32,64], index: 3, kind: output, shape index: {}]  }
   0x1   :  { %v105_v0 = vld [vmem:[%s156_s1 + $0x8] sm:$0xff]  ;;  %v104_v1 = vld [vmem:[%s156_s1] sm:$0xff] }
   0x2   :  { %62 = vmatpush.bf16.msra.mxu0 %v105_v0  ;;  %106 = vmatpush.bf16.msra.mxu1 %v105_v0  ;;  %v102_v2 = vld [vmem:[%s158_s0] sm:$0xff]  ;;  %v103_v3 = vld [vmem:[%s158_s0 + $0x8] sm:$0xff] }
   0x3   :  { %v108_v4 = vld [vmem:[%s157_s2] ss:$0 sm:$0xff] }
   0x6   :  { %63 = vmatpush.bf16.msra.mxu0 %v104_v1  ;;  %107 = vmatpush.bf16.msra.mxu1 %v104_v1 }
   0x9   :  { %100 = vmatmul.msk.bf16.vlgmr.msra.gmra.mxu0 %vm49_vm0, %v102_v2  ;;  %101 = vmatmul.msk.bf16.vlgmr.msra.gmra.mxu1 %vm49_vm0, %v103_v3 }
  0x86   :  { %v65_v5 = vpop.f32.mrf.mxu0  ;;  %v70_v6 = vpop.f32.mrf.mxu1 }
  0x87   :  { %v66_v7 = vadd.f32 %v108_v4, %v65_v5  ;;  %v71_v8 = vadd.f32 %v108_v4, %v70_v6 }
  0x89   :  { %76 = vst.msk [vmem:[%s159_s3] sm:$0xff] %vm75_vm1, %v66_v7 }
  0x8a   :  { %78 = vst.msk [vmem:[%s159_s3 + $0x10] sm:$0xff] %vm75_vm1, %v71_v8 }
  0x8e   :  { %v67_v9 = vpop.f32.mrf.mxu0  ;;  %v72_v10 = vpop.f32.mrf.mxu1 }
  0x8f   :  { %v68_v11 = vadd.f32 %v108_v4, %v67_v9  ;;  %v73_v12 = vadd.f32 %v108_v4, %v72_v10 }
  0x91   :  { %77 = vst.msk [vmem:[%s159_s3 + $0x8] sm:$0xff] %vm75_vm1, %v68_v11 }
  0x92   :  { %79 = vst.msk [vmem:[%s159_s3 + $0x18] sm:$0xff] %vm75_vm1, %v73_v12 }

// kernel: prism_decoder_forward.12
= control target key start
LH: loop header
LB: loop body
LE: loop exit
PB: predicated region body
PF: predicated region fallthrough
CT: control target
= control target key end

     0   :  { %vm90_vm0 = vcmask 523264   ;;  %vm1180_vm1 = vcmask 392192   ;;  %vm1182_vm2 = vcmask 388096   ;;  %s2507_s1 = inlined_call_operand.vmem [shape: bf16[64,64], index: 1, kind: input, shape index: {}]   ;;  %s2508_s2 = inlined_call_operand.vmem [shape: f32[1,64], index: 2, kind: input, shape index: {}]   ;;  %s2509_s0 = inlined_call_operand.vmem [shape: bf16[48,64], index: 0, kind: input, shape index: {}]   ;;  %s2510_s3 = inlined_call_operand.vmem [shape: bf16[64,512], index: 3, kind: input, shape index: {}]   ;;  %s2511_s5 = inlined_call_operand.vmem [shape: bf16[512,256], index: 5, kind: input, shape index: {}]   ;;  %s2512_s4 = inlined_call_operand.vmem [shape: f32[1,512], index: 4, kind: input, shape index: {}]   ;;  %s2513_s7 = inlined_call_operand.vmem [shape: bf16[256,12], index: 7, kind: input, shape index: {}]   ;;  %s2514_s6 = inlined_call_operand.vmem [shape: f32[1,256], index: 6, kind: input, shape index: {}]   ;;  %s2515_s8 = inlined_call_operand.vmem [shape: f32[12,1], index: 8, kind: input, shape index: {}]   ;;  %s2516_s9 = inlined_call_operand.vmem [shape: f32[12,48], index: 9, kind: output, shape index: {}]  }
   0x1   :  { %v1621_v0 = vld [vmem:[%s2507_s1 + $0x18] sm:$0xff]  ;;  %v1620_v1 = vld [vmem:[%s2507_s1 + $0x10] sm:$0xff]  ;;  %v1619_v2 = vld [vmem:[%s2507_s1 + $0x8] sm:$0xff] }
   0x2   :  { %104 = vmatpush.bf16.msra.mxu0 %v1621_v0  ;;  %1718 = vmatpush.bf16.msra.mxu3 %v1621_v0  ;;  %v1618_v3 = vld [vmem:[%s2507_s1] sm:$0xff]  ;;  %v1616_v5 = vld [vmem:[%s2509_s0 + $0x8] sm:$0xff]  ;;  %v1617_v6 = vld [vmem:[%s2509_s0 + $0x10] sm:$0xff] }
   0x3   :  { %v1615_v4 = vld [vmem:[%s2509_s0] sm:$0xff]  ;;  %v1636_v8 = vld [vmem:[%s2510_s3 + $0x6c] sm:$0xf0]  ;;  %v1271_v11 = vld [vmem:[%s2510_s3 + $0x70] sm:$0xf0] }
   0x4   :  { %v1269_v7 = vld [vmem:[%s2510_s3 + $0x60] sm:$0xf]  ;;  %v1634_v9 = vld [vmem:[%s2510_s3 + $0x64] sm:$0xf]  ;;  %v1277_v12 = vld [vmem:[%s2510_s3 + $0x68] sm:$0xf] }
   0x5   :  { %v1270_v10 = vor.u32 %v1636_v8, %v1269_v7  ;;  %v1637_v13 = vld [vmem:[%s2510_s3 + $0x74] sm:$0xf0]  ;;  %v1274_v14 = vor.u32 %v1634_v9, %v1271_v11  ;;  %v1635_v16 = vld [vmem:[%s2510_s3 + $0x6c] sm:$0xf]  ;;  %v1279_v17 = vld [vmem:[%s2510_s3 + $0x78] sm:$0xf0] }
   0x6   :  { %105 = vmatpush.bf16.msra.mxu0 %v1620_v1  ;;  %1719 = vmatpush.bf16.msra.mxu3 %v1620_v1  ;;  %v1278_v15 = vor.u32 %v1637_v13, %v1277_v12  ;;  %v1282_v18 = vor.u32 %v1635_v16, %v1279_v17  ;;  %v1253_v19 = vld [vmem:[%s2510_s3 + $0x40] sm:$0xf]  ;;  %v1632_v20 = vld [vmem:[%s2510_s3 + $0x4c] sm:$0xf0]  ;;  %v1630_v21 = vld [vmem:[%s2510_s3 + $0x44] sm:$0xf] }
   0x7   :  { %252 = vmatpush.bf16.msra.mxu1 %v1270_v10  ;;  %276 = vmatpush.bf16.msra.mxu2 %v1274_v14  ;;  %v1254_v22 = vor.u32 %v1632_v20, %v1253_v19  ;;  %v1255_v23 = vld [vmem:[%s2510_s3 + $0x50] sm:$0xf0]  ;;  %v1261_v24 = vld [vmem:[%s2510_s3 + $0x48] sm:$0xf]  ;;  %v1633_v25 = vld [vmem:[%s2510_s3 + $0x54] sm:$0xf0] }
   0x8   :  { %v1258_v26 = vor.u32 %v1630_v21, %v1255_v23  ;;  %v1262_v27 = vor.u32 %v1633_v25, %v1261_v24  ;;  %v1631_v28 = vld [vmem:[%s2510_s3 + $0x4c] sm:$0xf]  ;;  %v1263_v29 = vld [vmem:[%s2510_s3 + $0x58] sm:$0xf0]  ;;  %v1237_v31 = vld [vmem:[%s2510_s3 + $0x20] sm:$0xf] }
   0x9   :  { %v1266_v30 = vor.u32 %v1631_v28, %v1263_v29  ;;  %v1628_v32 = vld [vmem:[%s2510_s3 + $0x2c] sm:$0xf0]  ;;  %v1626_v33 = vld [vmem:[%s2510_s3 + $0x24] sm:$0xf]  ;;  %v1239_v35 = vld [vmem:[%s2510_s3 + $0x30] sm:$0xf0] }
   0xa   :  { %106 = vmatpush.bf16.msra.mxu0 %v1619_v2  ;;  %1720 = vmatpush.bf16.msra.mxu3 %v1619_v2  ;;  %v1238_v34 = vor.u32 %v1628_v32, %v1237_v31  ;;  %v1245_v36 = vld [vmem:[%s2510_s3 + $0x28] sm:$0xf]  ;;  %v1629_v37 = vld [vmem:[%s2510_s3 + $0x34] sm:$0xf0]  ;;  %v1242_v38 = vor.u32 %v1626_v33, %v1239_v35  ;;  %v1627_v40 = vld [vmem:[%s2510_s3 + $0x2c] sm:$0xf] }
   0xb   :  { %253 = vmatpush.bf16.msra.mxu1 %v1254_v22  ;;  %277 = vmatpush.bf16.msra.mxu2 %v1258_v26  ;;  %v1246_v39 = vor.u32 %v1629_v37, %v1245_v36  ;;  %v1247_v41 = vld [vmem:[%s2510_s3 + $0x38] sm:$0xf0]  ;;  %v1221_v43 = vld [vmem:[%s2510_s3] sm:$0xf]  ;;  %v1624_v44 = vld [vmem:[%s2510_s3 + $0xc] sm:$0xf0] }
   0xc   :  { %v1250_v42 = vor.u32 %v1627_v40, %v1247_v41  ;;  %v1622_v45 = vld [vmem:[%s2510_s3 + $0x4] sm:$0xf]  ;;  %v1222_v46 = vor.u32 %v1624_v44, %v1221_v43  ;;  %v1223_v47 = vld [vmem:[%s2510_s3 + $0x10] sm:$0xf0]  ;;  %v1229_v48 = vld [vmem:[%s2510_s3 + $0x8] sm:$0xf] }
   0xd   :  { %v1625_v49 = vld [vmem:[%s2510_s3 + $0x14] sm:$0xf0]  ;;  %v1226_v50 = vor.u32 %v1622_v45, %v1223_v47  ;;  %v1623_v52 = vld [vmem:[%s2510_s3 + $0xc] sm:$0xf]  ;;  %v1231_v53 = vld [vmem:[%s2510_s3 + $0x18] sm:$0xf0] }
   0xe   :  { %107 = vmatpush.bf16.msra.mxu0 %v1618_v3  ;;  %1721 = vmatpush.bf16.msra.mxu3 %v1618_v3  ;;  %v1230_v51 = vor.u32 %v1625_v49, %v1229_v48  ;;  %v1234_v54 = vor.u32 %v1623_v52, %v1231_v53  ;;  %v1929_v56 = vld [vmem:[%s2508_s2] ss:$0 sm:$0xff]  ;;  %v1353_v1 = vld [vmem:[%s2511_s5 + $0x70] sm:$0xf]  ;;  %v1653_v2 = vld [vmem:[%s2511_s5 + $0x74] sm:$0xf0] }
   0xf   :  { %254 = vmatpush.bf16.msra.mxu1 %v1238_v34  ;;  %278 = vmatpush.bf16.msra.mxu2 %v1242_v38  ;;  %v1545_v3 = vld [vmem:[%s2511_s5 + $0x1f0] sm:$0xf]  ;;  %v1651_v8 = vld [vmem:[%s2511_s5 + $0x64] sm:$0xf0]  ;;  %v1537_v9 = vld [vmem:[%s2511_s5 + $0x1e0] sm:$0xf] }
  0x10   :  { %v1699_v10 = vld [vmem:[%s2511_s5 + $0x1e4] sm:$0xf0]  ;;  %v1417_v12 = vld [vmem:[%s2511_s5 + $0xf0] sm:$0xf]  ;;  %v1669_v13 = vld [vmem:[%s2511_s5 + $0xf4] sm:$0xf0] }
  0x11   :  { %1216 = vmatmul.msk.bf16.vlgmr.msra.gmra.mxu0 %vm90_vm0, %v1615_v4  ;;  %1217 = vmatmul.msk.bf16.vlgmr.msra.gmra.mxu3 %vm90_vm0, %v1616_v5  ;;  %v1354_v4 = vor.u32 %v1653_v2, %v1353_v1  ;;  %v1701_v5 = vld [vmem:[%s2511_s5 + $0x1f4] sm:$0xf0]  ;;  %v1481_v14 = vld [vmem:[%s2511_s5 + $0x170] sm:$0xf]  ;;  %v1418_v16 = vor.u32 %v1669_v13, %v1417_v12  ;;  %v1409_v25 = vld [vmem:[%s2511_s5 + $0xe0] sm:$0xf] }
  0x12   :  { %300 = vmatpush.bf16.msrb.mxu3 %v1278_v15  ;;  %324 = vmatpush.bf16.msrb.mxu0 %v1282_v18  ;;  %v1546_v7 = vor.u32 %v1701_v5, %v1545_v3  ;;  %v1538_v15 = vor.u32 %v1699_v10, %v1537_v9  ;;  %v1685_v17 = vld [vmem:[%s2511_s5 + $0x174] sm:$0xf0]  ;;  %v1337_v18 = vld [vmem:[%s2511_s5 + $0x50] sm:$0xf]  ;;  %v1667_v26 = vld [vmem:[%s2511_s5 + $0xe4] sm:$0xf0] }
  0x13   :  { %255 = vmatpush.bf16.msra.mxu1 %v1222_v46  ;;  %279 = vmatpush.bf16.msra.mxu2 %v1226_v50  ;;  %v1649_v19 = vld [vmem:[%s2511_s5 + $0x54] sm:$0xf0]  ;;  %v1482_v22 = vor.u32 %v1685_v17, %v1481_v14  ;;  %v1529_v23 = vld [vmem:[%s2511_s5 + $0x1d0] sm:$0xf]  ;;  %v1683_v28 = vld [vmem:[%s2511_s5 + $0x164] sm:$0xf0] }
  0x14   :  { %v1697_v24 = vld [vmem:[%s2511_s5 + $0x1d4] sm:$0xf0]  ;;  %v1338_v29 = vor.u32 %v1649_v19, %v1337_v18  ;;  %v1401_v34 = vld [vmem:[%s2511_s5 + $0xd0] sm:$0xf]  ;;  %v1329_v38 = vld [vmem:[%s2511_s5 + $0x40] sm:$0xf] }
  0x15   :  { %v1530_v33 = vor.u32 %v1697_v24, %v1529_v23  ;;  %v1665_v35 = vld [vmem:[%s2511_s5 + $0xd4] sm:$0xf0]  ;;  %v1521_v40 = vld [vmem:[%s2511_s5 + $0x1c0] sm:$0xf]  ;;  %v1695_v41 = vld [vmem:[%s2511_s5 + $0x1c4] sm:$0xf0] }
  0x16   :  { %301 = vmatpush.bf16.msrb.mxu3 %v1262_v27  ;;  %325 = vmatpush.bf16.msrb.mxu0 %v1266_v30  ;;  %v1473_v27 = vld [vmem:[%s2511_s5 + $0x160] sm:$0xf]  ;;  %v1410_v30 = vor.u32 %v1667_v26, %v1409_v25  ;;  %v1465_v43 = vld [vmem:[%s2511_s5 + $0x150] sm:$0xf]  ;;  %v1681_v44 = vld [vmem:[%s2511_s5 + $0x154] sm:$0xf0]  ;;  %v1522_v47 = vor.u32 %v1695_v41, %v1521_v40 }
  0x17   :  { %v1474_v31 = vor.u32 %v1683_v28, %v1473_v27  ;;  %v1466_v48 = vor.u32 %v1681_v44, %v1465_v43  ;;  %v1679_v1 = vld [vmem:[%s2511_s5 + $0x144] sm:$0xf0]  ;;  %v1313_v3 = vld [vmem:[%s2511_s5 + $0x20] sm:$0xf]  ;;  %v1385_v9 = vld [vmem:[%s2511_s5 + $0xb0] sm:$0xf] }
  0x18   :  { %v1505_v5 = vld [vmem:[%s2511_s5 + $0x1a0] sm:$0xf]  ;;  %v1661_v10 = vld [vmem:[%s2511_s5 + $0xb4] sm:$0xf0]  ;;  %v1449_v12 = vld [vmem:[%s2511_s5 + $0x130] sm:$0xf] }
  0x19   :  { %v1677_v13 = vld [vmem:[%s2511_s5 + $0x134] sm:$0xf0]  ;;  %v1497_v18 = vld [vmem:[%s2511_s5 + $0x190] sm:$0xf]  ;;  %v1441_v23 = vld [vmem:[%s2511_s5 + $0x120] sm:$0xf] }
  0x1a   :  { %302 = vmatpush.bf16.msrb.mxu3 %v1246_v39  ;;  %326 = vmatpush.bf16.msrb.mxu0 %v1250_v42  ;;  %v1647_v39 = vld [vmem:[%s2511_s5 + $0x44] sm:$0xf0]  ;;  %v1402_v42 = vor.u32 %v1665_v35, %v1401_v34  ;;  %v1450_v14 = vor.u32 %v1677_v13, %v1449_v12  ;;  %v1689_v19 = vld [vmem:[%s2511_s5 + $0x194] sm:$0xf0]  ;;  %v1297_v27 = vld [vmem:[%s2511_s5] sm:$0xf] }
  0x1b   :  { %v1330_v46 = vor.u32 %v1647_v39, %v1329_v38  ;;  %v1675_v25 = vld [vmem:[%s2511_s5 + $0x124] sm:$0xf0]  ;;  %v1657_v34 = vld [vmem:[%s2511_s5 + $0x94] sm:$0xf0]  ;;  %v1433_v35 = vld [vmem:[%s2511_s5 + $0x110] sm:$0xf] }
  0x1c   :  { %v1442_v26 = vor.u32 %v1675_v25, %v1441_v23  ;;  %v1639_v28 = vld [vmem:[%s2511_s5 + $0x4] sm:$0xf0]  ;;  %v1361_v39 = vld [vmem:[%s2511_s5 + $0x80] sm:$0xf]  ;;  %v1680_v25 = vld [vmem:[%s2511_s5 + $0x154] sm:$0xf] }
  0x1d   :  { %v1655_v40 = vld [vmem:[%s2511_s5 + $0x84] sm:$0xf0]  ;;  %v1425_v41 = vld [vmem:[%s2511_s5 + $0x100] sm:$0xf] }
  0x1e   :  { %303 = vmatpush.bf16.msrb.mxu3 %v1230_v51  ;;  %327 = vmatpush.bf16.msrb.mxu0 %v1234_v54  ;;  %v1671_v43 = vld [vmem:[%s2511_s5 + $0x104] sm:$0xf0] }
  0x1f   :  { %v1426_v44 = vor.u32 %v1671_v43, %v1425_v41 }
  0x21   :  { %1218 = vmatmul.msk.bf16.gmra.mxu3 %vm90_vm0, %v1617_v6  ;;  %v1345_v6 = vld [vmem:[%s2511_s5 + $0x60] sm:$0xf] }
  0x22   :  { %v1346_v11 = vor.u32 %v1651_v8, %v1345_v6  ;;  %842 = vmatpush.bf16.msra.mxu0 %v1546_v7  ;;  %818 = vmatpush.bf16.msra.mxu3 %v1482_v22  ;;  %v1691_v7 = vld [vmem:[%s2511_s5 + $0x1a4] sm:$0xf0] }
  0x23   :  { %v1506_v8 = vor.u32 %v1691_v7, %v1505_v5  ;;  %v1659_v22 = vld [vmem:[%s2511_s5 + $0xa4] sm:$0xf0]  ;;  %v1652_v7 = vld [vmem:[%s2511_s5 + $0x74] sm:$0xf] }
  0x26   :  { %843 = vmatpush.bf16.msra.mxu0 %v1538_v15  ;;  %819 = vmatpush.bf16.msra.mxu3 %v1474_v31  ;;  %v1305_v15 = vld [vmem:[%s2511_s5 + $0x10] sm:$0xf]  ;;  %v1687_v31 = vld [vmem:[%s2511_s5 + $0x184] sm:$0xf0] }
  0x2a   :  { %844 = vmatpush.bf16.msra.mxu0 %v1530_v33  ;;  %820 = vmatpush.bf16.msra.mxu3 %v1466_v48  ;;  %v1369_v33 = vld [vmem:[%s2511_s5 + $0x90] sm:$0xf] }
  0x2e   :  { %845 = vmatpush.bf16.msra.mxu0 %v1522_v47  ;;  %v149_v47 = vld [vmem:[%s2512_s4] sm:$0xf] }
  0x8e   :  { %v109_v55 = vpop.f32.mrf.mxu0 }
  0x8f   :  { %v110_v58 = vadd.f32 %v1929_v56, %v109_v55  ;;  %v1321_v55 = vld [vmem:[%s2511_s5 + $0x30] sm:$0xf] }
  0x91   :  { %v124_v61 = vmax.f32 %v110_v58, 0.0 }
  0x94   :  { %v114_v57 = vpop.f32.mrf.mxu3 }
  0x95   :  { %v115_v20 = vadd.f32 %v1929_v56, %v114_v57  ;;  %v1645_v57 = vld [vmem:[%s2511_s5 + $0x34] sm:$0xf0] }
  0x96   :  { %v111_v59 = vpop.f32.mrf.mxu0  ;;  %v1322_v58 = vor.u32 %v1645_v57, %v1321_v55  ;;  %v1684_v57 = vld [vmem:[%s2511_s5 + $0x174] sm:$0xf] }
  0x97   :  { %v112_v60 = vadd.f32 %v1929_v56, %v111_v59  ;;  %v126_v36 = vmax.f32 %v115_v20, 0.0  ;;  %v1693_v59 = vld [vmem:[%s2511_s5 + $0x1b4] sm:$0xf0]  ;;  %v1498_v20 = vor.u32 %v1689_v19, %v1497_v18 }
  0x99   :  { %v125_v62 = vmax.f32 %v112_v60, 0.0 }
  0x9b   :  { %v130_v63 = vpack.c.bf16 %v125_v62, %v124_v61  ;;  %v1393_v61 = vld [vmem:[%s2511_s5 + $0xc0] sm:$0xf]  ;;  %v1663_v62 = vld [vmem:[%s2511_s5 + $0xc4] sm:$0xf0] }
  0x9c   :  { %v116_v0 = vpop.f32.mrf.mxu3 }
  0x9d   :  { %1283 = vmatmul.msk.bf16.vlgmr.msra.gmra.mxu1 %vm90_vm0, %v130_v63  ;;  %1286 = vmatmul.msk.bf16.vlgmr.msra.gmra.mxu2 %vm90_vm0, %v130_v63  ;;  %v117_v21 = vadd.f32 %v1929_v56, %v116_v0  ;;  %v1457_v0 = vld [vmem:[%s2511_s5 + $0x140] sm:$0xf] }
  0x9e   :  { %1289 = vmatmul.msk.bf16.vlgmr.msrb.gmra.mxu3 %vm90_vm0, %v130_v63  ;;  %1292 = vmatmul.msk.bf16.vlgmr.msrb.gmra.mxu0 %vm90_vm0, %v130_v63  ;;  %v1394_v63 = vor.u32 %v1663_v62, %v1393_v61  ;;  %v1458_v2 = vor.u32 %v1679_v1, %v1457_v0  ;;  %v2174_v1 = vperm.slane %v149_v47, 1 }
  0x9f   :  { %770 = vmatpush.bf16.msra.mxu1 %v1354_v4  ;;  %794 = vmatpush.bf16.msra.mxu2 %v1418_v16  ;;  %v127_v37 = vmax.f32 %v117_v21, 0.0  ;;  %v1643_v4 = vld [vmem:[%s2511_s5 + $0x24] sm:$0xf0]  ;;  %v1641_v16 = vld [vmem:[%s2511_s5 + $0x14] sm:$0xf0] }
  0xa0   :  { %v1314_v6 = vor.u32 %v1643_v4, %v1313_v3  ;;  %821 = vmatpush.bf16.msra.mxu3 %v1458_v2  ;;  %v1306_v17 = vor.u32 %v1641_v16, %v1305_v15  ;;  %v1377_v21 = vld [vmem:[%s2511_s5 + $0xa0] sm:$0xf]  ;;  %v1682_v4 = vld [vmem:[%s2511_s5 + $0x164] sm:$0xf]  ;;  %v1523_v16 = vld [vmem:[%s2511_s5 + $0x1c8] sm:$0xf0] }
  0xa1   :  { %v131_v45 = vpack.c.bf16 %v127_v37, %v126_v36  ;;  %v1378_v24 = vor.u32 %v1659_v22, %v1377_v21  ;;  %v1370_v36 = vor.u32 %v1657_v34, %v1369_v33  ;;  %v1673_v37 = vld [vmem:[%s2511_s5 + $0x114] sm:$0xf0]  ;;  %v1694_v15 = vld [vmem:[%s2511_s5 + $0x1c4] sm:$0xf]  ;;  %v1668_v34 = vld [vmem:[%s2511_s5 + $0xf4] sm:$0xf] }
  0xa2   :  { %v1434_v38 = vor.u32 %v1673_v37, %v1433_v35  ;;  %v1526_v21 = vor.u32 %v1694_v15, %v1523_v16  ;;  %v1419_v35 = vld [vmem:[%s2511_s5 + $0xf8] sm:$0xf0] }
  0xa3   :  { %771 = vmatpush.bf16.msra.mxu1 %v1346_v11  ;;  %795 = vmatpush.bf16.msra.mxu2 %v1410_v30  ;;  %v1386_v11 = vor.u32 %v1661_v10, %v1385_v9  ;;  %v1298_v30 = vor.u32 %v1639_v28, %v1297_v27  ;;  %v1475_v9 = vld [vmem:[%s2511_s5 + $0x168] sm:$0xf0]  ;;  %v2189_v10 = vperm.slane %v149_v47, 2 }
  0xa4   :  { %v119_v32 = vpop.f32.mrf.mxu3  ;;  %822 = vmatpush.bf16.msra.mxu3 %v1450_v14  ;;  %v1478_v12 = vor.u32 %v1682_v4, %v1475_v9  ;;  %v1664_v9 = vld [vmem:[%s2511_s5 + $0xd4] sm:$0xf] }
  0xa5   :  { %v120_v50 = vadd.f32 %v1929_v56, %v119_v32 }
  0xa7   :  { %772 = vmatpush.bf16.msra.mxu1 %v1338_v29  ;;  %796 = vmatpush.bf16.msra.mxu2 %v1402_v42  ;;  %v128_v52 = vmax.f32 %v120_v50, 0.0  ;;  %v1489_v29 = vld [vmem:[%s2511_s5 + $0x180] sm:$0xf]  ;;  %v1362_v42 = vor.u32 %v1655_v40, %v1361_v39  ;;  %v1648_v40 = vld [vmem:[%s2511_s5 + $0x54] sm:$0xf] }
  0xa8   :  { %823 = vmatpush.bf16.msra.mxu3 %v1442_v26  ;;  %v1490_v32 = vor.u32 %v1687_v31, %v1489_v29  ;;  %v1467_v26 = vld [vmem:[%s2511_s5 + $0x158] sm:$0xf0]  ;;  %v1692_v31 = vld [vmem:[%s2511_s5 + $0x1b4] sm:$0xf] }
  0xab   :  { %773 = vmatpush.bf16.msra.mxu1 %v1330_v46  ;;  %797 = vmatpush.bf16.msra.mxu2 %v1394_v63  ;;  %v1547_v46 = vld [vmem:[%s2511_s5 + $0x1f8] sm:$0xf0] }
  0xac   :  { %v121_v49 = vpop.f32.mrf.mxu3  ;;  %824 = vmatpush.bf16.msra.mxu3 %v1434_v38  ;;  %v1531_v63 = vld [vmem:[%s2511_s5 + $0x1d8] sm:$0xf0] }
  0xad   :  { %1284 = vmatmul.msk.bf16.gmra.mxu1 %vm90_vm0, %v131_v45  ;;  %1287 = vmatmul.msk.bf16.gmra.mxu2 %vm90_vm0, %v131_v45  ;;  %v122_v51 = vadd.f32 %v1929_v56, %v121_v49  ;;  %v1513_v56 = vld [vmem:[%s2511_s5 + $0x1b0] sm:$0xf] }
  0xae   :  { %1290 = vmatmul.msk.bf16.gmra.mxu3 %vm90_vm0, %v131_v45  ;;  %1293 = vmatmul.msk.bf16.gmra.mxu0 %vm90_vm0, %v131_v45  ;;  %v1514_v60 = vor.u32 %v1693_v59, %v1513_v56  ;;  %v1700_v45 = vld [vmem:[%s2511_s5 + $0x1f4] sm:$0xf]  ;;  %v1483_v56 = vld [vmem:[%s2511_s5 + $0x178] sm:$0xf0] }
  0xaf   :  { %v129_v53 = vmax.f32 %v122_v51, 0.0  ;;  %774 = vmatpush.bf16.msra.mxu1 %v1322_v58  ;;  %798 = vmatpush.bf16.msra.mxu2 %v1386_v11  ;;  %v1550_v49 = vor.u32 %v1700_v45, %v1547_v46  ;;  %v1698_v51 = vld [vmem:[%s2511_s5 + $0x1e4] sm:$0xf]  ;;  %v1486_v59 = vor.u32 %v1684_v57, %v1483_v56  ;;  %v1339_v46 = vld [vmem:[%s2511_s5 + $0x58] sm:$0xf0] }
  0xb0   :  { %846 = vmatpush.bf16.msra.mxu0 %v1514_v60  ;;  %825 = vmatpush.bf16.msra.mxu3 %v1426_v44  ;;  %v1696_v60 = vld [vmem:[%s2511_s5 + $0x1d4] sm:$0xf]  ;;  %v1411_v57 = vld [vmem:[%s2511_s5 + $0xe8] sm:$0xf0]  ;;  %v1690_v56 = vld [vmem:[%s2511_s5 + $0x1a4] sm:$0xf] }
  0xb1   :  { %v132_v54 = vpack.c.bf16 %v129_v53, %v128_v52  ;;  %v2153_v52 = vperm.slane %v149_v47, 0  ;;  %v1539_v53 = vld [vmem:[%s2511_s5 + $0x1e8] sm:$0xf0]  ;;  %v1534_v3 = vor.u32 %v1696_v60, %v1531_v63  ;;  %v1342_v60 = vor.u32 %v1648_v40, %v1339_v46 }
  0xb2   :  { %v1542_v55 = vor.u32 %v1698_v51, %v1539_v53  ;;  %v1666_v51 = vld [vmem:[%s2511_s5 + $0xe4] sm:$0xf]  ;;  %v1331_v63 = vld [vmem:[%s2511_s5 + $0x48] sm:$0xf0] }
  0xb3   :  { %775 = vmatpush.bf16.msra.mxu1 %v1314_v6  ;;  %799 = vmatpush.bf16.msra.mxu2 %v1378_v24  ;;  %v1347_v24 = vld [vmem:[%s2511_s5 + $0x68] sm:$0xf0]  ;;  %v1414_v4 = vor.u32 %v1666_v51, %v1411_v57  ;;  %v1660_v51 = vld [vmem:[%s2511_s5 + $0xb4] sm:$0xf] }
  0xb4   :  { %847 = vmatpush.bf16.msra.mxu0 %v1506_v8  ;;  %914 = vmatpush.bf16.msrb.mxu3 %v1486_v59  ;;  %v1355_v8 = vld [vmem:[%s2511_s5 + $0x78] sm:$0xf0] }
  0xb5   :  { %v1358_v19 = vor.u32 %v1652_v7, %v1355_v8 }
  0xb7   :  { %776 = vmatpush.bf16.msra.mxu1 %v1306_v17  ;;  %800 = vmatpush.bf16.msra.mxu2 %v1370_v36  ;;  %v1515_v36 = vld [vmem:[%s2511_s5 + $0x1b8] sm:$0xf0] }
  0xb8   :  { %848 = vmatpush.bf16.msra.mxu0 %v1498_v20  ;;  %v1650_v20 = vld [vmem:[%s2511_s5 + $0x64] sm:$0xf]  ;;  %915 = vmatpush.bf16.msrb.mxu3 %v1478_v12  ;;  %v1518_v41 = vor.u32 %v1692_v31, %v1515_v36  ;;  %v1499_v12 = vld [vmem:[%s2511_s5 + $0x198] sm:$0xf0] }
  0xb9   :  { %v1350_v39 = vor.u32 %v1650_v20, %v1347_v24 }
  0xbb   :  { %777 = vmatpush.bf16.msra.mxu1 %v1298_v30  ;;  %801 = vmatpush.bf16.msra.mxu2 %v1362_v42  ;;  %v1470_v30 = vor.u32 %v1680_v25, %v1467_v26  ;;  %v1678_v42 = vld [vmem:[%s2511_s5 + $0x144] sm:$0xf] }
  0xbc   :  { %849 = vmatpush.bf16.msra.mxu0 %v1490_v32  ;;  %v1686_v25 = vld [vmem:[%s2511_s5 + $0x184] sm:$0xf] }
  0xbd   :  { %1285 = vmatmul.msk.bf16.gmra.mxu1 %vm90_vm0, %v132_v54  ;;  %1288 = vmatmul.msk.bf16.gmra.mxu2 %vm90_vm0, %v132_v54 }
  0xbe   :  { %1291 = vmatmul.msk.bf16.gmra.mxu3 %vm90_vm0, %v132_v54  ;;  %1294 = vmatmul.msk.bf16.gmra.mxu0 %vm90_vm0, %v132_v54  ;;  %v2158_v54 = vperm.slane %v149_v47, 3  ;;  %v1459_v47 = vld [vmem:[%s2511_s5 + $0x148] sm:$0xf0] }
  0xbf   :  { %916 = vmatpush.bf16.msrb.mxu3 %v1470_v30  ;;  %v1462_v53 = vor.u32 %v1678_v42, %v1459_v47  ;;  %v1491_v30 = vld [vmem:[%s2511_s5 + $0x188] sm:$0xf0]  ;;  %v1642_v42 = vld [vmem:[%s2511_s5 + $0x24] sm:$0xf] }
  0xc0   :  { %938 = vmatpush.bf16.msrb.mxu0 %v1550_v49 }
  0xc3   :  { %917 = vmatpush.bf16.msrb.mxu3 %v1462_v53  ;;  %v1387_v53 = vld [vmem:[%s2511_s5 + $0xb8] sm:$0xf0] }
  0xc4   :  { %939 = vmatpush.bf16.msrb.mxu0 %v1542_v55 }
  0xc8   :  { %940 = vmatpush.bf16.msrb.mxu0 %v1534_v3 }
  0xcc   :  { %941 = vmatpush.bf16.msrb.mxu0 %v1526_v21  ;;  %v1644_v21 = vld [vmem:[%s2511_s5 + $0x34] sm:$0xf] }
  0xd0   :  { %942 = vmatpush.bf16.msrb.mxu0 %v1518_v41 }
 0x11a   :  { %v257_v48 = vpop.f32.mrf.mxu1 }
 0x11b   :  { %v329_v50 = vpop.f32.mrf.mxu0  ;;  %v258_v61 = vadd.f32 %v257_v48, %v2153_v52 }
 0x11c   :  { %v330_v0 = vadd.f32 %v329_v50, %v2158_v54  ;;  %v1422_v50 = vor.u32 %v1668_v34, %v1419_v35  ;;  %v1494_v34 = vor.u32 %v1686_v25, %v1491_v30  ;;  %v1672_v35 = vld [vmem:[%s2511_s5 + $0x114] sm:$0xf] }
 0x11d   :  { %v344_v13 = vmax.f32 %v258_v61, 0.0  ;;  %v1646_v61 = vld [vmem:[%s2511_s5 + $0x44] sm:$0xf] }
 0x11e   :  { %v347_v17 = vmax.f32 %v330_v0, 0.0  ;;  %v1676_v0 = vld [vmem:[%s2511_s5 + $0x134] sm:$0xf]  ;;  %v1334_v15 = vor.u32 %v1646_v61, %v1331_v63  ;;  %v1670_v61 = vld [vmem:[%s2511_s5 + $0x104] sm:$0xf] }
 0x120   :  { %v281_v58 = vpop.f32.mrf.mxu2 }
 0x121   :  { %v305_v62 = vpop.f32.mrf.mxu3  ;;  %v282_v22 = vadd.f32 %v281_v58, %v2174_v1  ;;  %v1507_v58 = vld [vmem:[%s2511_s5 + $0x1a8] sm:$0xf0] }
 0x122   :  { %v259_v2 = vpop.f32.mrf.mxu1  ;;  %v306_v27 = vadd.f32 %v305_v62, %v2189_v10  ;;  %v1510_v62 = vor.u32 %v1690_v56, %v1507_v58 }
 0x123   :  { %v260_v5 = vadd.f32 %v259_v2, %v2153_v52  ;;  %v331_v6 = vpop.f32.mrf.mxu0  ;;  %v345_v43 = vmax.f32 %v282_v22, 0.0  ;;  %v1451_v2 = vld [vmem:[%s2511_s5 + $0x138] sm:$0xf0] }
 0x124   :  { %v332_v11 = vadd.f32 %v331_v6, %v2158_v54  ;;  %v346_v48 = vmax.f32 %v306_v27, 0.0  ;;  %v1688_v6 = vld [vmem:[%s2511_s5 + $0x194] sm:$0xf]  ;;  %943 = vmatpush.bf16.msrb.mxu0 %v1510_v62  ;;  %v1323_v22 = vld [vmem:[%s2511_s5 + $0x38] sm:$0xf0] }
 0x125   :  { %v348_v14 = vmax.f32 %v260_v5, 0.0  ;;  %v1454_v5 = vor.u32 %v1676_v0, %v1451_v2  ;;  %v1502_v16 = vor.u32 %v1688_v6, %v1499_v12  ;;  %v1307_v2 = vld [vmem:[%s2511_s5 + $0x18] sm:$0xf0]  ;;  %v1390_v6 = vor.u32 %v1660_v51, %v1387_v53 }
 0x126   :  { %v351_v18 = vmax.f32 %v332_v11, 0.0  ;;  %v1403_v11 = vld [vmem:[%s2511_s5 + $0xd8] sm:$0xf0] }
 0x127   :  { %v2202_v23 = vpack.c.bf16 %v348_v14, %v344_v13  ;;  %918 = vmatpush.bf16.msrb.mxu3 %v1454_v5  ;;  %v1406_v27 = vor.u32 %v1664_v9, %v1403_v11  ;;  %v1658_v9 = vld [vmem:[%s2511_s5 + $0xa4] sm:$0xf]  ;;  %v1379_v11 = vld [vmem:[%s2511_s5 + $0xa8] sm:$0xf0] }
 0x128   :  { %v2214_v28 = vpack.c.bf16 %v351_v18, %v347_v17  ;;  %v283_v29 = vpop.f32.mrf.mxu2  ;;  %v1674_v17 = vld [vmem:[%s2511_s5 + $0x124] sm:$0xf]  ;;  %v1443_v18 = vld [vmem:[%s2511_s5 + $0x128] sm:$0xf0]  ;;  %944 = vmatpush.bf16.msrb.mxu0 %v1502_v16 }
 0x129   :  { %v284_v32 = vadd.f32 %v283_v29, %v2174_v1  ;;  %v307_v33 = vpop.f32.mrf.mxu3  ;;  %778 = vmatmul.bf16.vlgmr.msra.gmra.mxu1 %v2202_v23  ;;  %v1446_v24 = vor.u32 %v1674_v17, %v1443_v18  ;;  %v1662_v29 = vld [vmem:[%s2511_s5 + $0xc4] sm:$0xf]  ;;  %v1382_v17 = vor.u32 %v1658_v9, %v1379_v11  ;;  %v1707_v9 = vld [vmem:[%s2513_s7 + $0x28] sm:$0xff] }
 0x12a   :  { %v308_v37 = vadd.f32 %v307_v33, %v2189_v10  ;;  %850 = vmatmul.bf16.vlgmr.msra.gmra.mxu0 %v2214_v28  ;;  %v262_v38 = vpop.f32.mrf.mxu1  ;;  %866 = vmatpush.bf16.msra.mxu1 %v1358_v19  ;;  %v1395_v33 = vld [vmem:[%s2511_s5 + $0xc8] sm:$0xf0] }
 0x12b   :  { %v349_v44 = vmax.f32 %v284_v32, 0.0  ;;  %v334_v45 = vpop.f32.mrf.mxu0  ;;  %v263_v7 = vadd.f32 %v262_v38, %v2153_v52  ;;  %v1326_v38 = vor.u32 %v1644_v21, %v1323_v22  ;;  %919 = vmatpush.bf16.msrb.mxu3 %v1446_v24  ;;  %v1371_v21 = vld [vmem:[%s2511_s5 + $0x98] sm:$0xf0] }
 0x12c   :  { %v350_v49 = vmax.f32 %v308_v37, 0.0  ;;  %v335_v13 = vadd.f32 %v334_v45, %v2158_v54  ;;  %945 = vmatpush.bf16.msrb.mxu0 %v1494_v34  ;;  %v1363_v34 = vld [vmem:[%s2511_s5 + $0x88] sm:$0xf0] }
 0x12d   :  { %v2247_v55 = vpack.c.bf16 %v349_v44, %v345_v43  ;;  %v352_v31 = vmax.f32 %v263_v7, 0.0  ;;  %v1315_v43 = vld [vmem:[%s2511_s5 + $0x28] sm:$0xf0] }
 0x12e   :  { %v2258_v59 = vpack.c.bf16 %v350_v49, %v346_v48  ;;  %867 = vmatpush.bf16.msra.mxu1 %v1350_v39  ;;  %v355_v36 = vmax.f32 %v335_v13, 0.0  ;;  %v1435_v39 = vld [vmem:[%s2511_s5 + $0x118] sm:$0xf0]  ;;  %v1398_v48 = vor.u32 %v1662_v29, %v1395_v33  ;;  %v1318_v58 = vor.u32 %v1642_v42, %v1315_v43  ;;  %v1654_v33 = vld [vmem:[%s2511_s5 + $0x84] sm:$0xf] }
 0x12f   :  { %802 = vmatmul.bf16.vlgmr.msra.gmra.mxu2 %v2247_v55  ;;  %v1438_v44 = vor.u32 %v1672_v35, %v1435_v39 }
 0x130   :  { %826 = vmatmul.bf16.vlgmr.msra.gmra.mxu3 %v2258_v59  ;;  %v286_v3 = vpop.f32.mrf.mxu2  ;;  %890 = vmatpush.bf16.msra.mxu2 %v1422_v50 }
 0x131   :  { %v310_v8 = vpop.f32.mrf.mxu3  ;;  %v287_v40 = vadd.f32 %v286_v3, %v2174_v1  ;;  %920 = vmatpush.bf16.msrb.mxu3 %v1438_v44  ;;  %v1427_v3 = vld [vmem:[%s2511_s5 + $0x108] sm:$0xf0] }
 0x132   :  { %v264_v14 = vpop.f32.mrf.mxu1  ;;  %868 = vmatpush.bf16.msra.mxu1 %v1342_v60  ;;  %v311_v45 = vadd.f32 %v310_v8, %v2189_v10  ;;  %v1640_v60 = vld [vmem:[%s2511_s5 + $0x14] sm:$0xf]  ;;  %v1430_v7 = vor.u32 %v1670_v61, %v1427_v3 }
 0x133   :  { %v265_v19 = vadd.f32 %v264_v14, %v2153_v52  ;;  %v336_v20 = vpop.f32.mrf.mxu0  ;;  %v353_v62 = vmax.f32 %v287_v40, 0.0  ;;  %v1310_v13 = vor.u32 %v1640_v60, %v1307_v2  ;;  %v1638_v14 = vld [vmem:[%s2511_s5 + $0x4] sm:$0xf]  ;;  %v1366_v40 = vor.u32 %v1654_v33, %v1363_v34  ;;  %v1713_v33 = vld [vmem:[%s2513_s7 + $0x58] sm:$0xff]  ;;  %v1704_v34 = vld [vmem:[%s2513_s7 + $0x10] sm:$0xff] }
 0x134   :  { %v337_v26 = vadd.f32 %v336_v20, %v2158_v54  ;;  %891 = vmatpush.bf16.msra.mxu2 %v1414_v4  ;;  %v354_v4 = vmax.f32 %v311_v45, 0.0  ;;  %v1656_v20 = vld [vmem:[%s2511_s5 + $0x94] sm:$0xf] }
 0x135   :  { %v356_v32 = vmax.f32 %v265_v19, 0.0  ;;  %921 = vmatpush.bf16.msrb.mxu3 %v1430_v7  ;;  %v1374_v30 = vor.u32 %v1656_v20, %v1371_v21  ;;  %v1714_v20 = vld [vmem:[%s2513_s7 + $0x60] sm:$0xff]  ;;  %v1705_v21 = vld [vmem:[%s2513_s7 + $0x18] sm:$0xff] }
 0x136   :  { %v359_v37 = vmax.f32 %v337_v26, 0.0  ;;  %869 = vmatpush.bf16.msra.mxu1 %v1334_v15  ;;  %v1299_v15 = vld [vmem:[%s2511_s5 + $0x8] sm:$0xf0] }
 0x137   :  { %v2321_v41 = vpack.c.bf16 %v356_v32, %v352_v31  ;;  %v1302_v25 = vor.u32 %v1638_v14, %v1299_v15 }
 0x138   :  { %v288_v46 = vpop.f32.mrf.mxu2  ;;  %v2330_v47 = vpack.c.bf16 %v359_v37, %v355_v36  ;;  %892 = vmatpush.bf16.msra.mxu2 %v1406_v27 }
 0x139   :  { %v289_v49 = vadd.f32 %v288_v46, %v2174_v1  ;;  %v312_v50 = vpop.f32.mrf.mxu3  ;;  %783 = vmatmul.bf16.gmra.mxu1 %v2321_v41 }
 0x13a   :  { %v313_v57 = vadd.f32 %v312_v50, %v2189_v10  ;;  %855 = vmatmul.bf16.gmra.mxu0 %v2330_v47  ;;  %v267_v56 = vpop.f32.mrf.mxu1  ;;  %870 = vmatpush.bf16.msra.mxu1 %v1326_v38 }
 0x13b   :  { %v357_v63 = vmax.f32 %v289_v49, 0.0  ;;  %v339_v0 = vpop.f32.mrf.mxu0  ;;  %v268_v18 = vadd.f32 %v267_v56, %v2153_v52 }
 0x13c   :  { %v358_v5 = vmax.f32 %v313_v57, 0.0  ;;  %893 = vmatpush.bf16.msra.mxu2 %v1398_v48  ;;  %v340_v22 = vadd.f32 %v339_v0, %v2158_v54  ;;  %v1709_v0 = vld [vmem:[%s2513_s7 + $0x38] sm:$0xff] }
 0x13d   :  { %v373_v8 = vpack.c.bf16 %v357_v63, %v353_v62  ;;  %v360_v31 = vmax.f32 %v268_v18, 0.0 }
 0x13e   :  { %v374_v12 = vpack.c.bf16 %v358_v5, %v354_v4  ;;  %871 = vmatpush.bf16.msra.mxu1 %v1318_v58  ;;  %v363_v35 = vmax.f32 %v340_v22, 0.0  ;;  %v1717_v4 = vld [vmem:[%s2513_s7 + $0x78] sm:$0xff]  ;;  %v1708_v5 = vld [vmem:[%s2513_s7 + $0x30] sm:$0xff] }
 0x13f   :  { %807 = vmatmul.bf16.gmra.mxu2 %v373_v8 }
 0x140   :  { %831 = vmatmul.bf16.gmra.mxu3 %v374_v12  ;;  %v291_v16 = vpop.f32.mrf.mxu2  ;;  %894 = vmatpush.bf16.msra.mxu2 %v1390_v6  ;;  %v2424_v6 = vld [vmem:[%s2514_s6] sm:$0x3] }
 0x141   :  { %v315_v19 = vpop.f32.mrf.mxu3  ;;  %v446_v11 = vperm.slane %v2424_v6, 0 }
 0x142   :  { %v269_v24 = vpop.f32.mrf.mxu1  ;;  %872 = vmatpush.bf16.msra.mxu1 %v1310_v13 }
 0x143   :  { %v270_v26 = vadd.f32 %v269_v24, %v2153_v52  ;;  %v341_v27 = vpop.f32.mrf.mxu0  ;;  %v292_v52 = vadd.f32 %v291_v16, %v2174_v1  ;;  %v1715_v16 = vld [vmem:[%s2513_s7 + $0x68] sm:$0xff] }
 0x144   :  { %v342_v29 = vadd.f32 %v341_v27, %v2158_v54  ;;  %895 = vmatpush.bf16.msra.mxu2 %v1382_v17  ;;  %v316_v54 = vadd.f32 %v315_v19, %v2189_v10  ;;  %v1706_v17 = vld [vmem:[%s2513_s7 + $0x20] sm:$0xff] }
 0x145   :  { %v364_v32 = vmax.f32 %v270_v26, 0.0  ;;  %v361_v45 = vmax.f32 %v292_v52, 0.0 }
 0x146   :  { %v367_v36 = vmax.f32 %v342_v29, 0.0  ;;  %873 = vmatpush.bf16.msra.mxu1 %v1302_v25  ;;  %v362_v48 = vmax.f32 %v316_v54, 0.0 }
 0x147   :  { %v376_v37 = vpack.c.bf16 %v364_v32, %v360_v31 }
 0x148   :  { %v293_v38 = vpop.f32.mrf.mxu2  ;;  %v379_v39 = vpack.c.bf16 %v367_v36, %v363_v35  ;;  %896 = vmatpush.bf16.msra.mxu2 %v1374_v30 }
 0x149   :  { %v294_v42 = vadd.f32 %v293_v38, %v2174_v1  ;;  %v317_v43 = vpop.f32.mrf.mxu3  ;;  %788 = vmatmul.bf16.gmra.mxu1 %v376_v37 }
 0x14a   :  { %v318_v44 = vadd.f32 %v317_v43, %v2189_v10  ;;  %860 = vmatmul.bf16.gmra.mxu0 %v379_v39  ;;  %1725 = vmatpush.lsf.bf16.msrb.mxu1 %v1709_v0 }
 0x14b   :  { %v365_v46 = vmax.f32 %v294_v42, 0.0 }
 0x14c   :  { %v366_v49 = vmax.f32 %v318_v44, 0.0  ;;  %897 = vmatpush.bf16.msra.mxu2 %v1366_v40  ;;  %v1703_v40 = vld [vmem:[%s2513_s7 + $0x8] sm:$0xff] }
 0x14d   :  { %v377_v50 = vpack.c.bf16 %v365_v46, %v361_v45 }
 0x14e   :  { %v378_v51 = vpack.c.bf16 %v366_v49, %v362_v48  ;;  %1726 = vmatpush.lsf.bf16.msrb.mxu1 %v1708_v5 }
 0x14f   :  { %812 = vmatmul.bf16.gmra.mxu2 %v377_v50 }
 0x150   :  { %836 = vmatmul.bf16.gmra.mxu3 %v378_v51  ;;  %1739 = vmatpush.lsf.bf16.msrb.mxu2 %v1717_v4 }
 0x152   :  { %1727 = vmatpush.lsf.bf16.msrb.mxu1 %v1707_v9 }
 0x156   :  { %1728 = vmatpush.lsf.bf16.msrb.mxu1 %v1706_v17 }
 0x159   :  { %874 = vmatmul.bf16.vlgmr.msra.gmra.mxu1 %v2202_v23 }
 0x15a   :  { %946 = vmatmul.bf16.vlgmr.msrb.gmra.mxu0 %v2214_v28  ;;  %1729 = vmatpush.lsf.bf16.msrb.mxu1 %v1705_v21 }
 0x15e   :  { %1730 = vmatpush.lsf.bf16.msrb.mxu1 %v1704_v34 }
 0x15f   :  { %898 = vmatmul.bf16.vlgmr.msra.gmra.mxu2 %v2247_v55 }
 0x160   :  { %922 = vmatmul.bf16.vlgmr.msrb.gmra.mxu3 %v2258_v59 }
 0x162   :  { %1731 = vmatpush.lsf.bf16.msrb.mxu1 %v1703_v40 }
 0x169   :  { %879 = vmatmul.bf16.gmra.mxu1 %v2321_v41 }
 0x16a   :  { %951 = vmatmul.bf16.gmra.mxu0 %v2330_v47 }
 0x16f   :  { %903 = vmatmul.bf16.gmra.mxu2 %v373_v8  ;;  %v1716_v8 = vld [vmem:[%s2513_s7 + $0x70] sm:$0xff] }
 0x170   :  { %927 = vmatmul.bf16.gmra.mxu3 %v374_v12  ;;  %1740 = vmatpush.lsf.bf16.msrb.mxu2 %v1716_v8 }
 0x174   :  { %1741 = vmatpush.lsf.bf16.msrb.mxu2 %v1715_v16 }
 0x178   :  { %1742 = vmatpush.lsf.bf16.msrb.mxu2 %v1714_v20 }
 0x179   :  { %884 = vmatmul.bf16.gmra.mxu1 %v376_v37 }
 0x17a   :  { %956 = vmatmul.bf16.gmra.mxu0 %v379_v39  ;;  %v1712_v39 = vld [vmem:[%s2513_s7 + $0x50] sm:$0xff] }
 0x17c   :  { %1743 = vmatpush.lsf.bf16.msrb.mxu2 %v1713_v33 }
 0x17f   :  { %908 = vmatmul.bf16.gmra.mxu2 %v377_v50 }
 0x180   :  { %932 = vmatmul.bf16.gmra.mxu3 %v378_v51  ;;  %1744 = vmatpush.lsf.bf16.msrb.mxu2 %v1712_v39 }
 0x1a6   :  { %v2392_v1 = vpop.f32.mrf.mxu1 }
 0x1a7   :  { %v2394_v10 = vpop.f32.mrf.mxu0  ;;  %v780_v48 = vadd.f32 %v2392_v1, %v446_v11 }
 0x1ae   :  { %v2396_v23 = vpop.f32.mrf.mxu1 }
 0x1af   :  { %v2398_v28 = vpop.f32.mrf.mxu0  ;;  %v782_v42 = vadd.f32 %v2396_v23, %v446_v11  ;;  %v1711_v23 = vld [vmem:[%s2513_s7 + $0x48] sm:$0xff] }
 0x1b0   :  { %1745 = vmatpush.lsf.bf16.msrb.mxu2 %v1711_v23 }
 0x1b2   :  { %v2400_v55 = vpop.f32.mrf.mxu2 }
 0x1b3   :  { %v2402_v59 = vpop.f32.mrf.mxu3 }
 0x1b6   :  { %v784_v41 = vpop.f32.mrf.mxu1 }
 0x1b7   :  { %v2404_v47 = vpop.f32.mrf.mxu0  ;;  %v785_v27 = vadd.f32 %v784_v41, %v446_v11 }
 0x1ba   :  { %v2406_v53 = vpop.f32.mrf.mxu2 }
 0x1bb   :  { %v2408_v57 = vpop.f32.mrf.mxu3  ;;  %v806_v49 = vadd.f32 %v2406_v53, %v782_v42 }
 0x1bd   :  { %v830_v53 = vadd.f32 %v2408_v57, %v806_v49  ;;  %v1753_v49 = vmov 0  }
 0x1be   :  { %v786_v56 = vpop.f32.mrf.mxu1  ;;  %1751 = vset.pattern.permute.xlu0 %v1753_v49 }
 0x1bf   :  { %v2410_v58 = vpop.f32.mrf.mxu0  ;;  %v787_v22 = vadd.f32 %v786_v56, %v446_v11  ;;  %v1702_v56 = vld [vmem:[%s2513_s7] sm:$0xff] }
 0x1c2   :  { %v808_v60 = vpop.f32.mrf.mxu2 }
 0x1c3   :  { %v832_v61 = vpop.f32.mrf.mxu3  ;;  %v809_v35 = vadd.f32 %v808_v60, %v785_v27  ;;  %v804_v60 = vadd.f32 %v2400_v55, %v780_v48 }
 0x1c5   :  { %v833_v43 = vadd.f32 %v832_v61, %v809_v35  ;;  %v828_v0 = vadd.f32 %v2402_v59, %v804_v60 }
 0x1c6   :  { %v789_v62 = vpop.f32.mrf.mxu1 }
 0x1c7   :  { %v861_v63 = vpop.f32.mrf.mxu0  ;;  %v790_v14 = vadd.f32 %v789_v62, %v446_v11  ;;  %v857_v61 = vadd.f32 %v2404_v47, %v833_v43  ;;  %v854_v47 = vadd.f32 %v2398_v28, %v830_v53  ;;  %v852_v5 = vadd.f32 %v2394_v10, %v828_v0 }
 0x1c8   :  { %v447_v28 = vperm.slane %v2424_v6, 1 }
 0x1c9   :  { %v964_v57 = vmax.f32 %v854_v47, 0.0  ;;  %v962_v8 = vmax.f32 %v852_v5, 0.0 }
 0x1ca   :  { %v810_v2 = vpop.f32.mrf.mxu2 }
 0x1cb   :  { %v834_v3 = vpop.f32.mrf.mxu3  ;;  %v811_v29 = vadd.f32 %v810_v2, %v787_v22  ;;  %v966_v2 = vmax.f32 %v857_v61, 0.0 }
 0x1cd   :  { %v835_v54 = vadd.f32 %v834_v3, %v811_v29 }
 0x1ce   :  { %v791_v7 = vpop.f32.mrf.mxu1 }
 0x1cf   :  { %v863_v12 = vpop.f32.mrf.mxu0  ;;  %v792_v24 = vadd.f32 %v791_v7, %v446_v11  ;;  %v859_v50 = vadd.f32 %v2410_v58, %v835_v54 }
 0x1d1   :  { %v968_v58 = vmax.f32 %v859_v50, 0.0  ;;  %v1012_v50 = vld [vmem:[%s2515_s8] sm:$0xff] }
 0x1d2   :  { %v813_v13 = vpop.f32.mrf.mxu2  ;;  %1016 = vperm.xlu0 %1751, %v1012_v50  }
 0x1d3   :  { %v837_v15 = vpop.f32.mrf.mxu3  ;;  %v814_v18 = vadd.f32 %v813_v13, %v790_v14  ;;  %v976_v4 = vpack.c.bf16 %v968_v58, %v966_v2  ;;  %v974_v13 = vpack.c.bf16 %v964_v57, %v962_v8 }
 0x1d5   :  { %v838_v25 = vadd.f32 %v837_v15, %v814_v18 }
 0x1d6   :  { %v2439_v19 = vpop.f32.mrf.mxu1 }
 0x1d7   :  { %v2447_v32 = vpop.f32.mrf.mxu0  ;;  %v862_v36 = vadd.f32 %v861_v63, %v838_v25  ;;  %v1710_v63 = vld [vmem:[%s2513_s7 + $0x40] sm:$0xff]  ;;  %v876_v43 = vadd.f32 %v2439_v19, %v447_v28  ;;  %v1013_v19 = vld [vmem:[%s2515_s8 + $0x8] sm:$0xf] }
 0x1d8   :  { %1746 = vmatpush.lsf.bf16.msrb.mxu2 %v1710_v63 }
 0x1d9   :  { %v970_v44 = vmax.f32 %v862_v36, 0.0 }
 0x1da   :  { %v815_v26 = vpop.f32.mrf.mxu2  ;;  %1747 = vllmr.2.mxu2  ;;  %1021 = vperm.xlu0 %1751, %v1013_v19  }
 0x1db   :  { %v816_v30 = vadd.f32 %v815_v26, %v792_v24  ;;  %v839_v31 = vpop.f32.mrf.mxu3 }
 0x1dd   :  { %v840_v52 = vadd.f32 %v839_v31, %v816_v30 }
 0x1de   :  { %v2455_v37 = vpop.f32.mrf.mxu1 }
 0x1df   :  { %v864_v38 = vadd.f32 %v863_v12, %v840_v52  ;;  %v2479_v1 = vpop.f32.mrf.mxu0 }
 0x1e1   :  { %v972_v45 = vmax.f32 %v864_v38, 0.0  ;;  %v878_v38 = vadd.f32 %v2455_v37, %v447_v28 }
 0x1e2   :  { %v2464_v46 = vpop.f32.mrf.mxu2 }
 0x1e3   :  { %v2469_v51 = vpop.f32.mrf.mxu3  ;;  %v978_v41 = vpack.c.bf16 %v972_v45, %v970_v44 }
 0x1e5   :  { %1157 = vmatpush.bf16.xpose.msra.mxu1 %v978_v41  ;;  %v900_v41 = vadd.f32 %v2464_v46, %v876_v43 }
 0x1e6   :  { %v880_v62 = vpop.f32.mrf.mxu1 }
 0x1e7   :  { %v952_v7 = vpop.f32.mrf.mxu0  ;;  %v881_v29 = vadd.f32 %v880_v62, %v447_v28  ;;  %v924_v60 = vadd.f32 %v2469_v51, %v900_v41 }
 0x1e9   :  { %v948_v62 = vadd.f32 %v2447_v32, %v924_v60 }
 0x1ea   :  { %v901_v55 = vpop.f32.mrf.mxu2 }
 0x1eb   :  { %v925_v3 = vpop.f32.mrf.mxu3  ;;  %v902_v44 = vadd.f32 %v901_v55, %v878_v38  ;;  %v963_v46 = vmax.f32 %v948_v62, 0.0 }
 0x1ed   :  { %1732 = vmatpush.lsf.bf16.msrb.mxu1 %v1702_v56  ;;  %v926_v37 = vadd.f32 %v925_v3, %v902_v44 }
 0x1ee   :  { %v882_v9 = vpop.f32.mrf.mxu1 }
 0x1ef   :  { %1733 = vllmr.2.mxu1  ;;  %v954_v59 = vpop.f32.mrf.mxu0  ;;  %v883_v24 = vadd.f32 %v882_v9, %v447_v28  ;;  %v950_v53 = vadd.f32 %v2479_v1, %v926_v37 }
 0x1f1   :  { %1158 = vmatpush.bf16.xpose.msra.mxu1 %v976_v4  ;;  %v965_v63 = vmax.f32 %v950_v53, 0.0 }
 0x1f2   :  { %v904_v11 = vpop.f32.mrf.mxu2 }
 0x1f3   :  { %v928_v12 = vpop.f32.mrf.mxu3  ;;  %v905_v34 = vadd.f32 %v904_v11, %v881_v29  ;;  %v975_v0 = vpack.c.bf16 %v965_v63, %v963_v46 }
 0x1f5   :  { %v929_v39 = vadd.f32 %v928_v12, %v905_v34 }
 0x1f6   :  { %v885_v16 = vpop.f32.mrf.mxu1 }
 0x1f7   :  { %v886_v18 = vadd.f32 %v885_v16, %v447_v28  ;;  %v957_v21 = vpop.f32.mrf.mxu0  ;;  %v953_v23 = vadd.f32 %v952_v7, %v929_v39 }
 0x1f9   :  { %1159 = vmatpush.bf16.xpose.msra.mxu1 %v974_v13  ;;  %v967_v61 = vmax.f32 %v953_v23, 0.0 }
 0x1fa   :  { %v906_v14 = vpop.f32.mrf.mxu2 }
 0x1fb   :  { %v930_v15 = vpop.f32.mrf.mxu3  ;;  %v907_v30 = vadd.f32 %v906_v14, %v883_v24 }
 0x1fd   :  { %v931_v6 = vadd.f32 %v930_v15, %v907_v30 }
 0x1fe   :  { %v887_v22 = vpop.f32.mrf.mxu1 }
 0x1ff   :  { %v888_v25 = vadd.f32 %v887_v22, %v447_v28  ;;  %v959_v52 = vpop.f32.mrf.mxu0  ;;  %v955_v45 = vadd.f32 %v954_v59, %v931_v6 }
 0x201   :  { %v969_v56 = vmax.f32 %v955_v45, 0.0 }
 0x202   :  { %v909_v17 = vpop.f32.mrf.mxu2 }
 0x203   :  { %v933_v20 = vpop.f32.mrf.mxu3  ;;  %v910_v10 = vadd.f32 %v909_v17, %v886_v18  ;;  %v977_v58 = vpack.c.bf16 %v969_v56, %v967_v61 }
 0x205   :  { %v934_v26 = vadd.f32 %v933_v20, %v910_v10 }
 0x207   :  { %v958_v35 = vadd.f32 %v957_v21, %v934_v26 }
 0x209   :  { %v971_v40 = vmax.f32 %v958_v35, 0.0 }
 0x20a   :  { %v911_v27 = vpop.f32.mrf.mxu2 }
 0x20b   :  { %v912_v31 = vadd.f32 %v911_v27, %v888_v25  ;;  %v935_v33 = vpop.f32.mrf.mxu3 }
 0x20d   :  { %v936_v36 = vadd.f32 %v935_v33, %v912_v31 }
 0x20f   :  { %v960_v54 = vadd.f32 %v959_v52, %v936_v36 }
 0x210   :  { %1734 = vmatmul.lmr.bf16.vlgmr.msra.gmra.2.mxu1 }
 0x211   :  { %v973_v42 = vmax.f32 %v960_v54, 0.0 }
 0x213   :  { %v979_v48 = vpack.c.bf16 %v973_v42, %v971_v40 }
 0x215   :  { %1171 = vmatpush.bf16.xpose.msra.mxu2 %v979_v48 }
 0x218   :  { %1735 = vmatmul.lmr.bf16.gmra.2.mxu1 }
 0x21d   :  { %1172 = vmatpush.bf16.xpose.msra.mxu2 %v977_v58 }
 0x225   :  { %1173 = vmatpush.bf16.xpose.msra.mxu2 %v975_v0 }
 0x22c   :  { %1748 = vmatmul.lmr.bf16.vlgmr.msra.gmra.2.mxu2 }
 0x234   :  { %1749 = vmatmul.lmr.bf16.gmra.2.mxu2 }
 0x244   :  { %v1017_v2 = vpop.permute.xlu0 %1016 }
 0x24c   :  { %v1022_v1 = vpop.permute.xlu0 %1021 }
 0x28d   :  { %v1161_v51 = vpop.f32.mrf.mxu1 }
 0x28e   :  { %v1162_v55 = vadd.f32 %v1161_v51, %v1017_v2 }
 0x295   :  { %v1163_v4 = vpop.f32.mrf.mxu1 }
 0x296   :  { %v1164_v32 = vadd.f32 %v1163_v4, %v1022_v1 }
 0x2af   :  { %v1175_v47 = vpop.f32.mrf.mxu2 }
 0x2b0   :  { %v1176_v3 = vadd.f32 %v1175_v47, %v1162_v55 }
 0x2b2   :  { %1181 = vst.msk [vmem:[%s2516_s9] sm:$0xff] %vm1180_vm1, %v1176_v3 }
 0x2b7   :  { %v1177_v5 = vpop.f32.mrf.mxu2 }
 0x2b8   :  { %v1178_v57 = vadd.f32 %v1177_v5, %v1164_v32 }
 0x2ba   :  { %1183 = vst.msk [vmem:[%s2516_s9 + $0x8] sm:$0xf] %vm1182_vm2, %v1178_v57 }

// kernel: prism_decoder_forward.13
= control target key start
LH: loop header
LB: loop body
LE: loop exit
PB: predicated region body
PF: predicated region fallthrough
CT: control target
= control target key end

     0   :  { %v671_v57 = vmov 0.1   ;;  %v673_v58 = vmov 0.2   ;;  %v675_v59 = vmov 0.3   ;;  %s877_s0 = inlined_call_operand.vmem [shape: f32[12,48], index: 0, kind: input, shape index: {}]   ;;  %s878_s1 = inlined_call_operand.vmem [shape: f32[9,48], index: 1, kind: input, shape index: {}]   ;;  %s879_s2 = inlined_call_operand.vmem [shape: f32[9,48], index: 2, kind: output, shape index: {0}]   ;;  %s880_s3 = inlined_call_operand.vmem [shape: f32[9,48], index: 3, kind: output, shape index: {1}]  }
   0x1   :  { %v13_v0 = vld [vmem:[%s877_s0] sm:$0xff]  ;;  %v634_v2 = vld [vmem:[%s878_s1 + $0x8] sm:$0x1]  ;;  %v677_v60 = vmov 1.0  }
   0x2   :  { %v629_v1 = vld [vmem:[%s878_s1] sm:$0xff]  ;;  %v18_v3 = vrot.slane %v13_v0, 4  ;;  %v24_v4 = vsub.f32 0.0, %v13_v0  ;;  %v29_v5 = vrot.slane %v13_v0, 6  ;;  %v32_v6 = vrot.slane %v13_v0, 2 }
   0x3   :  { %v639_v7 = vld [vmem:[%s877_s0 + $0x8] sm:$0xf]  ;;  %s679_s0 = smov 0  }
   0x4   :  { %v641_v8 = vadd.f32 %v18_v3, %v13_v0  ;;  %v643_v9 = vsub.f32 %v13_v0, %v18_v3  ;;  %v25_v10 = vadd.f32 %v24_v4, %v18_v3  ;;  %v645_v11 = vsub.f32 %v13_v0, %v29_v5 }
   0x5   :  { %v647_v12 = vadd.f32 %v32_v6, %v13_v0  ;;  %v27_v19 = vsub.f32 %v24_v4, %v18_v3 }
   0x6   :  { %v21_v13 = vadd.f32 %v641_v8, %v639_v7  ;;  %v23_v14 = vsub.f32 %v643_v9, %v639_v7  ;;  %v42_v15 = vmul.f32 %v645_v11, %v645_v11  ;;  %v43_v16 = vmul.f32 %v643_v9, %v643_v9 }
   0x7   :  { %v52_v17 = vmul.f32 %v647_v12, %v647_v12  ;;  %v26_v18 = vsub.f32 %v25_v10, %v639_v7  ;;  %v57_v20 = vmul.f32 %v641_v8, %v641_v8  ;;  %v28_v27 = vadd.f32 %v27_v19, %v639_v7 }
   0x8   :  { %v35_v21 = vmul.f32 %v21_v13, %v21_v13  ;;  %v36_v22 = vmul.f32 %v23_v14, %v23_v14  ;;  %v45_v23 = vrot.slane %v43_v16, 3  ;;  %v49_v24 = vrot.slane %v42_v15, 4 }
   0x9   :  { %v54_v26 = vrot.slane %v52_v17, 2  ;;  %v38_v29 = vmul.f32 %v26_v18, %v26_v18  ;;  %v59_v31 = vrot.slane %v57_v20, 3  ;;  %v62_v33 = vrot.slane %v52_v17, 6 }
   0xa   :  { %v47_v25 = vadd.f32 %v45_v23, %v42_v15  ;;  %v37_v28 = vadd.f32 %v36_v22, %v35_v21  ;;  %v40_v35 = vmul.f32 %v28_v27, %v28_v27 }
   0xc   :  { %v51_v30 = vadd.f32 %v49_v24, %v47_v25  ;;  %v39_v34 = vadd.f32 %v38_v29, %v37_v28 }
   0xe   :  { %v56_v32 = vadd.f32 %v54_v26, %v51_v30  ;;  %v41_v38 = vadd.f32 %v40_v35, %v39_v34 }
  0x10   :  { %v61_v36 = vadd.f32 %v59_v31, %v56_v32 }
  0x12   :  { %v64_v37 = vadd.f32 %v62_v33, %v61_v36 }
  0x14   :  { %v65_v39 = vmul.f32 2.0, %v64_v37 }
  0x16   :  { %v67_v40 = vrot.slane %v65_v39, 7 }
  0x18   :  { %v69_v41 = vadd.f32 %v67_v40, %v41_v38 }
  0x1a   :  { %559 = vrsqrt.f32 %v69_v41  ;;  %vm77_vm0 = vcmp.eq.f32.partialorder %v69_v41, inf  ;;  %v80_v48 = vand.u32 2147483648, %v69_v41  ;;  %vm79_vm1 = vcmp.eq.f32.partialorder %v69_v41, 0.0 }
  0x20   :  { %v560_v42 = vpop.eup %559 }
  0x21   :  { %v71_v43 = vmul.f32 %v560_v42, %v69_v41 }
  0x23   :  { %v72_v44 = vmul.f32 %v560_v42, %v71_v43 }
  0x25   :  { %v73_v45 = vmul.f32 0.5, %v72_v44 }
  0x27   :  { %v74_v46 = vsub.f32 1.5, %v73_v45 }
  0x29   :  { %v75_v47 = vmul.f32 %v560_v42, %v74_v46 }
  0x2b   :  { %v76_v49 = vmul.f32 %v75_v47, %v69_v41 }
  0x2d   :  { %v78_v50 = vsel %vm77_vm0, %v69_v41, %v76_v49 }
  0x2e   :  { %v81_v51 = vsel %vm79_vm1, %v80_v48, %v78_v50 }
  0x2f   :  { %v82_v52 = vadd.f32 1e-12, %v81_v51 }
  0x31   :  { %v663_v53 = vadd.f32 %v82_v52, %v21_v13  ;;  %v665_v54 = vadd.f32 %v82_v52, %v23_v14  ;;  %v667_v55 = vadd.f32 %v82_v52, %v26_v18  ;;  %v669_v56 = vadd.f32 %v82_v52, %v28_v27 }
  0x32 LB: > { %v98_v62 = vmul.f32 %v593_v59, %v645_v11  ;;  %v103_v63 = vmul.f32 %v589_v58, %v643_v9  ;;  %v108_v0 = vmul.f32 %v585_v57, %v645_v11  ;;  %v114_v3 = vrot.slane %v597_v60, 1  ;;  %s92_s0 = sadd.s32 1, %s601_s0   ;;  %s601_s0 = sphi %s679_s0, %s92_s0   ;;  %v597_v60 = vphi %v677_v60, %v884_v60   ;;  %v593_v59 = vphi %v675_v59, %v883_v59   ;;  %v589_v58 = vphi %v673_v58, %v882_v58   ;;  %v585_v57 = vphi %v671_v57, %v881_v57  }
  0x33   : > { %v97_v61 = vmul.f32 %v597_v60, %v663_v53  ;;  %v118_v4 = vrot.slane %v593_v59, 7  ;;  %v126_v5 = vrot.slane %v589_v58, 1  ;;  %v134_v6 = vrot.slane %v585_v57, 1  ;;  %p89_p0 = scmp.ge.s32.totalorder %s92_s0, 100  }
  0x34   : > { %v100_v10 = vrot.slane %v98_v62, 7  ;;  %v105_v13 = vrot.slane %v103_v63, 2  ;;  %v110_v14 = vrot.slane %v108_v0, 3  ;;  %v141_v15 = vrot.slane %v597_v60, 6 }
  0x35   : > { %v116_v16 = vmul.f32 %v114_v3, %v645_v11  ;;  %v120_v17 = vmul.f32 %v118_v4, %v665_v54  ;;  %v128_v18 = vmul.f32 %v126_v5, %v647_v12  ;;  %v136_v19 = vmul.f32 %v134_v6, %v641_v8 }
  0x36   : > { %v102_v20 = vadd.f32 %v100_v10, %v97_v61  ;;  %v143_v21 = vmul.f32 %v141_v15, %v643_v9  ;;  %v144_v22 = vrot.slane %v593_v59, 6  ;;  %v151_v23 = vrot.slane %v589_v58, 2 }
  0x37   : > { %v122_v24 = vrot.slane %v120_v17, 1  ;;  %v130_v25 = vrot.slane %v128_v18, 2  ;;  %v138_v26 = vrot.slane %v136_v19, 3  ;;  %v158_v27 = vrot.slane %v585_v57, 6 }
  0x38   : > { %v107_v28 = vadd.f32 %v105_v13, %v102_v20  ;;  %v146_v29 = vmul.f32 %v144_v22, %v647_v12  ;;  %v153_v30 = vmul.f32 %v151_v23, %v667_v55  ;;  %v165_v31 = vrot.slane %v597_v60, 5 }
  0x39   : > { %v124_v32 = vadd.f32 %v122_v24, %v116_v16  ;;  %v160_v33 = vmul.f32 %v158_v27, %v647_v12  ;;  %v168_v34 = vrot.slane %v593_v59, 5  ;;  %v175_v35 = vrot.slane %v589_v58, 5 }
  0x3a   : > { %v112_v36 = vadd.f32 %v110_v14, %v107_v28  ;;  %v148_v37 = vrot.slane %v146_v29, 7  ;;  %v155_v38 = vrot.slane %v153_v30, 6  ;;  %v167_v40 = vmul.f32 %v165_v31, %v645_v11 }
  0x3b   : > { %v132_v39 = vadd.f32 %v130_v25, %v124_v32  ;;  %v170_v41 = vmul.f32 %v168_v34, %v641_v8  ;;  %v177_v42 = vmul.f32 %v175_v35, %v647_v12  ;;  %v162_v44 = vrot.slane %v160_v33, 3 }
  0x3c   : > { %v150_v43 = vadd.f32 %v148_v37, %v143_v21  ;;  %v182_v45 = vrot.slane %v585_v57, 3  ;;  %v189_v52 = vmul.f32 %v112_v36, %v112_v36  ;;  %vm289_vm5 = vcmask (%p89_p0), 387074  }
  0x3d   : > { %v140_v46 = vadd.f32 %v138_v26, %v132_v39  ;;  %v172_v47 = vrot.slane %v170_v41, 7  ;;  %v179_v48 = vrot.slane %v177_v42, 2  ;;  %vm291_vm6 = vcmask (%p89_p0), 392199  }
  0x3e   : > { %v157_v49 = vadd.f32 %v155_v38, %v150_v43  ;;  %v184_v50 = vmul.f32 %v182_v45, %v669_v56  ;;  %vm321_vm7 = vcmask (%p89_p0), 386049   ;;  %vm366_vm8 = vcmask (%p89_p0), 388099  }
  0x3f   : > { %v174_v51 = vadd.f32 %v172_v47, %v167_v40  ;;  %v190_v58 = vmul.f32 %v140_v46, %v140_v46 }
  0x40   : > { %v164_v59 = vadd.f32 %v162_v44, %v157_v49  ;;  %v186_v60 = vrot.slane %v184_v50, 5 }
  0x41   : > { %v181_v61 = vadd.f32 %v179_v48, %v174_v51  ;;  %v192_v62 = vrot.slane %v190_v58, 7 }
  0x42   : > { %v195_v63 = vmul.f32 %v164_v59, %v164_v59 }
  0x43   : > { %v188_v0 = vadd.f32 %v186_v60, %v181_v61  ;;  %v194_v3 = vadd.f32 %v192_v62, %v189_v52 }
  0x44   : > { %v197_v4 = vrot.slane %v195_v63, 2 }
  0x45   : > { %v200_v5 = vmul.f32 %v188_v0, %v188_v0 }
  0x46   : > { %v199_v6 = vadd.f32 %v197_v4, %v194_v3 }
  0x47   : > { %v202_v57 = vrot.slane %v200_v5, 3 }
  0x49   : > { %v204_v10 = vadd.f32 %v202_v57, %v199_v6 }
  0x4b   : > { %v205_v13 = vadd.f32 1e-20, %v204_v10 }
  0x4d   : > { %561 = vrsqrt.f32 %v205_v13  ;;  %vm212_vm2 = vweird.f32 %v205_v13 }
  0x53   : > { %v562_v14 = vpop.eup %561 }
  0x54   : > { %v207_v15 = vmul.f32 %v562_v14, %v205_v13  ;;  %vm213_vm3 = vweird.f32 %v562_v14 }
  0x55   : > { %vm214_vm4 = vmor %vm212_vm2, %vm213_vm3 }
  0x56   : > { %v208_v16 = vmul.f32 %v562_v14, %v207_v15 }
  0x58   : > { %v209_v17 = vmul.f32 0.5, %v208_v16 }
  0x5a   : > { %v210_v18 = vsub.f32 1.5, %v209_v17 }
  0x5c   : > { %v211_v19 = vmul.f32 %v562_v14, %v210_v18 }
  0x5e   : > { %v215_v20 = vsel %vm214_vm4, %v562_v14, %v211_v19 }
  0x5f   : > { %v216_v21 = vmul.f32 %v215_v20, %v112_v36   ;;  %v218_v22 = vrot.slane %v215_v20, 1  ;;  %v221_v23 = vrot.slane %v215_v20, 6  ;;  %v224_v24 = vrot.slane %v215_v20, 5  ;;  %91 = sbr.rel (!%p89_p0) target bundleno = 50 (0x32), region = 43 }
  0x61   : > { %v220_v25 = vmul.f32 %v218_v22, %v140_v46   ;;  %v223_v26 = vmul.f32 %v221_v23, %v164_v59   ;;  %v226_v27 = vmul.f32 %v224_v24, %v188_v0   ;;  %v884_v60 = vmov %v216_v21 }
  0x63   : > { %v881_v57 = vmov %v226_v27  ;;  %v882_v58 = vmov %v223_v26  ;;  %v883_v59 = vmov %v220_v25  ;;  %v228_v28 = vmul.f32 (%p89_p0), %v223_v26, %v223_v26 }
  0x64   :  { %v229_v29 = vmul.f32 %v226_v27, %v226_v27  ;;  %v239_v30 = vrot.slane %v226_v27, 3  ;;  %v242_v31 = vrot.slane %v223_v26, 3  ;;  %v235_v32 = vrot.slane %v223_v26, 2 }
  0x65   :  { %v245_v33 = vrot.slane %v226_v27, 4  ;;  %v227_v36 = vmul.f32 %v220_v25, %v220_v25  ;;  %v231_v41 = vrot.slane %v220_v25, 7  ;;  %v248_v45 = vrot.slane %v226_v27, 1 }
  0x66   :  { %v252_v34 = vrot.slane %v229_v29, 1  ;;  %v241_v35 = vmul.f32 %v239_v30, %v216_v21  ;;  %v269_v37 = vrot.slane %v229_v29, 4  ;;  %v244_v38 = vmul.f32 %v242_v31, %v220_v25 }
  0x67   :  { %v237_v39 = vmul.f32 %v235_v32, %v216_v21  ;;  %v247_v40 = vmul.f32 %v245_v33, %v220_v25  ;;  %v233_v9 = vmul.f32 %v231_v41, %v216_v21  ;;  %v284_v11 = vrot.slane %v228_v28, 3 }
  0x68   :  { %v254_v42 = vadd.f32 %v252_v34, %v228_v28  ;;  %v258_v43 = vrot.slane %v241_v35, 1  ;;  %v271_v44 = vadd.f32 %v269_v37, %v227_v36  ;;  %v250_v46 = vmul.f32 %v248_v45, %v223_v26 }
  0x69   :  { %v263_v8 = vrot.slane %v237_v39, 1  ;;  %v275_v47 = vrot.slane %v233_v9, 6  ;;  %v286_v62 = vadd.f32 %v284_v11, %v227_v36 }
  0x6a   :  { %v255_v12 = vmul.f32 2.0, %v254_v42  ;;  %v260_v53 = vsub.f32 %v244_v38, %v258_v43  ;;  %v267_v54 = vadd.f32 %v258_v43, %v244_v38  ;;  %v272_v55 = vmul.f32 2.0, %v271_v44 }
  0x6b   :  { %v265_v56 = vadd.f32 %v263_v8, %v247_v40  ;;  %v279_v48 = vsub.f32 %v247_v40, %v263_v8  ;;  %v277_v59 = vsub.f32 %v250_v46, %v275_v47  ;;  %v281_v61 = vadd.f32 %v275_v47, %v250_v46 }
  0x6c   :  { %v715_v49 = vsub.f32 1.0, %v255_v12  ;;  %v717_v50 = vmul.f32 2.0, %v260_v53  ;;  %v719_v51 = vmul.f32 2.0, %v267_v54  ;;  %v721_v52 = vsub.f32 1.0, %v272_v55 }
  0x6d   :  { %v723_v58 = vmul.f32 2.0, %v265_v56  ;;  %v725_v60 = vmul.f32 2.0, %v279_v48  ;;  %v740_v4 = vmul.f32 2.0, %v277_v59  ;;  %v742_v5 = vmul.f32 2.0, %v281_v61 }
  0x6e   :  { %290 = vst.msk [vmem:[%s880_s3 - $0x2] sm:$0x4] %vm289_vm5, %v715_v49  ;;  %v301_v63 = vrot.slane %v715_v49, 2  ;;  %v309_v0 = vrot.slane %v719_v51, 6  ;;  %v324_v3 = vrot.slane %v717_v50, 7  ;;  %v332_v57 = vrot.slane %v721_v52, 6 }
  0x6f   :  { %292 = vst.msk [vmem:[%s880_s3 - $0x6] sm:$0x80] %vm291_vm6, %v717_v50  ;;  %v314_v6 = vrot.slane %v725_v60, 5  ;;  %v287_v10 = vmul.f32 2.0, %v286_v62  ;;  %v339_v18 = vmul.f32 %v742_v5, %v629_v1  ;;  %v343_v19 = vrot.slane %v723_v58, 7 }
  0x70   :  { %293 = vst.msk [vmem:[%s880_s3 - $0x5] sm:$0x80] %vm291_vm6, %v723_v58  ;;  %v303_v13 = vmul.f32 %v301_v63, %v629_v1  ;;  %v311_v14 = vmul.f32 %v309_v0, %v629_v1  ;;  %v326_v15 = vmul.f32 %v324_v3, %v629_v1  ;;  %v334_v17 = vmul.f32 %v332_v57, %v629_v1 }
  0x71   :  { %294 = vst.msk [vmem:[%s880_s3 - $0x4] sm:$0x80] %vm291_vm6, %v719_v51  ;;  %v316_v16 = vmul.f32 %v314_v6, %v629_v1  ;;  %v769_v20 = vsub.f32 1.0, %v287_v10  ;;  %v351_v23 = vrot.slane %v740_v4, 1  ;;  %v345_v26 = vmul.f32 %v343_v19, %v629_v1 }
  0x72   :  { %295 = vst.msk [vmem:[%s880_s3 - $0x3] sm:$0x80] %vm291_vm6, %v721_v52  ;;  %v305_v21 = vrot.slane %v303_v13, 7  ;;  %v328_v22 = vrot.slane %v326_v15, 6  ;;  %v336_v25 = vrot.slane %v334_v17, 7  ;;  %v368_v32 = vrot.slane %v715_v49, 7 }
  0x73   :  { %296 = vst.msk [vmem:[%s880_s3 + $0x3] sm:$0x4] %vm289_vm5, %v740_v4  ;;  %v318_v24 = vrot.slane %v316_v16, 1  ;;  %v353_v29 = vmul.f32 %v351_v23, %v629_v1  ;;  %v359_v30 = vrot.slane %v769_v20, 5  ;;  %v347_v31 = vrot.slane %v345_v26, 5 }
  0x74   :  { %297 = vst.msk [vmem:[%s880_s3 - $0x1] sm:$0x80] %vm291_vm6, %v725_v60  ;;  %v307_v27 = vadd.f32 %v305_v21, %v639_v7  ;;  %v330_v28 = vadd.f32 %v328_v22, %v639_v7  ;;  %v375_v33 = vrot.slane %v719_v51, 3  ;;  %v382_v34 = vrot.slane %v725_v60, 2 }
  0x75   :  { %298 = vst.msk [vmem:[%s880_s3 + $0x5] sm:$0x4] %vm289_vm5, %v742_v5  ;;  %v355_v37 = vrot.slane %v353_v29, 6  ;;  %v361_v38 = vmul.f32 %v359_v30, %v629_v1  ;;  %v349_v39 = vadd.f32 %v347_v31, %v639_v7  ;;  %v370_v40 = vmul.f32 %v368_v32, %v629_v1 }
  0x76   :  { %299 = vst.msk [vmem:[%s880_s3 + $0x1] sm:$0x80] %vm291_vm6, %v769_v20  ;;  %v312_v35 = vadd.f32 %v311_v14, %v307_v27  ;;  %v338_v36 = vadd.f32 %v336_v25, %v330_v28  ;;  %v377_v41 = vmul.f32 %v375_v33, %v629_v1  ;;  %v384_v42 = vmul.f32 %v382_v34, %v629_v1 }
  0x77   :  { %v363_v45 = vrot.slane %v361_v38, 7  ;;  %v390_v8 = vrot.slane %v717_v50, 4  ;;  %v357_v9 = vadd.f32 %v355_v37, %v349_v39  ;;  %v372_v11 = vrot.slane %v370_v40, 2 }
  0x78   :  { %v320_v43 = vadd.f32 %v318_v24, %v312_v35  ;;  %v340_v44 = vadd.f32 %v339_v18, %v338_v36  ;;  %v379_v12 = vrot.slane %v377_v41, 3  ;;  %v386_v53 = vrot.slane %v384_v42, 4 }
  0x79   :  { %v392_v54 = vmul.f32 %v390_v8, %v629_v1  ;;  %v397_v55 = vrot.slane %v721_v52, 3  ;;  %v405_v56 = vrot.slane %v742_v5, 5  ;;  %v413_v46 = vrot.slane %v723_v58, 4 }
  0x7a   :  { %322 = vst.msk [vmem:[%s879_s2 - $0x1] sm:$0x2] %vm321_vm7, %v320_v43  ;;  %v365_v47 = vadd.f32 %v363_v45, %v357_v9  ;;  %v374_v48 = vadd.f32 %v372_v11, %v639_v7  ;;  %v417_v59 = vrot.slane %v740_v4, 6  ;;  %v424_v61 = vrot.slane %v769_v20, 2 }
  0x7b   :  { %341 = vst.msk [vmem:[%s879_s2 - $0x1] sm:$0x4] %vm289_vm5, %v340_v44  ;;  %v394_v62 = vrot.slane %v392_v54, 1  ;;  %v399_v63 = vmul.f32 %v397_v55, %v629_v1  ;;  %v407_v0 = vmul.f32 %v405_v56, %v629_v1  ;;  %v415_v3 = vmul.f32 %v413_v46, %v629_v1 }
  0x7c   :  { %367 = vst.msk [vmem:[%s879_s2 - $0x1] sm:$0x8] %vm366_vm8, %v365_v47  ;;  %v381_v6 = vadd.f32 %v379_v12, %v374_v48  ;;  %v419_v57 = vmul.f32 %v417_v59, %v629_v1  ;;  %v426_v10 = vmul.f32 %v424_v61, %v629_v1  ;;  %v432_v13 = vrot.slane %v715_v49, 4 }
  0x7d   :  { %v396_v14 = vadd.f32 %v394_v62, %v639_v7  ;;  %v401_v15 = vrot.slane %v399_v63, 2  ;;  %v409_v16 = vrot.slane %v407_v0, 3  ;;  %v416_v17 = vadd.f32 %v415_v3, %v639_v7 }
  0x7e   :  { %v388_v18 = vadd.f32 %v386_v53, %v381_v6  ;;  %v421_v19 = vrot.slane %v419_v57, 1  ;;  %v428_v21 = vrot.slane %v426_v10, 2  ;;  %v434_v22 = vmul.f32 %v432_v13, %v629_v1 }
  0x7f   :  { %v403_v23 = vadd.f32 %v401_v15, %v396_v14  ;;  %v439_v24 = vmul.f32 %v719_v51, %v629_v1  ;;  %v444_v25 = vrot.slane %v725_v60, 7  ;;  %v452_v26 = vrot.slane %v717_v50, 1 }
  0x80   :  { %389 = vst.msk [vmem:[%s879_s2 + $0x2] sm:$0x2] %vm321_vm7, %v388_v18  ;;  %v423_v49 = vadd.f32 %v421_v19, %v416_v17  ;;  %v436_v27 = vrot.slane %v434_v22, 5  ;;  %v459_v28 = vmul.f32 %v721_v52, %v629_v1  ;;  %v464_v29 = vrot.slane %v742_v5, 2 }
  0x81   :  { %v411_v30 = vadd.f32 %v409_v16, %v403_v23  ;;  %v441_v31 = vrot.slane %v439_v24, 6  ;;  %v446_v51 = vmul.f32 %v444_v25, %v634_v2  ;;  %v454_v60 = vmul.f32 %v452_v26, %v629_v1 }
  0x82   :  { %v430_v32 = vadd.f32 %v428_v21, %v423_v49  ;;  %v438_v50 = vadd.f32 %v436_v27, %v639_v7  ;;  %v461_v33 = vrot.slane %v459_v28, 5  ;;  %v466_v34 = vmul.f32 %v464_v29, %v634_v2 }
  0x83   :  { %412 = vst.msk [vmem:[%s879_s2 + $0x2] sm:$0x4] %vm289_vm5, %v411_v30  ;;  %v448_v52 = vrot.slane %v446_v51, 7  ;;  %v456_v35 = vrot.slane %v454_v60, 4  ;;  %v472_v5 = vrot.slane %v723_v58, 1  ;;  %v479_v36 = vrot.slane %v740_v4, 3 }
  0x84   :  { %431 = vst.msk [vmem:[%s879_s2 + $0x2] sm:$0x8] %vm366_vm8, %v430_v32  ;;  %v443_v37 = vadd.f32 %v441_v31, %v438_v50  ;;  %v486_v38 = vrot.slane %v769_v20, 7  ;;  %v468_v40 = vrot.slane %v466_v34, 6 }
  0x85   :  { %v458_v39 = vadd.f32 %v456_v35, %v639_v7  ;;  %v474_v41 = vmul.f32 %v472_v5, %v629_v1  ;;  %v481_v42 = vmul.f32 %v479_v36, %v629_v1 }
  0x86   :  { %v450_v43 = vadd.f32 %v448_v52, %v443_v37  ;;  %v488_v58 = vmul.f32 %v486_v38, %v634_v2 }
  0x87   :  { %v463_v44 = vadd.f32 %v461_v33, %v458_v39  ;;  %v476_v4 = vrot.slane %v474_v41, 3  ;;  %v483_v45 = vrot.slane %v481_v42, 4 }
  0x88   :  { %451 = vst.msk [vmem:[%s879_s2 + $0x5] sm:$0x2] %vm321_vm7, %v450_v43  ;;  %v490_v9 = vrot.slane %v488_v58, 5 }
  0x89   :  { %v470_v8 = vadd.f32 %v468_v40, %v463_v44  ;;  %v478_v20 = vadd.f32 %v476_v4, %v639_v7 }
  0x8b   :  { %471 = vst.msk [vmem:[%s879_s2 + $0x5] sm:$0x4] %vm289_vm5, %v470_v8  ;;  %v485_v1 = vadd.f32 %v483_v45, %v478_v20 }
  0x8d   :  { %v492_v11 = vadd.f32 %v490_v9, %v485_v1 }
  0x8f   :  { %493 = vst.msk [vmem:[%s879_s2 + $0x5] sm:$0x8] %vm366_vm8, %v492_v11 }

</bundles_post_ra>
